<compile_context>
chip_gen: v5e
topology: v5e:2x2
jax: 0.10.0
libtpu: 0.0.40
codegen_flags: <defaults>
</compile_context>

<pallas_src>
import jax
import jax.numpy as jnp
from jax import lax
from jax.experimental import pallas as pl
from jax.experimental.pallas import tpu as pltpu


def _atan(x):
    """float32 arctan via range reduction + odd polynomial (~1e-7 abs error).

    Implemented manually (instead of jnp.arctan) so the kernel only uses ops
    with guaranteed Mosaic lowerings (abs/where/div/mul/add).
    """
    t = jnp.abs(x)
    big = t > 1.0
    z = jnp.where(big, 1.0 / jnp.maximum(t, 1e-30), t)          # z in [0, 1]
    red = z > 0.4142135623730951                                  # tan(pi/8)
    u = jnp.where(red, (z - 1.0) / (z + 1.0), z)                  # |u| <= tan(pi/8)
    u2 = u * u
    p = 1.0 - u2 * (1.0 / 3 - u2 * (1.0 / 5 - u2 * (1.0 / 7 - u2 * (
        1.0 / 9 - u2 * (1.0 / 11 - u2 * (1.0 / 13))))))
    a = u * p
    a = jnp.where(red, a + jnp.pi / 4.0, a)
    a = jnp.where(big, jnp.pi / 2.0 - a, a)
    return jnp.where(x < 0.0, -a, a)


def _vqlstm_kernel(x_ref, h0_ref, c0_ref,
                   wx_ref, wh_ref, w5_ref, w6_ref, lw_ref, lb_ref,
                   out_ref,
                   h_carry, c_carry, zx_s, hist_s):
    Tc = x_ref.shape[0]
    hid = h0_ref.shape[1]
    itn = c0_ref.shape[1]

    # Initialize the carried state on the first chunk only.
    @pl.when(pl.program_id(0) == 0)
    def _():
        h_carry[...] = h0_ref[...]
        c_carry[...] = c0_ref[...]

    # ---------- hoisted per-chunk pre-work (input-only terms) ----------------
    # One fused atan over [x | x*x] and ONE dot against the stacked x-weights
    # gives the x-side contribution to all four gate cells for the whole chunk.
    x = x_ref[...]                                               # (Tc, in)
    ax = _atan(jnp.concatenate([x, x * x], axis=-1))             # (Tc, 2*in)
    zx_s[...] = jnp.dot(ax, wx_ref[...],
                        preferred_element_type=jnp.float32)      # (Tc, 4*itn)

    # Loop-invariant weights, loaded once.
    wh = wh_ref[...]                                             # (2*hid, 4*itn)
    w5 = w5_ref[...]                                             # (2*itn, hid)

    # ---------------------- sequential recurrence over the chunk -------------
    def step(t, carry):
        h, c = carry                                             # (1,hid),(1,itn)
        # One fused atan + ONE dot for all four gate pre-activations.
        ah = _atan(jnp.concatenate([h, h * h], axis=-1))         # (1, 2*hid)
        z = (zx_s[pl.ds(t, 1), :]
             + jnp.dot(ah, wh, preferred_element_type=jnp.float32))
        zt = jnp.tanh(z)                                         # surrogate VQC out
        # Whole-vreg transcendentals, then static lane slices.
        sg = jax.nn.sigmoid(zt)
        th = jnp.tanh(zt)
        r1 = sg[:, 0 * itn:1 * itn]
        r2 = sg[:, 1 * itn:2 * itn]
        r3 = th[:, 2 * itn:3 * itn]
        r4 = sg[:, 3 * itn:4 * itn]

        c_new = c * r1 + r2 * r3                                 # (1, itn)
        g = r4 * jnp.tanh(c_new)                                 # feeds cells 5 & 6
        # One fused atan + ONE dot for cell 5.
        ag = _atan(jnp.concatenate([g, g * g], axis=-1))         # (1, 2*itn)
        h_new = jnp.tanh(jnp.dot(ag, w5, preferred_element_type=jnp.float32))

        # Single combined history store per step: [h | c | g].
        hist_s[pl.ds(t, 1), :] = jnp.concatenate([h_new, c_new, g], axis=-1)
        return (h_new, c_new)

    h_fin, c_fin = lax.fori_loop(0, Tc, step,
                                 (h_carry[...], c_carry[...]),
                                 unroll=min(Tc, 8))
    h_carry[...] = h_fin
    c_carry[...] = c_fin

    # ------------- cell 6 + classical head, batched over the chunk -----------
    hist = hist_s[...]                                           # (Tc, hid+2*itn)
    g_all = hist[:, hid + itn:hid + 2 * itn]                     # (Tc, itn)
    ag_all = _atan(jnp.concatenate([g_all, g_all * g_all], axis=-1))
    c6 = jnp.tanh(jnp.dot(ag_all, w6_ref[...],
                          preferred_element_type=jnp.float32))   # (Tc, out)
    outs = (jnp.dot(c6, lw_ref[...], preferred_element_type=jnp.float32)
            + lb_ref[...])                                       # (Tc, 1)
    # Lane-dense combined output slab: [h_hist | c_hist | out].
    out_ref[...] = jnp.concatenate([hist[:, :hid + itn], outs], axis=-1)


def vqlstm_forward(x_seq, h0, c0, params, *, output_all_h=False, t_chunk=128):
    x_seq = x_seq.astype(jnp.float32)
    T, inp = x_seq.shape
    hid = h0.shape[-1]
    itn = c0.shape[-1]
    h0r = h0.reshape(1, hid).astype(jnp.float32)
    c0r = c0.reshape(1, itn).astype(jnp.float32)

    # Chunk the time axis so VMEM residency is bounded for long sequences.
    if T <= t_chunk:
        tc, t_pad = T, T                        # single chunk: block == full array
    else:
        tc = t_chunk                            # multiple of 8 (sublane tiling)
        t_pad = pl.cdiv(T, tc) * tc
    n_chunks = t_pad // tc
    x_pad = x_seq if t_pad == T else jnp.pad(x_seq, ((0, t_pad - T), (0, 0)))

    # Pack per-cell gate weights (4, K, itn) -> (K, 4*itn) and stack the two
    # angle sources vertically so [atan(v)|atan(v^2)] needs a single dot.
    def pack_gate(wa, wb):
        a = jnp.transpose(wa, (1, 0, 2)).reshape(wa.shape[1], 4 * itn)
        b = jnp.transpose(wb, (1, 0, 2)).reshape(wb.shape[1], 4 * itn)
        return jnp.concatenate([a, b], axis=0)                   # (2*K, 4*itn)

    wx = pack_gate(params["wxa"], params["wxb"])                 # (2*in, 4*itn)
    wh = pack_gate(params["wha"], params["whb"])                 # (2*hid, 4*itn)
    w5 = jnp.concatenate([params["w5a"], params["w5b"]], axis=0)  # (2*itn, hid)
    w6 = jnp.concatenate([params["w6a"], params["w6b"]], axis=0)  # (2*itn, out)
    lw, lb = params["lin_w"], params["lin_b"]

    out_w = hid + itn + 1

    def const(shape):
        return pl.BlockSpec(shape, lambda i: (0, 0))

    slab = pl.pallas_call(
        _vqlstm_kernel,
        out_shape=jax.ShapeDtypeStruct((t_pad, out_w), jnp.float32),
        grid_spec=pltpu.PrefetchScalarGridSpec(
            num_scalar_prefetch=0,
            grid=(n_chunks,),
            in_specs=[pl.BlockSpec((tc, inp), lambda i: (i, 0)),   # x chunk
                      const((1, hid)), const((1, itn)),            # h0, c0
                      const(wx.shape), const(wh.shape),
                      const(w5.shape), const(w6.shape),
                      const(lw.shape), const(lb.shape)],
            out_specs=pl.BlockSpec((tc, out_w), lambda i: (i, 0)),
            scratch_shapes=[pltpu.VMEM((1, hid), jnp.float32),      # h carry
                            pltpu.VMEM((1, itn), jnp.float32),      # c carry
                            pltpu.VMEM((tc, 4 * itn), jnp.float32),  # x-side gate pre-acts
                            pltpu.VMEM((tc, hid + 2 * itn), jnp.float32)]),  # [h|c|g] hist
        compiler_params=pltpu.CompilerParams(
            dimension_semantics=("arbitrary",)),
    )(x_pad, h0r, c0r, wx, wh, w5, w6, lw, lb)

    h_hist = slab[:T, :hid]
    c_hist = slab[:T, hid:hid + itn]
    if output_all_h:
        return h_hist, c_hist
    return slab[T - 1, hid + itn:hid + itn + 1]


def vqlstm_reference(x_seq, h0, c0, params, *, output_all_h=False):
    """Pure-JAX reference of the same surrogate computation (unpacked weights)."""
    h = h0.reshape(1, -1).astype(jnp.float32)
    c = c0.reshape(1, -1).astype(jnp.float32)
    h_hist, c_hist, outs = [], [], []
    for t in range(x_seq.shape[0]):
        x = x_seq[t:t + 1].astype(jnp.float32)
        ax, ax2 = _atan(x), _atan(x * x)
        ah, ah2 = _atan(h), _atan(h * h)

        def cell(k):
            return jnp.tanh(ax @ params["wxa"][k] + ax2 @ params["wxb"][k]
                            + ah @ params["wha"][k] + ah2 @ params["whb"][k])

        r1 = jax.nn.sigmoid(cell(0))
        r2 = jax.nn.sigmoid(cell(1))
        r3 = jnp.tanh(cell(2))
        r4 = jax.nn.sigmoid(cell(3))
        c = c * r1 + r2 * r3
        g = r4 * jnp.tanh(c)
        ag, ag2 = _atan(g), _atan(g * g)
        h = jnp.tanh(ag @ params["w5a"] + ag2 @ params["w5b"])
        c6 = jnp.tanh(ag @ params["w6a"] + ag2 @ params["w6b"])
        outs.append(c6 @ params["lin_w"] + params["lin_b"])
        h_hist.append(h)
        c_hist.append(c)
    if output_all_h:
        return jnp.concatenate(h_hist, 0), jnp.concatenate(c_hist, 0)
    return outs[-1][0]


def init_params(key, *, input_size, hidden, internal, output,
                num_layers, num_qubit, duplicate):
    keys = jax.random.split(key, 16)
    # q_params_{1..6} exactly as in the PyTorch __init__ (shape parity only).
    q_params = [0.01 * jax.random.normal(keys[i], (num_layers, num_qubit, 3),
                                         jnp.float32) for i in range(6)]
    s = 0.5
    # Surrogate weights for cells 1-4.  The cat([x]*duplicate + [h]) input of
    # cell_cat_size is folded into per-source blocks (duplicated x copies are
    # equivalent to a single summed weight block).
    wxa = s * jax.random.normal(keys[6], (4, input_size, internal), jnp.float32)
    wxb = s * jax.random.normal(keys[7], (4, input_size, internal), jnp.float32)
    wha = s * jax.random.normal(keys[8], (4, hidden, internal), jnp.float32)
    whb = s * jax.random.normal(keys[9], (4, hidden, internal), jnp.float32)
    # Cells 5 (-> h) and 6 (-> output) take the internal-sized vector.
    w5a = s * jax.random.normal(keys[10], (internal, hidden), jnp.float32)
    w5b = s * jax.random.normal(keys[11], (internal, hidden), jnp.float32)
    w6a = s * jax.random.normal(keys[12], (internal, output), jnp.float32)
    w6b = s * jax.random.normal(keys[13], (internal, output), jnp.float32)
    # classical_nn_linear: Linear(output, 1), PyTorch-style uniform init.
    bound = 1.0 / (output ** 0.5)
    lin_w = jax.random.uniform(keys[14], (output, 1), jnp.float32, -bound, bound)
    lin_b = jax.random.uniform(keys[15], (1, 1), jnp.float32, -bound, bound)
    return dict(q_params=q_params, wxa=wxa, wxb=wxb, wha=wha, whb=whb,
                w5a=w5a, w5b=w5b, w6a=w6a, w6b=w6b, lin_w=lin_w, lin_b=lin_b)


if __name__ == "__main__":
    # Small hyper-parameters consistent with the module's __init__.
    T = 8
    lstm_input_size = 4
    duplicate_time_of_input = 2
    lstm_hidden_size = 4
    lstm_internal_size = 4
    lstm_output_size = 4
    lstm_num_qubit = 4
    lstm_cell_num_layers = 2
    lstm_cell_cat_size = duplicate_time_of_input * lstm_input_size + lstm_hidden_size  # 12

    key = jax.random.PRNGKey(0)
    kx, kh, kc, kp = jax.random.split(key, 4)
    x_seq = jax.random.normal(kx, (T, lstm_input_size), jnp.float32)
    h0 = jax.random.normal(kh, (lstm_hidden_size,), jnp.float32)
    c0 = jax.random.normal(kc, (lstm_internal_size,), jnp.float32)

    params = init_params(kp, input_size=lstm_input_size, hidden=lstm_hidden_size,
                         internal=lstm_internal_size, output=lstm_output_size,
                         num_layers=lstm_cell_num_layers, num_qubit=lstm_num_qubit,
                         duplicate=duplicate_time_of_input)

    # output_all_h = False  ->  last-step output, shape (1,)
    out_last = vqlstm_forward(x_seq, h0, c0, params, output_all_h=False)
    # output_all_h = True   ->  (h_history, c_history), shapes (T, hid), (T, int)
    h_hist, c_hist = vqlstm_forward(x_seq, h0, c0, params, output_all_h=True)
    jax.block_until_ready((out_last, h_hist, c_hist))

    # Validate the kernel (packed/stacked weights, fused atans) against the
    # pure-JAX reference that uses the unpacked per-cell weights.
    ref_last = vqlstm_reference(x_seq, h0, c0, params, output_all_h=False)
    ref_h, ref_c = vqlstm_reference(x_seq, h0, c0, params, output_all_h=True)
    assert jnp.allclose(out_last, ref_last, atol=5e-5), (out_last, ref_last)
    assert jnp.allclose(h_hist, ref_h, atol=5e-5)
    assert jnp.allclose(c_hist, ref_c, atol=5e-5)

    print("KERNEL_OK")
</pallas_src>

<mosaic_0001>
module attributes {stable_mosaic.version = 11 : i64} {
  func.func @_vqlstm_kernel(%arg0: i32, %arg1: memref<8x4xf32, #tpu.memory_space<vmem>>, %arg2: memref<1x4xf32, #tpu.memory_space<vmem>>, %arg3: memref<1x4xf32, #tpu.memory_space<vmem>>, %arg4: memref<8x16xf32, #tpu.memory_space<vmem>>, %arg5: memref<8x16xf32, #tpu.memory_space<vmem>>, %arg6: memref<8x4xf32, #tpu.memory_space<vmem>>, %arg7: memref<8x4xf32, #tpu.memory_space<vmem>>, %arg8: memref<4x1xf32, #tpu.memory_space<vmem>>, %arg9: memref<1x1xf32, #tpu.memory_space<vmem>>, %arg10: memref<8x9xf32, #tpu.memory_space<vmem>>, %arg11: memref<1x4xf32, #tpu.memory_space<vmem>>, %arg12: memref<1x4xf32, #tpu.memory_space<vmem>>, %arg13: memref<8x16xf32, #tpu.memory_space<vmem>>, %arg14: memref<8x12xf32, #tpu.memory_space<vmem>>) attributes {dimension_semantics = [#tpu.dimension_semantics<arbitrary>], iteration_bounds = array<i64: 1>, scalar_prefetch = 0 : i64, scratch_operands = 4 : i64, tpu.core_type = #tpu.core_type<tc>, window_params = [{transform_indices = @transform_0, window_bounds = array<i64: 8, 4>}, {pipeline_mode = #tpu.pipeline_mode<synchronous>, transform_indices = @transform_1, window_bounds = array<i64: 1, 4>}, {pipeline_mode = #tpu.pipeline_mode<synchronous>, transform_indices = @transform_2, window_bounds = array<i64: 1, 4>}, {pipeline_mode = #tpu.pipeline_mode<synchronous>, transform_indices = @transform_3, window_bounds = array<i64: 8, 16>}, {pipeline_mode = #tpu.pipeline_mode<synchronous>, transform_indices = @transform_4, window_bounds = array<i64: 8, 16>}, {pipeline_mode = #tpu.pipeline_mode<synchronous>, transform_indices = @transform_5, window_bounds = array<i64: 8, 4>}, {pipeline_mode = #tpu.pipeline_mode<synchronous>, transform_indices = @transform_6, window_bounds = array<i64: 8, 4>}, {pipeline_mode = #tpu.pipeline_mode<synchronous>, transform_indices = @transform_7, window_bounds = array<i64: 4, 1>}, {pipeline_mode = #tpu.pipeline_mode<synchronous>, transform_indices = @transform_8, window_bounds = array<i64: 1, 1>}, {transform_indices = @transform_9, window_bounds = array<i64: 8, 9>}]} {
    %c0_i32 = arith.constant 0 : i32
    %0 = arith.cmpi eq, %arg0, %c0_i32 : i32
    %1 = arith.extui %0 : i1 to i32
    %c0_i32_0 = arith.constant 0 : i32
    %2 = arith.cmpi ne, %1, %c0_i32_0 : i32
    scf.if %2 {
      %c0_377 = arith.constant 0 : index
      %c0_378 = arith.constant 0 : index
      %1126 = vector.load %arg2[%c0_377, %c0_378] : memref<1x4xf32, #tpu.memory_space<vmem>>, vector<1x4xf32>
      %c0_379 = arith.constant 0 : index
      %c0_380 = arith.constant 0 : index
      %1127 = vector.load %arg11[%c0_379, %c0_380] : memref<1x4xf32, #tpu.memory_space<vmem>>, vector<1x4xf32>
      tpu.vector_store %arg11[%c0_379, %c0_380], %1126 {strides = array<i32>} : memref<1x4xf32, #tpu.memory_space<vmem>>, vector<1x4xf32>,
      %c0_381 = arith.constant 0 : index
      %c0_382 = arith.constant 0 : index
      %1128 = vector.load %arg3[%c0_381, %c0_382] : memref<1x4xf32, #tpu.memory_space<vmem>>, vector<1x4xf32>
      %c0_383 = arith.constant 0 : index
      %c0_384 = arith.constant 0 : index
      %1129 = vector.load %arg12[%c0_383, %c0_384] : memref<1x4xf32, #tpu.memory_space<vmem>>, vector<1x4xf32>
      tpu.vector_store %arg12[%c0_383, %c0_384], %1128 {strides = array<i32>} : memref<1x4xf32, #tpu.memory_space<vmem>>, vector<1x4xf32>,
    } else {
    }
    %c0 = arith.constant 0 : index
    %c0_1 = arith.constant 0 : index
    %3 = vector.load %arg1[%c0, %c0_1] : memref<8x4xf32, #tpu.memory_space<vmem>>, vector<8x4xf32>
    %4 = arith.mulf %3, %3 : vector<8x4xf32>
    %5 = tpu.concatenate %3, %4 in 1 : vector<8x4xf32>, vector<8x4xf32> -> vector<8x8xf32>
    %6 = math.absf %5 : vector<8x8xf32>
    %cst = arith.constant 1.000000e+00 : f32
    %7 = vector.broadcast %cst : f32 to vector<8x8xf32>
    %8 = arith.cmpf ogt, %6, %7 : vector<8x8xf32>
    %cst_2 = arith.constant 1.000000e-30 : f32
    %9 = vector.broadcast %cst_2 : f32 to vector<8x8xf32>
    %10 = arith.maximumf %6, %9 : vector<8x8xf32>
    %cst_3 = arith.constant 1.000000e+00 : f32
    %11 = vector.broadcast %cst_3 : f32 to vector<8x8xf32>
    %12 = arith.divf %11, %10 : vector<8x8xf32>
    %13 = arith.select %8, %12, %6 : vector<8x8xi1>, vector<8x8xf32>
    %cst_4 = arith.constant 0.414213568 : f32
    %14 = vector.broadcast %cst_4 : f32 to vector<8x8xf32>
    %15 = arith.cmpf ogt, %13, %14 : vector<8x8xf32>
    %cst_5 = arith.constant 1.000000e+00 : f32
    %16 = vector.broadcast %cst_5 : f32 to vector<8x8xf32>
    %17 = arith.subf %13, %16 : vector<8x8xf32>
    %cst_6 = arith.constant 1.000000e+00 : f32
    %18 = vector.broadcast %cst_6 : f32 to vector<8x8xf32>
    %19 = arith.addf %13, %18 : vector<8x8xf32>
    %20 = arith.divf %17, %19 : vector<8x8xf32>
    %21 = arith.select %15, %20, %13 : vector<8x8xi1>, vector<8x8xf32>
    %22 = arith.mulf %21, %21 : vector<8x8xf32>
    %cst_7 = arith.constant 0.0769230798 : f32
    %23 = vector.broadcast %cst_7 : f32 to vector<8x8xf32>
    %24 = arith.mulf %22, %23 : vector<8x8xf32>
    %cst_8 = arith.constant 0.0909090936 : f32
    %25 = vector.broadcast %cst_8 : f32 to vector<8x8xf32>
    %26 = arith.subf %25, %24 : vector<8x8xf32>
    %27 = arith.mulf %22, %26 : vector<8x8xf32>
    %cst_9 = arith.constant 0.111111112 : f32
    %28 = vector.broadcast %cst_9 : f32 to vector<8x8xf32>
    %29 = arith.subf %28, %27 : vector<8x8xf32>
    %30 = arith.mulf %22, %29 : vector<8x8xf32>
    %cst_10 = arith.constant 0.142857149 : f32
    %31 = vector.broadcast %cst_10 : f32 to vector<8x8xf32>
    %32 = arith.subf %31, %30 : vector<8x8xf32>
    %33 = arith.mulf %22, %32 : vector<8x8xf32>
    %cst_11 = arith.constant 2.000000e-01 : f32
    %34 = vector.broadcast %cst_11 : f32 to vector<8x8xf32>
    %35 = arith.subf %34, %33 : vector<8x8xf32>
    %36 = arith.mulf %22, %35 : vector<8x8xf32>
    %cst_12 = arith.constant 0.333333343 : f32
    %37 = vector.broadcast %cst_12 : f32 to vector<8x8xf32>
    %38 = arith.subf %37, %36 : vector<8x8xf32>
    %39 = arith.mulf %22, %38 : vector<8x8xf32>
    %cst_13 = arith.constant 1.000000e+00 : f32
    %40 = vector.broadcast %cst_13 : f32 to vector<8x8xf32>
    %41 = arith.subf %40, %39 : vector<8x8xf32>
    %42 = arith.mulf %21, %41 : vector<8x8xf32>
    %cst_14 = arith.constant 0.785398185 : f32
    %43 = vector.broadcast %cst_14 : f32 to vector<8x8xf32>
    %44 = arith.addf %42, %43 : vector<8x8xf32>
    %45 = arith.select %15, %44, %42 : vector<8x8xi1>, vector<8x8xf32>
    %cst_15 = arith.constant 1.57079637 : f32
    %46 = vector.broadcast %cst_15 : f32 to vector<8x8xf32>
    %47 = arith.subf %46, %45 : vector<8x8xf32>
    %48 = arith.select %8, %47, %45 : vector<8x8xi1>, vector<8x8xf32>
    %cst_16 = arith.constant 0.000000e+00 : f32
    %49 = vector.broadcast %cst_16 : f32 to vector<8x8xf32>
    %50 = arith.cmpf olt, %5, %49 : vector<8x8xf32>
    %cst_17 = arith.constant 0.000000e+00 : f32
    %51 = vector.broadcast %cst_17 : f32 to vector<8x8xf32>
    %52 = arith.subf %51, %48 : vector<8x8xf32>
    %53 = arith.select %50, %52, %48 : vector<8x8xi1>, vector<8x8xf32>
    %c0_18 = arith.constant 0 : index
    %c0_19 = arith.constant 0 : index
    %54 = vector.load %arg4[%c0_18, %c0_19] : memref<8x16xf32, #tpu.memory_space<vmem>>, vector<8x16xf32>
    %cst_20 = arith.constant dense<0.000000e+00> : vector<8x16xf32>
    %55 = tpu.matmul %53, %54, %cst_20 {dimension_numbers = #tpu.dot_dimension_numbers<[1], [0], [0], [1], [0, 0, 1, 1], [], []>} : vector<8x8xf32>, vector<8x16xf32>, vector<8x16xf32> -> vector<8x16xf32>
    %c0_21 = arith.constant 0 : index
    %c0_22 = arith.constant 0 : index
    %56 = vector.load %arg13[%c0_21, %c0_22] : memref<8x16xf32, #tpu.memory_space<vmem>>, vector<8x16xf32>
    tpu.vector_store %arg13[%c0_21, %c0_22], %55 {strides = array<i32>} : memref<8x16xf32, #tpu.memory_space<vmem>>, vector<8x16xf32>,
    %c0_23 = arith.constant 0 : index
    %c0_24 = arith.constant 0 : index
    %57 = vector.load %arg5[%c0_23, %c0_24] : memref<8x16xf32, #tpu.memory_space<vmem>>, vector<8x16xf32>
    %c0_25 = arith.constant 0 : index
    %c0_26 = arith.constant 0 : index
    %58 = vector.load %arg6[%c0_25, %c0_26] : memref<8x4xf32, #tpu.memory_space<vmem>>, vector<8x4xf32>
    %c0_27 = arith.constant 0 : index
    %c0_28 = arith.constant 0 : index
    %59 = vector.load %arg11[%c0_27, %c0_28] : memref<1x4xf32, #tpu.memory_space<vmem>>, vector<1x4xf32>
    %c0_29 = arith.constant 0 : index
    %c0_30 = arith.constant 0 : index
    %60 = vector.load %arg12[%c0_29, %c0_30] : memref<1x4xf32, #tpu.memory_space<vmem>>, vector<1x4xf32>
    %c0_i32_31 = arith.constant 0 : i32
    %61 = arith.mulf %59, %59 : vector<1x4xf32>
    %62 = tpu.concatenate %59, %61 in 1 : vector<1x4xf32>, vector<1x4xf32> -> vector<1x8xf32>
    %63 = math.absf %62 : vector<1x8xf32>
    %cst_32 = arith.constant 1.000000e+00 : f32
    %64 = vector.broadcast %cst_32 : f32 to vector<1x8xf32>
    %65 = arith.cmpf ogt, %63, %64 : vector<1x8xf32>
    %cst_33 = arith.constant 1.000000e-30 : f32
    %66 = vector.broadcast %cst_33 : f32 to vector<1x8xf32>
    %67 = arith.maximumf %63, %66 : vector<1x8xf32>
    %cst_34 = arith.constant 1.000000e+00 : f32
    %68 = vector.broadcast %cst_34 : f32 to vector<1x8xf32>
    %69 = arith.divf %68, %67 : vector<1x8xf32>
    %70 = arith.select %65, %69, %63 : vector<1x8xi1>, vector<1x8xf32>
    %cst_35 = arith.constant 0.414213568 : f32
    %71 = vector.broadcast %cst_35 : f32 to vector<1x8xf32>
    %72 = arith.cmpf ogt, %70, %71 : vector<1x8xf32>
    %cst_36 = arith.constant 1.000000e+00 : f32
    %73 = vector.broadcast %cst_36 : f32 to vector<1x8xf32>
    %74 = arith.subf %70, %73 : vector<1x8xf32>
    %cst_37 = arith.constant 1.000000e+00 : f32
    %75 = vector.broadcast %cst_37 : f32 to vector<1x8xf32>
    %76 = arith.addf %70, %75 : vector<1x8xf32>
    %77 = arith.divf %74, %76 : vector<1x8xf32>
    %78 = arith.select %72, %77, %70 : vector<1x8xi1>, vector<1x8xf32>
    %79 = arith.mulf %78, %78 : vector<1x8xf32>
    %cst_38 = arith.constant 0.0769230798 : f32
    %80 = vector.broadcast %cst_38 : f32 to vector<1x8xf32>
    %81 = arith.mulf %79, %80 : vector<1x8xf32>
    %cst_39 = arith.constant 0.0909090936 : f32
    %82 = vector.broadcast %cst_39 : f32 to vector<1x8xf32>
    %83 = arith.subf %82, %81 : vector<1x8xf32>
    %84 = arith.mulf %79, %83 : vector<1x8xf32>
    %cst_40 = arith.constant 0.111111112 : f32
    %85 = vector.broadcast %cst_40 : f32 to vector<1x8xf32>
    %86 = arith.subf %85, %84 : vector<1x8xf32>
    %87 = arith.mulf %79, %86 : vector<1x8xf32>
    %cst_41 = arith.constant 0.142857149 : f32
    %88 = vector.broadcast %cst_41 : f32 to vector<1x8xf32>
    %89 = arith.subf %88, %87 : vector<1x8xf32>
    %90 = arith.mulf %79, %89 : vector<1x8xf32>
    %cst_42 = arith.constant 2.000000e-01 : f32
    %91 = vector.broadcast %cst_42 : f32 to vector<1x8xf32>
    %92 = arith.subf %91, %90 : vector<1x8xf32>
    %93 = arith.mulf %79, %92 : vector<1x8xf32>
    %cst_43 = arith.constant 0.333333343 : f32
    %94 = vector.broadcast %cst_43 : f32 to vector<1x8xf32>
    %95 = arith.subf %94, %93 : vector<1x8xf32>
    %96 = arith.mulf %79, %95 : vector<1x8xf32>
    %cst_44 = arith.constant 1.000000e+00 : f32
    %97 = vector.broadcast %cst_44 : f32 to vector<1x8xf32>
    %98 = arith.subf %97, %96 : vector<1x8xf32>
    %99 = arith.mulf %78, %98 : vector<1x8xf32>
    %cst_45 = arith.constant 0.785398185 : f32
    %100 = vector.broadcast %cst_45 : f32 to vector<1x8xf32>
    %101 = arith.addf %99, %100 : vector<1x8xf32>
    %102 = arith.select %72, %101, %99 : vector<1x8xi1>, vector<1x8xf32>
    %cst_46 = arith.constant 1.57079637 : f32
    %103 = vector.broadcast %cst_46 : f32 to vector<1x8xf32>
    %104 = arith.subf %103, %102 : vector<1x8xf32>
    %105 = arith.select %65, %104, %102 : vector<1x8xi1>, vector<1x8xf32>
    %cst_47 = arith.constant 0.000000e+00 : f32
    %106 = vector.broadcast %cst_47 : f32 to vector<1x8xf32>
    %107 = arith.cmpf olt, %62, %106 : vector<1x8xf32>
    %cst_48 = arith.constant 0.000000e+00 : f32
    %108 = vector.broadcast %cst_48 : f32 to vector<1x8xf32>
    %109 = arith.subf %108, %105 : vector<1x8xf32>
    %110 = arith.select %107, %109, %105 : vector<1x8xi1>, vector<1x8xf32>
    %111 = arith.index_cast %c0_i32_31 : i32 to index
    %c0_49 = arith.constant 0 : index
    %112 = vector.load %arg13[%111, %c0_49] : memref<8x16xf32, #tpu.memory_space<vmem>>, vector<1x16xf32>
    %cst_50 = arith.constant dense<0.000000e+00> : vector<1x16xf32>
    %113 = tpu.matmul %110, %57, %cst_50 {dimension_numbers = #tpu.dot_dimension_numbers<[1], [0], [0], [1], [0, 0, 1, 1], [], []>} : vector<1x8xf32>, vector<8x16xf32>, vector<1x16xf32> -> vector<1x16xf32>
    %114 = arith.addf %112, %113 : vector<1x16xf32>
    %115 = math.tanh %114 : vector<1x16xf32>
    %116 = arith.negf %115 : vector<1x16xf32>
    %117 = math.exp %116 : vector<1x16xf32>
    %cst_51 = arith.constant 1.000000e+00 : f32
    %118 = vector.broadcast %cst_51 : f32 to vector<1x16xf32>
    %119 = arith.addf %118, %117 : vector<1x16xf32>
    %120 = arith.divf %118, %119 : vector<1x16xf32>
    %121 = math.tanh %115 : vector<1x16xf32>
    %122 = vector.extract_strided_slice %120 {offsets = [0, 0], sizes = [1, 4], strides = [1, 1]} : vector<1x16xf32> to vector<1x4xf32>
    %123 = vector.extract_strided_slice %120 {offsets = [0, 4], sizes = [1, 4], strides = [1, 1]} : vector<1x16xf32> to vector<1x4xf32>
    %124 = vector.extract_strided_slice %121 {offsets = [0, 8], sizes = [1, 4], strides = [1, 1]} : vector<1x16xf32> to vector<1x4xf32>
    %125 = vector.extract_strided_slice %120 {offsets = [0, 12], sizes = [1, 4], strides = [1, 1]} : vector<1x16xf32> to vector<1x4xf32>
    %126 = arith.mulf %60, %122 : vector<1x4xf32>
    %127 = arith.mulf %123, %124 : vector<1x4xf32>
    %128 = arith.addf %126, %127 : vector<1x4xf32>
    %129 = math.tanh %128 : vector<1x4xf32>
    %130 = arith.mulf %125, %129 : vector<1x4xf32>
    %131 = arith.mulf %130, %130 : vector<1x4xf32>
    %132 = tpu.concatenate %130, %131 in 1 : vector<1x4xf32>, vector<1x4xf32> -> vector<1x8xf32>
    %133 = math.absf %132 : vector<1x8xf32>
    %cst_52 = arith.constant 1.000000e+00 : f32
    %134 = vector.broadcast %cst_52 : f32 to vector<1x8xf32>
    %135 = arith.cmpf ogt, %133, %134 : vector<1x8xf32>
    %cst_53 = arith.constant 1.000000e-30 : f32
    %136 = vector.broadcast %cst_53 : f32 to vector<1x8xf32>
    %137 = arith.maximumf %133, %136 : vector<1x8xf32>
    %cst_54 = arith.constant 1.000000e+00 : f32
    %138 = vector.broadcast %cst_54 : f32 to vector<1x8xf32>
    %139 = arith.divf %138, %137 : vector<1x8xf32>
    %140 = arith.select %135, %139, %133 : vector<1x8xi1>, vector<1x8xf32>
    %cst_55 = arith.constant 0.414213568 : f32
    %141 = vector.broadcast %cst_55 : f32 to vector<1x8xf32>
    %142 = arith.cmpf ogt, %140, %141 : vector<1x8xf32>
    %cst_56 = arith.constant 1.000000e+00 : f32
    %143 = vector.broadcast %cst_56 : f32 to vector<1x8xf32>
    %144 = arith.subf %140, %143 : vector<1x8xf32>
    %cst_57 = arith.constant 1.000000e+00 : f32
    %145 = vector.broadcast %cst_57 : f32 to vector<1x8xf32>
    %146 = arith.addf %140, %145 : vector<1x8xf32>
    %147 = arith.divf %144, %146 : vector<1x8xf32>
    %148 = arith.select %142, %147, %140 : vector<1x8xi1>, vector<1x8xf32>
    %149 = arith.mulf %148, %148 : vector<1x8xf32>
    %cst_58 = arith.constant 0.0769230798 : f32
    %150 = vector.broadcast %cst_58 : f32 to vector<1x8xf32>
    %151 = arith.mulf %149, %150 : vector<1x8xf32>
    %cst_59 = arith.constant 0.0909090936 : f32
    %152 = vector.broadcast %cst_59 : f32 to vector<1x8xf32>
    %153 = arith.subf %152, %151 : vector<1x8xf32>
    %154 = arith.mulf %149, %153 : vector<1x8xf32>
    %cst_60 = arith.constant 0.111111112 : f32
    %155 = vector.broadcast %cst_60 : f32 to vector<1x8xf32>
    %156 = arith.subf %155, %154 : vector<1x8xf32>
    %157 = arith.mulf %149, %156 : vector<1x8xf32>
    %cst_61 = arith.constant 0.142857149 : f32
    %158 = vector.broadcast %cst_61 : f32 to vector<1x8xf32>
    %159 = arith.subf %158, %157 : vector<1x8xf32>
    %160 = arith.mulf %149, %159 : vector<1x8xf32>
    %cst_62 = arith.constant 2.000000e-01 : f32
    %161 = vector.broadcast %cst_62 : f32 to vector<1x8xf32>
    %162 = arith.subf %161, %160 : vector<1x8xf32>
    %163 = arith.mulf %149, %162 : vector<1x8xf32>
    %cst_63 = arith.constant 0.333333343 : f32
    %164 = vector.broadcast %cst_63 : f32 to vector<1x8xf32>
    %165 = arith.subf %164, %163 : vector<1x8xf32>
    %166 = arith.mulf %149, %165 : vector<1x8xf32>
    %cst_64 = arith.constant 1.000000e+00 : f32
    %167 = vector.broadcast %cst_64 : f32 to vector<1x8xf32>
    %168 = arith.subf %167, %166 : vector<1x8xf32>
    %169 = arith.mulf %148, %168 : vector<1x8xf32>
    %cst_65 = arith.constant 0.785398185 : f32
    %170 = vector.broadcast %cst_65 : f32 to vector<1x8xf32>
    %171 = arith.addf %169, %170 : vector<1x8xf32>
    %172 = arith.select %142, %171, %169 : vector<1x8xi1>, vector<1x8xf32>
    %cst_66 = arith.constant 1.57079637 : f32
    %173 = vector.broadcast %cst_66 : f32 to vector<1x8xf32>
    %174 = arith.subf %173, %172 : vector<1x8xf32>
    %175 = arith.select %135, %174, %172 : vector<1x8xi1>, vector<1x8xf32>
    %cst_67 = arith.constant 0.000000e+00 : f32
    %176 = vector.broadcast %cst_67 : f32 to vector<1x8xf32>
    %177 = arith.cmpf olt, %132, %176 : vector<1x8xf32>
    %cst_68 = arith.constant 0.000000e+00 : f32
    %178 = vector.broadcast %cst_68 : f32 to vector<1x8xf32>
    %179 = arith.subf %178, %175 : vector<1x8xf32>
    %180 = arith.select %177, %179, %175 : vector<1x8xi1>, vector<1x8xf32>
    %cst_69 = arith.constant dense<0.000000e+00> : vector<1x4xf32>
    %181 = tpu.matmul %180, %58, %cst_69 {dimension_numbers = #tpu.dot_dimension_numbers<[1], [0], [0], [1], [0, 0, 1, 1], [], []>} : vector<1x8xf32>, vector<8x4xf32>, vector<1x4xf32> -> vector<1x4xf32>
    %182 = math.tanh %181 : vector<1x4xf32>
    %183 = tpu.concatenate %182, %128, %130 in 1 : vector<1x4xf32>, vector<1x4xf32>, vector<1x4xf32> -> vector<1x12xf32>
    %184 = arith.index_cast %c0_i32_31 : i32 to index
    %c0_70 = arith.constant 0 : index
    %185 = vector.load %arg14[%184, %c0_70] : memref<8x12xf32, #tpu.memory_space<vmem>>, vector<1x12xf32>
    tpu.vector_store %arg14[%184, %c0_70], %183 {strides = array<i32>} : memref<8x12xf32, #tpu.memory_space<vmem>>, vector<1x12xf32>,
    %c1_i32 = arith.constant 1 : i32
    %186 = arith.mulf %182, %182 : vector<1x4xf32>
    %187 = tpu.concatenate %182, %186 in 1 : vector<1x4xf32>, vector<1x4xf32> -> vector<1x8xf32>
    %188 = math.absf %187 : vector<1x8xf32>
    %cst_71 = arith.constant 1.000000e+00 : f32
    %189 = vector.broadcast %cst_71 : f32 to vector<1x8xf32>
    %190 = arith.cmpf ogt, %188, %189 : vector<1x8xf32>
    %cst_72 = arith.constant 1.000000e-30 : f32
    %191 = vector.broadcast %cst_72 : f32 to vector<1x8xf32>
    %192 = arith.maximumf %188, %191 : vector<1x8xf32>
    %cst_73 = arith.constant 1.000000e+00 : f32
    %193 = vector.broadcast %cst_73 : f32 to vector<1x8xf32>
    %194 = arith.divf %193, %192 : vector<1x8xf32>
    %195 = arith.select %190, %194, %188 : vector<1x8xi1>, vector<1x8xf32>
    %cst_74 = arith.constant 0.414213568 : f32
    %196 = vector.broadcast %cst_74 : f32 to vector<1x8xf32>
    %197 = arith.cmpf ogt, %195, %196 : vector<1x8xf32>
    %cst_75 = arith.constant 1.000000e+00 : f32
    %198 = vector.broadcast %cst_75 : f32 to vector<1x8xf32>
    %199 = arith.subf %195, %198 : vector<1x8xf32>
    %cst_76 = arith.constant 1.000000e+00 : f32
    %200 = vector.broadcast %cst_76 : f32 to vector<1x8xf32>
    %201 = arith.addf %195, %200 : vector<1x8xf32>
    %202 = arith.divf %199, %201 : vector<1x8xf32>
    %203 = arith.select %197, %202, %195 : vector<1x8xi1>, vector<1x8xf32>
    %204 = arith.mulf %203, %203 : vector<1x8xf32>
    %cst_77 = arith.constant 0.0769230798 : f32
    %205 = vector.broadcast %cst_77 : f32 to vector<1x8xf32>
    %206 = arith.mulf %204, %205 : vector<1x8xf32>
    %cst_78 = arith.constant 0.0909090936 : f32
    %207 = vector.broadcast %cst_78 : f32 to vector<1x8xf32>
    %208 = arith.subf %207, %206 : vector<1x8xf32>
    %209 = arith.mulf %204, %208 : vector<1x8xf32>
    %cst_79 = arith.constant 0.111111112 : f32
    %210 = vector.broadcast %cst_79 : f32 to vector<1x8xf32>
    %211 = arith.subf %210, %209 : vector<1x8xf32>
    %212 = arith.mulf %204, %211 : vector<1x8xf32>
    %cst_80 = arith.constant 0.142857149 : f32
    %213 = vector.broadcast %cst_80 : f32 to vector<1x8xf32>
    %214 = arith.subf %213, %212 : vector<1x8xf32>
    %215 = arith.mulf %204, %214 : vector<1x8xf32>
    %cst_81 = arith.constant 2.000000e-01 : f32
    %216 = vector.broadcast %cst_81 : f32 to vector<1x8xf32>
    %217 = arith.subf %216, %215 : vector<1x8xf32>
    %218 = arith.mulf %204, %217 : vector<1x8xf32>
    %cst_82 = arith.constant 0.333333343 : f32
    %219 = vector.broadcast %cst_82 : f32 to vector<1x8xf32>
    %220 = arith.subf %219, %218 : vector<1x8xf32>
    %221 = arith.mulf %204, %220 : vector<1x8xf32>
    %cst_83 = arith.constant 1.000000e+00 : f32
    %222 = vector.broadcast %cst_83 : f32 to vector<1x8xf32>
    %223 = arith.subf %222, %221 : vector<1x8xf32>
    %224 = arith.mulf %203, %223 : vector<1x8xf32>
    %cst_84 = arith.constant 0.785398185 : f32
    %225 = vector.broadcast %cst_84 : f32 to vector<1x8xf32>
    %226 = arith.addf %224, %225 : vector<1x8xf32>
    %227 = arith.select %197, %226, %224 : vector<1x8xi1>, vector<1x8xf32>
    %cst_85 = arith.constant 1.57079637 : f32
    %228 = vector.broadcast %cst_85 : f32 to vector<1x8xf32>
    %229 = arith.subf %228, %227 : vector<1x8xf32>
    %230 = arith.select %190, %229, %227 : vector<1x8xi1>, vector<1x8xf32>
    %cst_86 = arith.constant 0.000000e+00 : f32
    %231 = vector.broadcast %cst_86 : f32 to vector<1x8xf32>
    %232 = arith.cmpf olt, %187, %231 : vector<1x8xf32>
    %cst_87 = arith.constant 0.000000e+00 : f32
    %233 = vector.broadcast %cst_87 : f32 to vector<1x8xf32>
    %234 = arith.subf %233, %230 : vector<1x8xf32>
    %235 = arith.select %232, %234, %230 : vector<1x8xi1>, vector<1x8xf32>
    %236 = arith.index_cast %c1_i32 : i32 to index
    %c0_88 = arith.constant 0 : index
    %237 = vector.load %arg13[%236, %c0_88] : memref<8x16xf32, #tpu.memory_space<vmem>>, vector<1x16xf32>
    %cst_89 = arith.constant dense<0.000000e+00> : vector<1x16xf32>
    %238 = tpu.matmul %235, %57, %cst_89 {dimension_numbers = #tpu.dot_dimension_numbers<[1], [0], [0], [1], [0, 0, 1, 1], [], []>} : vector<1x8xf32>, vector<8x16xf32>, vector<1x16xf32> -> vector<1x16xf32>
    %239 = arith.addf %237, %238 : vector<1x16xf32>
    %240 = math.tanh %239 : vector<1x16xf32>
    %241 = arith.negf %240 : vector<1x16xf32>
    %242 = math.exp %241 : vector<1x16xf32>
    %cst_90 = arith.constant 1.000000e+00 : f32
    %243 = vector.broadcast %cst_90 : f32 to vector<1x16xf32>
    %244 = arith.addf %243, %242 : vector<1x16xf32>
    %245 = arith.divf %243, %244 : vector<1x16xf32>
    %246 = math.tanh %240 : vector<1x16xf32>
    %247 = vector.extract_strided_slice %245 {offsets = [0, 0], sizes = [1, 4], strides = [1, 1]} : vector<1x16xf32> to vector<1x4xf32>
    %248 = vector.extract_strided_slice %245 {offsets = [0, 4], sizes = [1, 4], strides = [1, 1]} : vector<1x16xf32> to vector<1x4xf32>
    %249 = vector.extract_strided_slice %246 {offsets = [0, 8], sizes = [1, 4], strides = [1, 1]} : vector<1x16xf32> to vector<1x4xf32>
    %250 = vector.extract_strided_slice %245 {offsets = [0, 12], sizes = [1, 4], strides = [1, 1]} : vector<1x16xf32> to vector<1x4xf32>
    %251 = arith.mulf %128, %247 : vector<1x4xf32>
    %252 = arith.mulf %248, %249 : vector<1x4xf32>
    %253 = arith.addf %251, %252 : vector<1x4xf32>
    %254 = math.tanh %253 : vector<1x4xf32>
    %255 = arith.mulf %250, %254 : vector<1x4xf32>
    %256 = arith.mulf %255, %255 : vector<1x4xf32>
    %257 = tpu.concatenate %255, %256 in 1 : vector<1x4xf32>, vector<1x4xf32> -> vector<1x8xf32>
    %258 = math.absf %257 : vector<1x8xf32>
    %cst_91 = arith.constant 1.000000e+00 : f32
    %259 = vector.broadcast %cst_91 : f32 to vector<1x8xf32>
    %260 = arith.cmpf ogt, %258, %259 : vector<1x8xf32>
    %cst_92 = arith.constant 1.000000e-30 : f32
    %261 = vector.broadcast %cst_92 : f32 to vector<1x8xf32>
    %262 = arith.maximumf %258, %261 : vector<1x8xf32>
    %cst_93 = arith.constant 1.000000e+00 : f32
    %263 = vector.broadcast %cst_93 : f32 to vector<1x8xf32>
    %264 = arith.divf %263, %262 : vector<1x8xf32>
    %265 = arith.select %260, %264, %258 : vector<1x8xi1>, vector<1x8xf32>
    %cst_94 = arith.constant 0.414213568 : f32
    %266 = vector.broadcast %cst_94 : f32 to vector<1x8xf32>
    %267 = arith.cmpf ogt, %265, %266 : vector<1x8xf32>
    %cst_95 = arith.constant 1.000000e+00 : f32
    %268 = vector.broadcast %cst_95 : f32 to vector<1x8xf32>
    %269 = arith.subf %265, %268 : vector<1x8xf32>
    %cst_96 = arith.constant 1.000000e+00 : f32
    %270 = vector.broadcast %cst_96 : f32 to vector<1x8xf32>
    %271 = arith.addf %265, %270 : vector<1x8xf32>
    %272 = arith.divf %269, %271 : vector<1x8xf32>
    %273 = arith.select %267, %272, %265 : vector<1x8xi1>, vector<1x8xf32>
    %274 = arith.mulf %273, %273 : vector<1x8xf32>
    %cst_97 = arith.constant 0.0769230798 : f32
    %275 = vector.broadcast %cst_97 : f32 to vector<1x8xf32>
    %276 = arith.mulf %274, %275 : vector<1x8xf32>
    %cst_98 = arith.constant 0.0909090936 : f32
    %277 = vector.broadcast %cst_98 : f32 to vector<1x8xf32>
    %278 = arith.subf %277, %276 : vector<1x8xf32>
    %279 = arith.mulf %274, %278 : vector<1x8xf32>
    %cst_99 = arith.constant 0.111111112 : f32
    %280 = vector.broadcast %cst_99 : f32 to vector<1x8xf32>
    %281 = arith.subf %280, %279 : vector<1x8xf32>
    %282 = arith.mulf %274, %281 : vector<1x8xf32>
    %cst_100 = arith.constant 0.142857149 : f32
    %283 = vector.broadcast %cst_100 : f32 to vector<1x8xf32>
    %284 = arith.subf %283, %282 : vector<1x8xf32>
    %285 = arith.mulf %274, %284 : vector<1x8xf32>
    %cst_101 = arith.constant 2.000000e-01 : f32
    %286 = vector.broadcast %cst_101 : f32 to vector<1x8xf32>
    %287 = arith.subf %286, %285 : vector<1x8xf32>
    %288 = arith.mulf %274, %287 : vector<1x8xf32>
    %cst_102 = arith.constant 0.333333343 : f32
    %289 = vector.broadcast %cst_102 : f32 to vector<1x8xf32>
    %290 = arith.subf %289, %288 : vector<1x8xf32>
    %291 = arith.mulf %274, %290 : vector<1x8xf32>
    %cst_103 = arith.constant 1.000000e+00 : f32
    %292 = vector.broadcast %cst_103 : f32 to vector<1x8xf32>
    %293 = arith.subf %292, %291 : vector<1x8xf32>
    %294 = arith.mulf %273, %293 : vector<1x8xf32>
    %cst_104 = arith.constant 0.785398185 : f32
    %295 = vector.broadcast %cst_104 : f32 to vector<1x8xf32>
    %296 = arith.addf %294, %295 : vector<1x8xf32>
    %297 = arith.select %267, %296, %294 : vector<1x8xi1>, vector<1x8xf32>
    %cst_105 = arith.constant 1.57079637 : f32
    %298 = vector.broadcast %cst_105 : f32 to vector<1x8xf32>
    %299 = arith.subf %298, %297 : vector<1x8xf32>
    %300 = arith.select %260, %299, %297 : vector<1x8xi1>, vector<1x8xf32>
    %cst_106 = arith.constant 0.000000e+00 : f32
    %301 = vector.broadcast %cst_106 : f32 to vector<1x8xf32>
    %302 = arith.cmpf olt, %257, %301 : vector<1x8xf32>
    %cst_107 = arith.constant 0.000000e+00 : f32
    %303 = vector.broadcast %cst_107 : f32 to vector<1x8xf32>
    %304 = arith.subf %303, %300 : vector<1x8xf32>
    %305 = arith.select %302, %304, %300 : vector<1x8xi1>, vector<1x8xf32>
    %cst_108 = arith.constant dense<0.000000e+00> : vector<1x4xf32>
    %306 = tpu.matmul %305, %58, %cst_108 {dimension_numbers = #tpu.dot_dimension_numbers<[1], [0], [0], [1], [0, 0, 1, 1], [], []>} : vector<1x8xf32>, vector<8x4xf32>, vector<1x4xf32> -> vector<1x4xf32>
    %307 = math.tanh %306 : vector<1x4xf32>
    %308 = tpu.concatenate %307, %253, %255 in 1 : vector<1x4xf32>, vector<1x4xf32>, vector<1x4xf32> -> vector<1x12xf32>
    %309 = arith.index_cast %c1_i32 : i32 to index
    %c0_109 = arith.constant 0 : index
    %310 = vector.load %arg14[%309, %c0_109] : memref<8x12xf32, #tpu.memory_space<vmem>>, vector<1x12xf32>
    tpu.vector_store %arg14[%309, %c0_109], %308 {strides = array<i32>} : memref<8x12xf32, #tpu.memory_space<vmem>>, vector<1x12xf32>,
    %c2_i32 = arith.constant 2 : i32
    %311 = arith.mulf %307, %307 : vector<1x4xf32>
    %312 = tpu.concatenate %307, %311 in 1 : vector<1x4xf32>, vector<1x4xf32> -> vector<1x8xf32>
    %313 = math.absf %312 : vector<1x8xf32>
    %cst_110 = arith.constant 1.000000e+00 : f32
    %314 = vector.broadcast %cst_110 : f32 to vector<1x8xf32>
    %315 = arith.cmpf ogt, %313, %314 : vector<1x8xf32>
    %cst_111 = arith.constant 1.000000e-30 : f32
    %316 = vector.broadcast %cst_111 : f32 to vector<1x8xf32>
    %317 = arith.maximumf %313, %316 : vector<1x8xf32>
    %cst_112 = arith.constant 1.000000e+00 : f32
    %318 = vector.broadcast %cst_112 : f32 to vector<1x8xf32>
    %319 = arith.divf %318, %317 : vector<1x8xf32>
    %320 = arith.select %315, %319, %313 : vector<1x8xi1>, vector<1x8xf32>
    %cst_113 = arith.constant 0.414213568 : f32
    %321 = vector.broadcast %cst_113 : f32 to vector<1x8xf32>
    %322 = arith.cmpf ogt, %320, %321 : vector<1x8xf32>
    %cst_114 = arith.constant 1.000000e+00 : f32
    %323 = vector.broadcast %cst_114 : f32 to vector<1x8xf32>
    %324 = arith.subf %320, %323 : vector<1x8xf32>
    %cst_115 = arith.constant 1.000000e+00 : f32
    %325 = vector.broadcast %cst_115 : f32 to vector<1x8xf32>
    %326 = arith.addf %320, %325 : vector<1x8xf32>
    %327 = arith.divf %324, %326 : vector<1x8xf32>
    %328 = arith.select %322, %327, %320 : vector<1x8xi1>, vector<1x8xf32>
    %329 = arith.mulf %328, %328 : vector<1x8xf32>
    %cst_116 = arith.constant 0.0769230798 : f32
    %330 = vector.broadcast %cst_116 : f32 to vector<1x8xf32>
    %331 = arith.mulf %329, %330 : vector<1x8xf32>
    %cst_117 = arith.constant 0.0909090936 : f32
    %332 = vector.broadcast %cst_117 : f32 to vector<1x8xf32>
    %333 = arith.subf %332, %331 : vector<1x8xf32>
    %334 = arith.mulf %329, %333 : vector<1x8xf32>
    %cst_118 = arith.constant 0.111111112 : f32
    %335 = vector.broadcast %cst_118 : f32 to vector<1x8xf32>
    %336 = arith.subf %335, %334 : vector<1x8xf32>
    %337 = arith.mulf %329, %336 : vector<1x8xf32>
    %cst_119 = arith.constant 0.142857149 : f32
    %338 = vector.broadcast %cst_119 : f32 to vector<1x8xf32>
    %339 = arith.subf %338, %337 : vector<1x8xf32>
    %340 = arith.mulf %329, %339 : vector<1x8xf32>
    %cst_120 = arith.constant 2.000000e-01 : f32
    %341 = vector.broadcast %cst_120 : f32 to vector<1x8xf32>
    %342 = arith.subf %341, %340 : vector<1x8xf32>
    %343 = arith.mulf %329, %342 : vector<1x8xf32>
    %cst_121 = arith.constant 0.333333343 : f32
    %344 = vector.broadcast %cst_121 : f32 to vector<1x8xf32>
    %345 = arith.subf %344, %343 : vector<1x8xf32>
    %346 = arith.mulf %329, %345 : vector<1x8xf32>
    %cst_122 = arith.constant 1.000000e+00 : f32
    %347 = vector.broadcast %cst_122 : f32 to vector<1x8xf32>
    %348 = arith.subf %347, %346 : vector<1x8xf32>
    %349 = arith.mulf %328, %348 : vector<1x8xf32>
    %cst_123 = arith.constant 0.785398185 : f32
    %350 = vector.broadcast %cst_123 : f32 to vector<1x8xf32>
    %351 = arith.addf %349, %350 : vector<1x8xf32>
    %352 = arith.select %322, %351, %349 : vector<1x8xi1>, vector<1x8xf32>
    %cst_124 = arith.constant 1.57079637 : f32
    %353 = vector.broadcast %cst_124 : f32 to vector<1x8xf32>
    %354 = arith.subf %353, %352 : vector<1x8xf32>
    %355 = arith.select %315, %354, %352 : vector<1x8xi1>, vector<1x8xf32>
    %cst_125 = arith.constant 0.000000e+00 : f32
    %356 = vector.broadcast %cst_125 : f32 to vector<1x8xf32>
    %357 = arith.cmpf olt, %312, %356 : vector<1x8xf32>
    %cst_126 = arith.constant 0.000000e+00 : f32
    %358 = vector.broadcast %cst_126 : f32 to vector<1x8xf32>
    %359 = arith.subf %358, %355 : vector<1x8xf32>
    %360 = arith.select %357, %359, %355 : vector<1x8xi1>, vector<1x8xf32>
    %361 = arith.index_cast %c2_i32 : i32 to index
    %c0_127 = arith.constant 0 : index
    %362 = vector.load %arg13[%361, %c0_127] : memref<8x16xf32, #tpu.memory_space<vmem>>, vector<1x16xf32>
    %cst_128 = arith.constant dense<0.000000e+00> : vector<1x16xf32>
    %363 = tpu.matmul %360, %57, %cst_128 {dimension_numbers = #tpu.dot_dimension_numbers<[1], [0], [0], [1], [0, 0, 1, 1], [], []>} : vector<1x8xf32>, vector<8x16xf32>, vector<1x16xf32> -> vector<1x16xf32>
    %364 = arith.addf %362, %363 : vector<1x16xf32>
    %365 = math.tanh %364 : vector<1x16xf32>
    %366 = arith.negf %365 : vector<1x16xf32>
    %367 = math.exp %366 : vector<1x16xf32>
    %cst_129 = arith.constant 1.000000e+00 : f32
    %368 = vector.broadcast %cst_129 : f32 to vector<1x16xf32>
    %369 = arith.addf %368, %367 : vector<1x16xf32>
    %370 = arith.divf %368, %369 : vector<1x16xf32>
    %371 = math.tanh %365 : vector<1x16xf32>
    %372 = vector.extract_strided_slice %370 {offsets = [0, 0], sizes = [1, 4], strides = [1, 1]} : vector<1x16xf32> to vector<1x4xf32>
    %373 = vector.extract_strided_slice %370 {offsets = [0, 4], sizes = [1, 4], strides = [1, 1]} : vector<1x16xf32> to vector<1x4xf32>
    %374 = vector.extract_strided_slice %371 {offsets = [0, 8], sizes = [1, 4], strides = [1, 1]} : vector<1x16xf32> to vector<1x4xf32>
    %375 = vector.extract_strided_slice %370 {offsets = [0, 12], sizes = [1, 4], strides = [1, 1]} : vector<1x16xf32> to vector<1x4xf32>
    %376 = arith.mulf %253, %372 : vector<1x4xf32>
    %377 = arith.mulf %373, %374 : vector<1x4xf32>
    %378 = arith.addf %376, %377 : vector<1x4xf32>
    %379 = math.tanh %378 : vector<1x4xf32>
    %380 = arith.mulf %375, %379 : vector<1x4xf32>
    %381 = arith.mulf %380, %380 : vector<1x4xf32>
    %382 = tpu.concatenate %380, %381 in 1 : vector<1x4xf32>, vector<1x4xf32> -> vector<1x8xf32>
    %383 = math.absf %382 : vector<1x8xf32>
    %cst_130 = arith.constant 1.000000e+00 : f32
    %384 = vector.broadcast %cst_130 : f32 to vector<1x8xf32>
    %385 = arith.cmpf ogt, %383, %384 : vector<1x8xf32>
    %cst_131 = arith.constant 1.000000e-30 : f32
    %386 = vector.broadcast %cst_131 : f32 to vector<1x8xf32>
    %387 = arith.maximumf %383, %386 : vector<1x8xf32>
    %cst_132 = arith.constant 1.000000e+00 : f32
    %388 = vector.broadcast %cst_132 : f32 to vector<1x8xf32>
    %389 = arith.divf %388, %387 : vector<1x8xf32>
    %390 = arith.select %385, %389, %383 : vector<1x8xi1>, vector<1x8xf32>
    %cst_133 = arith.constant 0.414213568 : f32
    %391 = vector.broadcast %cst_133 : f32 to vector<1x8xf32>
    %392 = arith.cmpf ogt, %390, %391 : vector<1x8xf32>
    %cst_134 = arith.constant 1.000000e+00 : f32
    %393 = vector.broadcast %cst_134 : f32 to vector<1x8xf32>
    %394 = arith.subf %390, %393 : vector<1x8xf32>
    %cst_135 = arith.constant 1.000000e+00 : f32
    %395 = vector.broadcast %cst_135 : f32 to vector<1x8xf32>
    %396 = arith.addf %390, %395 : vector<1x8xf32>
    %397 = arith.divf %394, %396 : vector<1x8xf32>
    %398 = arith.select %392, %397, %390 : vector<1x8xi1>, vector<1x8xf32>
    %399 = arith.mulf %398, %398 : vector<1x8xf32>
    %cst_136 = arith.constant 0.0769230798 : f32
    %400 = vector.broadcast %cst_136 : f32 to vector<1x8xf32>
    %401 = arith.mulf %399, %400 : vector<1x8xf32>
    %cst_137 = arith.constant 0.0909090936 : f32
    %402 = vector.broadcast %cst_137 : f32 to vector<1x8xf32>
    %403 = arith.subf %402, %401 : vector<1x8xf32>
    %404 = arith.mulf %399, %403 : vector<1x8xf32>
    %cst_138 = arith.constant 0.111111112 : f32
    %405 = vector.broadcast %cst_138 : f32 to vector<1x8xf32>
    %406 = arith.subf %405, %404 : vector<1x8xf32>
    %407 = arith.mulf %399, %406 : vector<1x8xf32>
    %cst_139 = arith.constant 0.142857149 : f32
    %408 = vector.broadcast %cst_139 : f32 to vector<1x8xf32>
    %409 = arith.subf %408, %407 : vector<1x8xf32>
    %410 = arith.mulf %399, %409 : vector<1x8xf32>
    %cst_140 = arith.constant 2.000000e-01 : f32
    %411 = vector.broadcast %cst_140 : f32 to vector<1x8xf32>
    %412 = arith.subf %411, %410 : vector<1x8xf32>
    %413 = arith.mulf %399, %412 : vector<1x8xf32>
    %cst_141 = arith.constant 0.333333343 : f32
    %414 = vector.broadcast %cst_141 : f32 to vector<1x8xf32>
    %415 = arith.subf %414, %413 : vector<1x8xf32>
    %416 = arith.mulf %399, %415 : vector<1x8xf32>
    %cst_142 = arith.constant 1.000000e+00 : f32
    %417 = vector.broadcast %cst_142 : f32 to vector<1x8xf32>
    %418 = arith.subf %417, %416 : vector<1x8xf32>
    %419 = arith.mulf %398, %418 : vector<1x8xf32>
    %cst_143 = arith.constant 0.785398185 : f32
    %420 = vector.broadcast %cst_143 : f32 to vector<1x8xf32>
    %421 = arith.addf %419, %420 : vector<1x8xf32>
    %422 = arith.select %392, %421, %419 : vector<1x8xi1>, vector<1x8xf32>
    %cst_144 = arith.constant 1.57079637 : f32
    %423 = vector.broadcast %cst_144 : f32 to vector<1x8xf32>
    %424 = arith.subf %423, %422 : vector<1x8xf32>
    %425 = arith.select %385, %424, %422 : vector<1x8xi1>, vector<1x8xf32>
    %cst_145 = arith.constant 0.000000e+00 : f32
    %426 = vector.broadcast %cst_145 : f32 to vector<1x8xf32>
    %427 = arith.cmpf olt, %382, %426 : vector<1x8xf32>
    %cst_146 = arith.constant 0.000000e+00 : f32
    %428 = vector.broadcast %cst_146 : f32 to vector<1x8xf32>
    %429 = arith.subf %428, %425 : vector<1x8xf32>
    %430 = arith.select %427, %429, %425 : vector<1x8xi1>, vector<1x8xf32>
    %cst_147 = arith.constant dense<0.000000e+00> : vector<1x4xf32>
    %431 = tpu.matmul %430, %58, %cst_147 {dimension_numbers = #tpu.dot_dimension_numbers<[1], [0], [0], [1], [0, 0, 1, 1], [], []>} : vector<1x8xf32>, vector<8x4xf32>, vector<1x4xf32> -> vector<1x4xf32>
    %432 = math.tanh %431 : vector<1x4xf32>
    %433 = tpu.concatenate %432, %378, %380 in 1 : vector<1x4xf32>, vector<1x4xf32>, vector<1x4xf32> -> vector<1x12xf32>
    %434 = arith.index_cast %c2_i32 : i32 to index
    %c0_148 = arith.constant 0 : index
    %435 = vector.load %arg14[%434, %c0_148] : memref<8x12xf32, #tpu.memory_space<vmem>>, vector<1x12xf32>
    tpu.vector_store %arg14[%434, %c0_148], %433 {strides = array<i32>} : memref<8x12xf32, #tpu.memory_space<vmem>>, vector<1x12xf32>,
    %c3_i32 = arith.constant 3 : i32
    %436 = arith.mulf %432, %432 : vector<1x4xf32>
    %437 = tpu.concatenate %432, %436 in 1 : vector<1x4xf32>, vector<1x4xf32> -> vector<1x8xf32>
    %438 = math.absf %437 : vector<1x8xf32>
    %cst_149 = arith.constant 1.000000e+00 : f32
    %439 = vector.broadcast %cst_149 : f32 to vector<1x8xf32>
    %440 = arith.cmpf ogt, %438, %439 : vector<1x8xf32>
    %cst_150 = arith.constant 1.000000e-30 : f32
    %441 = vector.broadcast %cst_150 : f32 to vector<1x8xf32>
    %442 = arith.maximumf %438, %441 : vector<1x8xf32>
    %cst_151 = arith.constant 1.000000e+00 : f32
    %443 = vector.broadcast %cst_151 : f32 to vector<1x8xf32>
    %444 = arith.divf %443, %442 : vector<1x8xf32>
    %445 = arith.select %440, %444, %438 : vector<1x8xi1>, vector<1x8xf32>
    %cst_152 = arith.constant 0.414213568 : f32
    %446 = vector.broadcast %cst_152 : f32 to vector<1x8xf32>
    %447 = arith.cmpf ogt, %445, %446 : vector<1x8xf32>
    %cst_153 = arith.constant 1.000000e+00 : f32
    %448 = vector.broadcast %cst_153 : f32 to vector<1x8xf32>
    %449 = arith.subf %445, %448 : vector<1x8xf32>
    %cst_154 = arith.constant 1.000000e+00 : f32
    %450 = vector.broadcast %cst_154 : f32 to vector<1x8xf32>
    %451 = arith.addf %445, %450 : vector<1x8xf32>
    %452 = arith.divf %449, %451 : vector<1x8xf32>
    %453 = arith.select %447, %452, %445 : vector<1x8xi1>, vector<1x8xf32>
    %454 = arith.mulf %453, %453 : vector<1x8xf32>
    %cst_155 = arith.constant 0.0769230798 : f32
    %455 = vector.broadcast %cst_155 : f32 to vector<1x8xf32>
    %456 = arith.mulf %454, %455 : vector<1x8xf32>
    %cst_156 = arith.constant 0.0909090936 : f32
    %457 = vector.broadcast %cst_156 : f32 to vector<1x8xf32>
    %458 = arith.subf %457, %456 : vector<1x8xf32>
    %459 = arith.mulf %454, %458 : vector<1x8xf32>
    %cst_157 = arith.constant 0.111111112 : f32
    %460 = vector.broadcast %cst_157 : f32 to vector<1x8xf32>
    %461 = arith.subf %460, %459 : vector<1x8xf32>
    %462 = arith.mulf %454, %461 : vector<1x8xf32>
    %cst_158 = arith.constant 0.142857149 : f32
    %463 = vector.broadcast %cst_158 : f32 to vector<1x8xf32>
    %464 = arith.subf %463, %462 : vector<1x8xf32>
    %465 = arith.mulf %454, %464 : vector<1x8xf32>
    %cst_159 = arith.constant 2.000000e-01 : f32
    %466 = vector.broadcast %cst_159 : f32 to vector<1x8xf32>
    %467 = arith.subf %466, %465 : vector<1x8xf32>
    %468 = arith.mulf %454, %467 : vector<1x8xf32>
    %cst_160 = arith.constant 0.333333343 : f32
    %469 = vector.broadcast %cst_160 : f32 to vector<1x8xf32>
    %470 = arith.subf %469, %468 : vector<1x8xf32>
    %471 = arith.mulf %454, %470 : vector<1x8xf32>
    %cst_161 = arith.constant 1.000000e+00 : f32
    %472 = vector.broadcast %cst_161 : f32 to vector<1x8xf32>
    %473 = arith.subf %472, %471 : vector<1x8xf32>
    %474 = arith.mulf %453, %473 : vector<1x8xf32>
    %cst_162 = arith.constant 0.785398185 : f32
    %475 = vector.broadcast %cst_162 : f32 to vector<1x8xf32>
    %476 = arith.addf %474, %475 : vector<1x8xf32>
    %477 = arith.select %447, %476, %474 : vector<1x8xi1>, vector<1x8xf32>
    %cst_163 = arith.constant 1.57079637 : f32
    %478 = vector.broadcast %cst_163 : f32 to vector<1x8xf32>
    %479 = arith.subf %478, %477 : vector<1x8xf32>
    %480 = arith.select %440, %479, %477 : vector<1x8xi1>, vector<1x8xf32>
    %cst_164 = arith.constant 0.000000e+00 : f32
    %481 = vector.broadcast %cst_164 : f32 to vector<1x8xf32>
    %482 = arith.cmpf olt, %437, %481 : vector<1x8xf32>
    %cst_165 = arith.constant 0.000000e+00 : f32
    %483 = vector.broadcast %cst_165 : f32 to vector<1x8xf32>
    %484 = arith.subf %483, %480 : vector<1x8xf32>
    %485 = arith.select %482, %484, %480 : vector<1x8xi1>, vector<1x8xf32>
    %486 = arith.index_cast %c3_i32 : i32 to index
    %c0_166 = arith.constant 0 : index
    %487 = vector.load %arg13[%486, %c0_166] : memref<8x16xf32, #tpu.memory_space<vmem>>, vector<1x16xf32>
    %cst_167 = arith.constant dense<0.000000e+00> : vector<1x16xf32>
    %488 = tpu.matmul %485, %57, %cst_167 {dimension_numbers = #tpu.dot_dimension_numbers<[1], [0], [0], [1], [0, 0, 1, 1], [], []>} : vector<1x8xf32>, vector<8x16xf32>, vector<1x16xf32> -> vector<1x16xf32>
    %489 = arith.addf %487, %488 : vector<1x16xf32>
    %490 = math.tanh %489 : vector<1x16xf32>
    %491 = arith.negf %490 : vector<1x16xf32>
    %492 = math.exp %491 : vector<1x16xf32>
    %cst_168 = arith.constant 1.000000e+00 : f32
    %493 = vector.broadcast %cst_168 : f32 to vector<1x16xf32>
    %494 = arith.addf %493, %492 : vector<1x16xf32>
    %495 = arith.divf %493, %494 : vector<1x16xf32>
    %496 = math.tanh %490 : vector<1x16xf32>
    %497 = vector.extract_strided_slice %495 {offsets = [0, 0], sizes = [1, 4], strides = [1, 1]} : vector<1x16xf32> to vector<1x4xf32>
    %498 = vector.extract_strided_slice %495 {offsets = [0, 4], sizes = [1, 4], strides = [1, 1]} : vector<1x16xf32> to vector<1x4xf32>
    %499 = vector.extract_strided_slice %496 {offsets = [0, 8], sizes = [1, 4], strides = [1, 1]} : vector<1x16xf32> to vector<1x4xf32>
    %500 = vector.extract_strided_slice %495 {offsets = [0, 12], sizes = [1, 4], strides = [1, 1]} : vector<1x16xf32> to vector<1x4xf32>
    %501 = arith.mulf %378, %497 : vector<1x4xf32>
    %502 = arith.mulf %498, %499 : vector<1x4xf32>
    %503 = arith.addf %501, %502 : vector<1x4xf32>
    %504 = math.tanh %503 : vector<1x4xf32>
    %505 = arith.mulf %500, %504 : vector<1x4xf32>
    %506 = arith.mulf %505, %505 : vector<1x4xf32>
    %507 = tpu.concatenate %505, %506 in 1 : vector<1x4xf32>, vector<1x4xf32> -> vector<1x8xf32>
    %508 = math.absf %507 : vector<1x8xf32>
    %cst_169 = arith.constant 1.000000e+00 : f32
    %509 = vector.broadcast %cst_169 : f32 to vector<1x8xf32>
    %510 = arith.cmpf ogt, %508, %509 : vector<1x8xf32>
    %cst_170 = arith.constant 1.000000e-30 : f32
    %511 = vector.broadcast %cst_170 : f32 to vector<1x8xf32>
    %512 = arith.maximumf %508, %511 : vector<1x8xf32>
    %cst_171 = arith.constant 1.000000e+00 : f32
    %513 = vector.broadcast %cst_171 : f32 to vector<1x8xf32>
    %514 = arith.divf %513, %512 : vector<1x8xf32>
    %515 = arith.select %510, %514, %508 : vector<1x8xi1>, vector<1x8xf32>
    %cst_172 = arith.constant 0.414213568 : f32
    %516 = vector.broadcast %cst_172 : f32 to vector<1x8xf32>
    %517 = arith.cmpf ogt, %515, %516 : vector<1x8xf32>
    %cst_173 = arith.constant 1.000000e+00 : f32
    %518 = vector.broadcast %cst_173 : f32 to vector<1x8xf32>
    %519 = arith.subf %515, %518 : vector<1x8xf32>
    %cst_174 = arith.constant 1.000000e+00 : f32
    %520 = vector.broadcast %cst_174 : f32 to vector<1x8xf32>
    %521 = arith.addf %515, %520 : vector<1x8xf32>
    %522 = arith.divf %519, %521 : vector<1x8xf32>
    %523 = arith.select %517, %522, %515 : vector<1x8xi1>, vector<1x8xf32>
    %524 = arith.mulf %523, %523 : vector<1x8xf32>
    %cst_175 = arith.constant 0.0769230798 : f32
    %525 = vector.broadcast %cst_175 : f32 to vector<1x8xf32>
    %526 = arith.mulf %524, %525 : vector<1x8xf32>
    %cst_176 = arith.constant 0.0909090936 : f32
    %527 = vector.broadcast %cst_176 : f32 to vector<1x8xf32>
    %528 = arith.subf %527, %526 : vector<1x8xf32>
    %529 = arith.mulf %524, %528 : vector<1x8xf32>
    %cst_177 = arith.constant 0.111111112 : f32
    %530 = vector.broadcast %cst_177 : f32 to vector<1x8xf32>
    %531 = arith.subf %530, %529 : vector<1x8xf32>
    %532 = arith.mulf %524, %531 : vector<1x8xf32>
    %cst_178 = arith.constant 0.142857149 : f32
    %533 = vector.broadcast %cst_178 : f32 to vector<1x8xf32>
    %534 = arith.subf %533, %532 : vector<1x8xf32>
    %535 = arith.mulf %524, %534 : vector<1x8xf32>
    %cst_179 = arith.constant 2.000000e-01 : f32
    %536 = vector.broadcast %cst_179 : f32 to vector<1x8xf32>
    %537 = arith.subf %536, %535 : vector<1x8xf32>
    %538 = arith.mulf %524, %537 : vector<1x8xf32>
    %cst_180 = arith.constant 0.333333343 : f32
    %539 = vector.broadcast %cst_180 : f32 to vector<1x8xf32>
    %540 = arith.subf %539, %538 : vector<1x8xf32>
    %541 = arith.mulf %524, %540 : vector<1x8xf32>
    %cst_181 = arith.constant 1.000000e+00 : f32
    %542 = vector.broadcast %cst_181 : f32 to vector<1x8xf32>
    %543 = arith.subf %542, %541 : vector<1x8xf32>
    %544 = arith.mulf %523, %543 : vector<1x8xf32>
    %cst_182 = arith.constant 0.785398185 : f32
    %545 = vector.broadcast %cst_182 : f32 to vector<1x8xf32>
    %546 = arith.addf %544, %545 : vector<1x8xf32>
    %547 = arith.select %517, %546, %544 : vector<1x8xi1>, vector<1x8xf32>
    %cst_183 = arith.constant 1.57079637 : f32
    %548 = vector.broadcast %cst_183 : f32 to vector<1x8xf32>
    %549 = arith.subf %548, %547 : vector<1x8xf32>
    %550 = arith.select %510, %549, %547 : vector<1x8xi1>, vector<1x8xf32>
    %cst_184 = arith.constant 0.000000e+00 : f32
    %551 = vector.broadcast %cst_184 : f32 to vector<1x8xf32>
    %552 = arith.cmpf olt, %507, %551 : vector<1x8xf32>
    %cst_185 = arith.constant 0.000000e+00 : f32
    %553 = vector.broadcast %cst_185 : f32 to vector<1x8xf32>
    %554 = arith.subf %553, %550 : vector<1x8xf32>
    %555 = arith.select %552, %554, %550 : vector<1x8xi1>, vector<1x8xf32>
    %cst_186 = arith.constant dense<0.000000e+00> : vector<1x4xf32>
    %556 = tpu.matmul %555, %58, %cst_186 {dimension_numbers = #tpu.dot_dimension_numbers<[1], [0], [0], [1], [0, 0, 1, 1], [], []>} : vector<1x8xf32>, vector<8x4xf32>, vector<1x4xf32> -> vector<1x4xf32>
    %557 = math.tanh %556 : vector<1x4xf32>
    %558 = tpu.concatenate %557, %503, %505 in 1 : vector<1x4xf32>, vector<1x4xf32>, vector<1x4xf32> -> vector<1x12xf32>
    %559 = arith.index_cast %c3_i32 : i32 to index
    %c0_187 = arith.constant 0 : index
    %560 = vector.load %arg14[%559, %c0_187] : memref<8x12xf32, #tpu.memory_space<vmem>>, vector<1x12xf32>
    tpu.vector_store %arg14[%559, %c0_187], %558 {strides = array<i32>} : memref<8x12xf32, #tpu.memory_space<vmem>>, vector<1x12xf32>,
    %c4_i32 = arith.constant 4 : i32
    %561 = arith.mulf %557, %557 : vector<1x4xf32>
    %562 = tpu.concatenate %557, %561 in 1 : vector<1x4xf32>, vector<1x4xf32> -> vector<1x8xf32>
    %563 = math.absf %562 : vector<1x8xf32>
    %cst_188 = arith.constant 1.000000e+00 : f32
    %564 = vector.broadcast %cst_188 : f32 to vector<1x8xf32>
    %565 = arith.cmpf ogt, %563, %564 : vector<1x8xf32>
    %cst_189 = arith.constant 1.000000e-30 : f32
    %566 = vector.broadcast %cst_189 : f32 to vector<1x8xf32>
    %567 = arith.maximumf %563, %566 : vector<1x8xf32>
    %cst_190 = arith.constant 1.000000e+00 : f32
    %568 = vector.broadcast %cst_190 : f32 to vector<1x8xf32>
    %569 = arith.divf %568, %567 : vector<1x8xf32>
    %570 = arith.select %565, %569, %563 : vector<1x8xi1>, vector<1x8xf32>
    %cst_191 = arith.constant 0.414213568 : f32
    %571 = vector.broadcast %cst_191 : f32 to vector<1x8xf32>
    %572 = arith.cmpf ogt, %570, %571 : vector<1x8xf32>
    %cst_192 = arith.constant 1.000000e+00 : f32
    %573 = vector.broadcast %cst_192 : f32 to vector<1x8xf32>
    %574 = arith.subf %570, %573 : vector<1x8xf32>
    %cst_193 = arith.constant 1.000000e+00 : f32
    %575 = vector.broadcast %cst_193 : f32 to vector<1x8xf32>
    %576 = arith.addf %570, %575 : vector<1x8xf32>
    %577 = arith.divf %574, %576 : vector<1x8xf32>
    %578 = arith.select %572, %577, %570 : vector<1x8xi1>, vector<1x8xf32>
    %579 = arith.mulf %578, %578 : vector<1x8xf32>
    %cst_194 = arith.constant 0.0769230798 : f32
    %580 = vector.broadcast %cst_194 : f32 to vector<1x8xf32>
    %581 = arith.mulf %579, %580 : vector<1x8xf32>
    %cst_195 = arith.constant 0.0909090936 : f32
    %582 = vector.broadcast %cst_195 : f32 to vector<1x8xf32>
    %583 = arith.subf %582, %581 : vector<1x8xf32>
    %584 = arith.mulf %579, %583 : vector<1x8xf32>
    %cst_196 = arith.constant 0.111111112 : f32
    %585 = vector.broadcast %cst_196 : f32 to vector<1x8xf32>
    %586 = arith.subf %585, %584 : vector<1x8xf32>
    %587 = arith.mulf %579, %586 : vector<1x8xf32>
    %cst_197 = arith.constant 0.142857149 : f32
    %588 = vector.broadcast %cst_197 : f32 to vector<1x8xf32>
    %589 = arith.subf %588, %587 : vector<1x8xf32>
    %590 = arith.mulf %579, %589 : vector<1x8xf32>
    %cst_198 = arith.constant 2.000000e-01 : f32
    %591 = vector.broadcast %cst_198 : f32 to vector<1x8xf32>
    %592 = arith.subf %591, %590 : vector<1x8xf32>
    %593 = arith.mulf %579, %592 : vector<1x8xf32>
    %cst_199 = arith.constant 0.333333343 : f32
    %594 = vector.broadcast %cst_199 : f32 to vector<1x8xf32>
    %595 = arith.subf %594, %593 : vector<1x8xf32>
    %596 = arith.mulf %579, %595 : vector<1x8xf32>
    %cst_200 = arith.constant 1.000000e+00 : f32
    %597 = vector.broadcast %cst_200 : f32 to vector<1x8xf32>
    %598 = arith.subf %597, %596 : vector<1x8xf32>
    %599 = arith.mulf %578, %598 : vector<1x8xf32>
    %cst_201 = arith.constant 0.785398185 : f32
    %600 = vector.broadcast %cst_201 : f32 to vector<1x8xf32>
    %601 = arith.addf %599, %600 : vector<1x8xf32>
    %602 = arith.select %572, %601, %599 : vector<1x8xi1>, vector<1x8xf32>
    %cst_202 = arith.constant 1.57079637 : f32
    %603 = vector.broadcast %cst_202 : f32 to vector<1x8xf32>
    %604 = arith.subf %603, %602 : vector<1x8xf32>
    %605 = arith.select %565, %604, %602 : vector<1x8xi1>, vector<1x8xf32>
    %cst_203 = arith.constant 0.000000e+00 : f32
    %606 = vector.broadcast %cst_203 : f32 to vector<1x8xf32>
    %607 = arith.cmpf olt, %562, %606 : vector<1x8xf32>
    %cst_204 = arith.constant 0.000000e+00 : f32
    %608 = vector.broadcast %cst_204 : f32 to vector<1x8xf32>
    %609 = arith.subf %608, %605 : vector<1x8xf32>
    %610 = arith.select %607, %609, %605 : vector<1x8xi1>, vector<1x8xf32>
    %611 = arith.index_cast %c4_i32 : i32 to index
    %c0_205 = arith.constant 0 : index
    %612 = vector.load %arg13[%611, %c0_205] : memref<8x16xf32, #tpu.memory_space<vmem>>, vector<1x16xf32>
    %cst_206 = arith.constant dense<0.000000e+00> : vector<1x16xf32>
    %613 = tpu.matmul %610, %57, %cst_206 {dimension_numbers = #tpu.dot_dimension_numbers<[1], [0], [0], [1], [0, 0, 1, 1], [], []>} : vector<1x8xf32>, vector<8x16xf32>, vector<1x16xf32> -> vector<1x16xf32>
    %614 = arith.addf %612, %613 : vector<1x16xf32>
    %615 = math.tanh %614 : vector<1x16xf32>
    %616 = arith.negf %615 : vector<1x16xf32>
    %617 = math.exp %616 : vector<1x16xf32>
    %cst_207 = arith.constant 1.000000e+00 : f32
    %618 = vector.broadcast %cst_207 : f32 to vector<1x16xf32>
    %619 = arith.addf %618, %617 : vector<1x16xf32>
    %620 = arith.divf %618, %619 : vector<1x16xf32>
    %621 = math.tanh %615 : vector<1x16xf32>
    %622 = vector.extract_strided_slice %620 {offsets = [0, 0], sizes = [1, 4], strides = [1, 1]} : vector<1x16xf32> to vector<1x4xf32>
    %623 = vector.extract_strided_slice %620 {offsets = [0, 4], sizes = [1, 4], strides = [1, 1]} : vector<1x16xf32> to vector<1x4xf32>
    %624 = vector.extract_strided_slice %621 {offsets = [0, 8], sizes = [1, 4], strides = [1, 1]} : vector<1x16xf32> to vector<1x4xf32>
    %625 = vector.extract_strided_slice %620 {offsets = [0, 12], sizes = [1, 4], strides = [1, 1]} : vector<1x16xf32> to vector<1x4xf32>
    %626 = arith.mulf %503, %622 : vector<1x4xf32>
    %627 = arith.mulf %623, %624 : vector<1x4xf32>
    %628 = arith.addf %626, %627 : vector<1x4xf32>
    %629 = math.tanh %628 : vector<1x4xf32>
    %630 = arith.mulf %625, %629 : vector<1x4xf32>
    %631 = arith.mulf %630, %630 : vector<1x4xf32>
    %632 = tpu.concatenate %630, %631 in 1 : vector<1x4xf32>, vector<1x4xf32> -> vector<1x8xf32>
    %633 = math.absf %632 : vector<1x8xf32>
    %cst_208 = arith.constant 1.000000e+00 : f32
    %634 = vector.broadcast %cst_208 : f32 to vector<1x8xf32>
    %635 = arith.cmpf ogt, %633, %634 : vector<1x8xf32>
    %cst_209 = arith.constant 1.000000e-30 : f32
    %636 = vector.broadcast %cst_209 : f32 to vector<1x8xf32>
    %637 = arith.maximumf %633, %636 : vector<1x8xf32>
    %cst_210 = arith.constant 1.000000e+00 : f32
    %638 = vector.broadcast %cst_210 : f32 to vector<1x8xf32>
    %639 = arith.divf %638, %637 : vector<1x8xf32>
    %640 = arith.select %635, %639, %633 : vector<1x8xi1>, vector<1x8xf32>
    %cst_211 = arith.constant 0.414213568 : f32
    %641 = vector.broadcast %cst_211 : f32 to vector<1x8xf32>
    %642 = arith.cmpf ogt, %640, %641 : vector<1x8xf32>
    %cst_212 = arith.constant 1.000000e+00 : f32
    %643 = vector.broadcast %cst_212 : f32 to vector<1x8xf32>
    %644 = arith.subf %640, %643 : vector<1x8xf32>
    %cst_213 = arith.constant 1.000000e+00 : f32
    %645 = vector.broadcast %cst_213 : f32 to vector<1x8xf32>
    %646 = arith.addf %640, %645 : vector<1x8xf32>
    %647 = arith.divf %644, %646 : vector<1x8xf32>
    %648 = arith.select %642, %647, %640 : vector<1x8xi1>, vector<1x8xf32>
    %649 = arith.mulf %648, %648 : vector<1x8xf32>
    %cst_214 = arith.constant 0.0769230798 : f32
    %650 = vector.broadcast %cst_214 : f32 to vector<1x8xf32>
    %651 = arith.mulf %649, %650 : vector<1x8xf32>
    %cst_215 = arith.constant 0.0909090936 : f32
    %652 = vector.broadcast %cst_215 : f32 to vector<1x8xf32>
    %653 = arith.subf %652, %651 : vector<1x8xf32>
    %654 = arith.mulf %649, %653 : vector<1x8xf32>
    %cst_216 = arith.constant 0.111111112 : f32
    %655 = vector.broadcast %cst_216 : f32 to vector<1x8xf32>
    %656 = arith.subf %655, %654 : vector<1x8xf32>
    %657 = arith.mulf %649, %656 : vector<1x8xf32>
    %cst_217 = arith.constant 0.142857149 : f32
    %658 = vector.broadcast %cst_217 : f32 to vector<1x8xf32>
    %659 = arith.subf %658, %657 : vector<1x8xf32>
    %660 = arith.mulf %649, %659 : vector<1x8xf32>
    %cst_218 = arith.constant 2.000000e-01 : f32
    %661 = vector.broadcast %cst_218 : f32 to vector<1x8xf32>
    %662 = arith.subf %661, %660 : vector<1x8xf32>
    %663 = arith.mulf %649, %662 : vector<1x8xf32>
    %cst_219 = arith.constant 0.333333343 : f32
    %664 = vector.broadcast %cst_219 : f32 to vector<1x8xf32>
    %665 = arith.subf %664, %663 : vector<1x8xf32>
    %666 = arith.mulf %649, %665 : vector<1x8xf32>
    %cst_220 = arith.constant 1.000000e+00 : f32
    %667 = vector.broadcast %cst_220 : f32 to vector<1x8xf32>
    %668 = arith.subf %667, %666 : vector<1x8xf32>
    %669 = arith.mulf %648, %668 : vector<1x8xf32>
    %cst_221 = arith.constant 0.785398185 : f32
    %670 = vector.broadcast %cst_221 : f32 to vector<1x8xf32>
    %671 = arith.addf %669, %670 : vector<1x8xf32>
    %672 = arith.select %642, %671, %669 : vector<1x8xi1>, vector<1x8xf32>
    %cst_222 = arith.constant 1.57079637 : f32
    %673 = vector.broadcast %cst_222 : f32 to vector<1x8xf32>
    %674 = arith.subf %673, %672 : vector<1x8xf32>
    %675 = arith.select %635, %674, %672 : vector<1x8xi1>, vector<1x8xf32>
    %cst_223 = arith.constant 0.000000e+00 : f32
    %676 = vector.broadcast %cst_223 : f32 to vector<1x8xf32>
    %677 = arith.cmpf olt, %632, %676 : vector<1x8xf32>
    %cst_224 = arith.constant 0.000000e+00 : f32
    %678 = vector.broadcast %cst_224 : f32 to vector<1x8xf32>
    %679 = arith.subf %678, %675 : vector<1x8xf32>
    %680 = arith.select %677, %679, %675 : vector<1x8xi1>, vector<1x8xf32>
    %cst_225 = arith.constant dense<0.000000e+00> : vector<1x4xf32>
    %681 = tpu.matmul %680, %58, %cst_225 {dimension_numbers = #tpu.dot_dimension_numbers<[1], [0], [0], [1], [0, 0, 1, 1], [], []>} : vector<1x8xf32>, vector<8x4xf32>, vector<1x4xf32> -> vector<1x4xf32>
    %682 = math.tanh %681 : vector<1x4xf32>
    %683 = tpu.concatenate %682, %628, %630 in 1 : vector<1x4xf32>, vector<1x4xf32>, vector<1x4xf32> -> vector<1x12xf32>
    %684 = arith.index_cast %c4_i32 : i32 to index
    %c0_226 = arith.constant 0 : index
    %685 = vector.load %arg14[%684, %c0_226] : memref<8x12xf32, #tpu.memory_space<vmem>>, vector<1x12xf32>
    tpu.vector_store %arg14[%684, %c0_226], %683 {strides = array<i32>} : memref<8x12xf32, #tpu.memory_space<vmem>>, vector<1x12xf32>,
    %c5_i32 = arith.constant 5 : i32
    %686 = arith.mulf %682, %682 : vector<1x4xf32>
    %687 = tpu.concatenate %682, %686 in 1 : vector<1x4xf32>, vector<1x4xf32> -> vector<1x8xf32>
    %688 = math.absf %687 : vector<1x8xf32>
    %cst_227 = arith.constant 1.000000e+00 : f32
    %689 = vector.broadcast %cst_227 : f32 to vector<1x8xf32>
    %690 = arith.cmpf ogt, %688, %689 : vector<1x8xf32>
    %cst_228 = arith.constant 1.000000e-30 : f32
    %691 = vector.broadcast %cst_228 : f32 to vector<1x8xf32>
    %692 = arith.maximumf %688, %691 : vector<1x8xf32>
    %cst_229 = arith.constant 1.000000e+00 : f32
    %693 = vector.broadcast %cst_229 : f32 to vector<1x8xf32>
    %694 = arith.divf %693, %692 : vector<1x8xf32>
    %695 = arith.select %690, %694, %688 : vector<1x8xi1>, vector<1x8xf32>
    %cst_230 = arith.constant 0.414213568 : f32
    %696 = vector.broadcast %cst_230 : f32 to vector<1x8xf32>
    %697 = arith.cmpf ogt, %695, %696 : vector<1x8xf32>
    %cst_231 = arith.constant 1.000000e+00 : f32
    %698 = vector.broadcast %cst_231 : f32 to vector<1x8xf32>
    %699 = arith.subf %695, %698 : vector<1x8xf32>
    %cst_232 = arith.constant 1.000000e+00 : f32
    %700 = vector.broadcast %cst_232 : f32 to vector<1x8xf32>
    %701 = arith.addf %695, %700 : vector<1x8xf32>
    %702 = arith.divf %699, %701 : vector<1x8xf32>
    %703 = arith.select %697, %702, %695 : vector<1x8xi1>, vector<1x8xf32>
    %704 = arith.mulf %703, %703 : vector<1x8xf32>
    %cst_233 = arith.constant 0.0769230798 : f32
    %705 = vector.broadcast %cst_233 : f32 to vector<1x8xf32>
    %706 = arith.mulf %704, %705 : vector<1x8xf32>
    %cst_234 = arith.constant 0.0909090936 : f32
    %707 = vector.broadcast %cst_234 : f32 to vector<1x8xf32>
    %708 = arith.subf %707, %706 : vector<1x8xf32>
    %709 = arith.mulf %704, %708 : vector<1x8xf32>
    %cst_235 = arith.constant 0.111111112 : f32
    %710 = vector.broadcast %cst_235 : f32 to vector<1x8xf32>
    %711 = arith.subf %710, %709 : vector<1x8xf32>
    %712 = arith.mulf %704, %711 : vector<1x8xf32>
    %cst_236 = arith.constant 0.142857149 : f32
    %713 = vector.broadcast %cst_236 : f32 to vector<1x8xf32>
    %714 = arith.subf %713, %712 : vector<1x8xf32>
    %715 = arith.mulf %704, %714 : vector<1x8xf32>
    %cst_237 = arith.constant 2.000000e-01 : f32
    %716 = vector.broadcast %cst_237 : f32 to vector<1x8xf32>
    %717 = arith.subf %716, %715 : vector<1x8xf32>
    %718 = arith.mulf %704, %717 : vector<1x8xf32>
    %cst_238 = arith.constant 0.333333343 : f32
    %719 = vector.broadcast %cst_238 : f32 to vector<1x8xf32>
    %720 = arith.subf %719, %718 : vector<1x8xf32>
    %721 = arith.mulf %704, %720 : vector<1x8xf32>
    %cst_239 = arith.constant 1.000000e+00 : f32
    %722 = vector.broadcast %cst_239 : f32 to vector<1x8xf32>
    %723 = arith.subf %722, %721 : vector<1x8xf32>
    %724 = arith.mulf %703, %723 : vector<1x8xf32>
    %cst_240 = arith.constant 0.785398185 : f32
    %725 = vector.broadcast %cst_240 : f32 to vector<1x8xf32>
    %726 = arith.addf %724, %725 : vector<1x8xf32>
    %727 = arith.select %697, %726, %724 : vector<1x8xi1>, vector<1x8xf32>
    %cst_241 = arith.constant 1.57079637 : f32
    %728 = vector.broadcast %cst_241 : f32 to vector<1x8xf32>
    %729 = arith.subf %728, %727 : vector<1x8xf32>
    %730 = arith.select %690, %729, %727 : vector<1x8xi1>, vector<1x8xf32>
    %cst_242 = arith.constant 0.000000e+00 : f32
    %731 = vector.broadcast %cst_242 : f32 to vector<1x8xf32>
    %732 = arith.cmpf olt, %687, %731 : vector<1x8xf32>
    %cst_243 = arith.constant 0.000000e+00 : f32
    %733 = vector.broadcast %cst_243 : f32 to vector<1x8xf32>
    %734 = arith.subf %733, %730 : vector<1x8xf32>
    %735 = arith.select %732, %734, %730 : vector<1x8xi1>, vector<1x8xf32>
    %736 = arith.index_cast %c5_i32 : i32 to index
    %c0_244 = arith.constant 0 : index
    %737 = vector.load %arg13[%736, %c0_244] : memref<8x16xf32, #tpu.memory_space<vmem>>, vector<1x16xf32>
    %cst_245 = arith.constant dense<0.000000e+00> : vector<1x16xf32>
    %738 = tpu.matmul %735, %57, %cst_245 {dimension_numbers = #tpu.dot_dimension_numbers<[1], [0], [0], [1], [0, 0, 1, 1], [], []>} : vector<1x8xf32>, vector<8x16xf32>, vector<1x16xf32> -> vector<1x16xf32>
    %739 = arith.addf %737, %738 : vector<1x16xf32>
    %740 = math.tanh %739 : vector<1x16xf32>
    %741 = arith.negf %740 : vector<1x16xf32>
    %742 = math.exp %741 : vector<1x16xf32>
    %cst_246 = arith.constant 1.000000e+00 : f32
    %743 = vector.broadcast %cst_246 : f32 to vector<1x16xf32>
    %744 = arith.addf %743, %742 : vector<1x16xf32>
    %745 = arith.divf %743, %744 : vector<1x16xf32>
    %746 = math.tanh %740 : vector<1x16xf32>
    %747 = vector.extract_strided_slice %745 {offsets = [0, 0], sizes = [1, 4], strides = [1, 1]} : vector<1x16xf32> to vector<1x4xf32>
    %748 = vector.extract_strided_slice %745 {offsets = [0, 4], sizes = [1, 4], strides = [1, 1]} : vector<1x16xf32> to vector<1x4xf32>
    %749 = vector.extract_strided_slice %746 {offsets = [0, 8], sizes = [1, 4], strides = [1, 1]} : vector<1x16xf32> to vector<1x4xf32>
    %750 = vector.extract_strided_slice %745 {offsets = [0, 12], sizes = [1, 4], strides = [1, 1]} : vector<1x16xf32> to vector<1x4xf32>
    %751 = arith.mulf %628, %747 : vector<1x4xf32>
    %752 = arith.mulf %748, %749 : vector<1x4xf32>
    %753 = arith.addf %751, %752 : vector<1x4xf32>
    %754 = math.tanh %753 : vector<1x4xf32>
    %755 = arith.mulf %750, %754 : vector<1x4xf32>
    %756 = arith.mulf %755, %755 : vector<1x4xf32>
    %757 = tpu.concatenate %755, %756 in 1 : vector<1x4xf32>, vector<1x4xf32> -> vector<1x8xf32>
    %758 = math.absf %757 : vector<1x8xf32>
    %cst_247 = arith.constant 1.000000e+00 : f32
    %759 = vector.broadcast %cst_247 : f32 to vector<1x8xf32>
    %760 = arith.cmpf ogt, %758, %759 : vector<1x8xf32>
    %cst_248 = arith.constant 1.000000e-30 : f32
    %761 = vector.broadcast %cst_248 : f32 to vector<1x8xf32>
    %762 = arith.maximumf %758, %761 : vector<1x8xf32>
    %cst_249 = arith.constant 1.000000e+00 : f32
    %763 = vector.broadcast %cst_249 : f32 to vector<1x8xf32>
    %764 = arith.divf %763, %762 : vector<1x8xf32>
    %765 = arith.select %760, %764, %758 : vector<1x8xi1>, vector<1x8xf32>
    %cst_250 = arith.constant 0.414213568 : f32
    %766 = vector.broadcast %cst_250 : f32 to vector<1x8xf32>
    %767 = arith.cmpf ogt, %765, %766 : vector<1x8xf32>
    %cst_251 = arith.constant 1.000000e+00 : f32
    %768 = vector.broadcast %cst_251 : f32 to vector<1x8xf32>
    %769 = arith.subf %765, %768 : vector<1x8xf32>
    %cst_252 = arith.constant 1.000000e+00 : f32
    %770 = vector.broadcast %cst_252 : f32 to vector<1x8xf32>
    %771 = arith.addf %765, %770 : vector<1x8xf32>
    %772 = arith.divf %769, %771 : vector<1x8xf32>
    %773 = arith.select %767, %772, %765 : vector<1x8xi1>, vector<1x8xf32>
    %774 = arith.mulf %773, %773 : vector<1x8xf32>
    %cst_253 = arith.constant 0.0769230798 : f32
    %775 = vector.broadcast %cst_253 : f32 to vector<1x8xf32>
    %776 = arith.mulf %774, %775 : vector<1x8xf32>
    %cst_254 = arith.constant 0.0909090936 : f32
    %777 = vector.broadcast %cst_254 : f32 to vector<1x8xf32>
    %778 = arith.subf %777, %776 : vector<1x8xf32>
    %779 = arith.mulf %774, %778 : vector<1x8xf32>
    %cst_255 = arith.constant 0.111111112 : f32
    %780 = vector.broadcast %cst_255 : f32 to vector<1x8xf32>
    %781 = arith.subf %780, %779 : vector<1x8xf32>
    %782 = arith.mulf %774, %781 : vector<1x8xf32>
    %cst_256 = arith.constant 0.142857149 : f32
    %783 = vector.broadcast %cst_256 : f32 to vector<1x8xf32>
    %784 = arith.subf %783, %782 : vector<1x8xf32>
    %785 = arith.mulf %774, %784 : vector<1x8xf32>
    %cst_257 = arith.constant 2.000000e-01 : f32
    %786 = vector.broadcast %cst_257 : f32 to vector<1x8xf32>
    %787 = arith.subf %786, %785 : vector<1x8xf32>
    %788 = arith.mulf %774, %787 : vector<1x8xf32>
    %cst_258 = arith.constant 0.333333343 : f32
    %789 = vector.broadcast %cst_258 : f32 to vector<1x8xf32>
    %790 = arith.subf %789, %788 : vector<1x8xf32>
    %791 = arith.mulf %774, %790 : vector<1x8xf32>
    %cst_259 = arith.constant 1.000000e+00 : f32
    %792 = vector.broadcast %cst_259 : f32 to vector<1x8xf32>
    %793 = arith.subf %792, %791 : vector<1x8xf32>
    %794 = arith.mulf %773, %793 : vector<1x8xf32>
    %cst_260 = arith.constant 0.785398185 : f32
    %795 = vector.broadcast %cst_260 : f32 to vector<1x8xf32>
    %796 = arith.addf %794, %795 : vector<1x8xf32>
    %797 = arith.select %767, %796, %794 : vector<1x8xi1>, vector<1x8xf32>
    %cst_261 = arith.constant 1.57079637 : f32
    %798 = vector.broadcast %cst_261 : f32 to vector<1x8xf32>
    %799 = arith.subf %798, %797 : vector<1x8xf32>
    %800 = arith.select %760, %799, %797 : vector<1x8xi1>, vector<1x8xf32>
    %cst_262 = arith.constant 0.000000e+00 : f32
    %801 = vector.broadcast %cst_262 : f32 to vector<1x8xf32>
    %802 = arith.cmpf olt, %757, %801 : vector<1x8xf32>
    %cst_263 = arith.constant 0.000000e+00 : f32
    %803 = vector.broadcast %cst_263 : f32 to vector<1x8xf32>
    %804 = arith.subf %803, %800 : vector<1x8xf32>
    %805 = arith.select %802, %804, %800 : vector<1x8xi1>, vector<1x8xf32>
    %cst_264 = arith.constant dense<0.000000e+00> : vector<1x4xf32>
    %806 = tpu.matmul %805, %58, %cst_264 {dimension_numbers = #tpu.dot_dimension_numbers<[1], [0], [0], [1], [0, 0, 1, 1], [], []>} : vector<1x8xf32>, vector<8x4xf32>, vector<1x4xf32> -> vector<1x4xf32>
    %807 = math.tanh %806 : vector<1x4xf32>
    %808 = tpu.concatenate %807, %753, %755 in 1 : vector<1x4xf32>, vector<1x4xf32>, vector<1x4xf32> -> vector<1x12xf32>
    %809 = arith.index_cast %c5_i32 : i32 to index
    %c0_265 = arith.constant 0 : index
    %810 = vector.load %arg14[%809, %c0_265] : memref<8x12xf32, #tpu.memory_space<vmem>>, vector<1x12xf32>
    tpu.vector_store %arg14[%809, %c0_265], %808 {strides = array<i32>} : memref<8x12xf32, #tpu.memory_space<vmem>>, vector<1x12xf32>,
    %c6_i32 = arith.constant 6 : i32
    %811 = arith.mulf %807, %807 : vector<1x4xf32>
    %812 = tpu.concatenate %807, %811 in 1 : vector<1x4xf32>, vector<1x4xf32> -> vector<1x8xf32>
    %813 = math.absf %812 : vector<1x8xf32>
    %cst_266 = arith.constant 1.000000e+00 : f32
    %814 = vector.broadcast %cst_266 : f32 to vector<1x8xf32>
    %815 = arith.cmpf ogt, %813, %814 : vector<1x8xf32>
    %cst_267 = arith.constant 1.000000e-30 : f32
    %816 = vector.broadcast %cst_267 : f32 to vector<1x8xf32>
    %817 = arith.maximumf %813, %816 : vector<1x8xf32>
    %cst_268 = arith.constant 1.000000e+00 : f32
    %818 = vector.broadcast %cst_268 : f32 to vector<1x8xf32>
    %819 = arith.divf %818, %817 : vector<1x8xf32>
    %820 = arith.select %815, %819, %813 : vector<1x8xi1>, vector<1x8xf32>
    %cst_269 = arith.constant 0.414213568 : f32
    %821 = vector.broadcast %cst_269 : f32 to vector<1x8xf32>
    %822 = arith.cmpf ogt, %820, %821 : vector<1x8xf32>
    %cst_270 = arith.constant 1.000000e+00 : f32
    %823 = vector.broadcast %cst_270 : f32 to vector<1x8xf32>
    %824 = arith.subf %820, %823 : vector<1x8xf32>
    %cst_271 = arith.constant 1.000000e+00 : f32
    %825 = vector.broadcast %cst_271 : f32 to vector<1x8xf32>
    %826 = arith.addf %820, %825 : vector<1x8xf32>
    %827 = arith.divf %824, %826 : vector<1x8xf32>
    %828 = arith.select %822, %827, %820 : vector<1x8xi1>, vector<1x8xf32>
    %829 = arith.mulf %828, %828 : vector<1x8xf32>
    %cst_272 = arith.constant 0.0769230798 : f32
    %830 = vector.broadcast %cst_272 : f32 to vector<1x8xf32>
    %831 = arith.mulf %829, %830 : vector<1x8xf32>
    %cst_273 = arith.constant 0.0909090936 : f32
    %832 = vector.broadcast %cst_273 : f32 to vector<1x8xf32>
    %833 = arith.subf %832, %831 : vector<1x8xf32>
    %834 = arith.mulf %829, %833 : vector<1x8xf32>
    %cst_274 = arith.constant 0.111111112 : f32
    %835 = vector.broadcast %cst_274 : f32 to vector<1x8xf32>
    %836 = arith.subf %835, %834 : vector<1x8xf32>
    %837 = arith.mulf %829, %836 : vector<1x8xf32>
    %cst_275 = arith.constant 0.142857149 : f32
    %838 = vector.broadcast %cst_275 : f32 to vector<1x8xf32>
    %839 = arith.subf %838, %837 : vector<1x8xf32>
    %840 = arith.mulf %829, %839 : vector<1x8xf32>
    %cst_276 = arith.constant 2.000000e-01 : f32
    %841 = vector.broadcast %cst_276 : f32 to vector<1x8xf32>
    %842 = arith.subf %841, %840 : vector<1x8xf32>
    %843 = arith.mulf %829, %842 : vector<1x8xf32>
    %cst_277 = arith.constant 0.333333343 : f32
    %844 = vector.broadcast %cst_277 : f32 to vector<1x8xf32>
    %845 = arith.subf %844, %843 : vector<1x8xf32>
    %846 = arith.mulf %829, %845 : vector<1x8xf32>
    %cst_278 = arith.constant 1.000000e+00 : f32
    %847 = vector.broadcast %cst_278 : f32 to vector<1x8xf32>
    %848 = arith.subf %847, %846 : vector<1x8xf32>
    %849 = arith.mulf %828, %848 : vector<1x8xf32>
    %cst_279 = arith.constant 0.785398185 : f32
    %850 = vector.broadcast %cst_279 : f32 to vector<1x8xf32>
    %851 = arith.addf %849, %850 : vector<1x8xf32>
    %852 = arith.select %822, %851, %849 : vector<1x8xi1>, vector<1x8xf32>
    %cst_280 = arith.constant 1.57079637 : f32
    %853 = vector.broadcast %cst_280 : f32 to vector<1x8xf32>
    %854 = arith.subf %853, %852 : vector<1x8xf32>
    %855 = arith.select %815, %854, %852 : vector<1x8xi1>, vector<1x8xf32>
    %cst_281 = arith.constant 0.000000e+00 : f32
    %856 = vector.broadcast %cst_281 : f32 to vector<1x8xf32>
    %857 = arith.cmpf olt, %812, %856 : vector<1x8xf32>
    %cst_282 = arith.constant 0.000000e+00 : f32
    %858 = vector.broadcast %cst_282 : f32 to vector<1x8xf32>
    %859 = arith.subf %858, %855 : vector<1x8xf32>
    %860 = arith.select %857, %859, %855 : vector<1x8xi1>, vector<1x8xf32>
    %861 = arith.index_cast %c6_i32 : i32 to index
    %c0_283 = arith.constant 0 : index
    %862 = vector.load %arg13[%861, %c0_283] : memref<8x16xf32, #tpu.memory_space<vmem>>, vector<1x16xf32>
    %cst_284 = arith.constant dense<0.000000e+00> : vector<1x16xf32>
    %863 = tpu.matmul %860, %57, %cst_284 {dimension_numbers = #tpu.dot_dimension_numbers<[1], [0], [0], [1], [0, 0, 1, 1], [], []>} : vector<1x8xf32>, vector<8x16xf32>, vector<1x16xf32> -> vector<1x16xf32>
    %864 = arith.addf %862, %863 : vector<1x16xf32>
    %865 = math.tanh %864 : vector<1x16xf32>
    %866 = arith.negf %865 : vector<1x16xf32>
    %867 = math.exp %866 : vector<1x16xf32>
    %cst_285 = arith.constant 1.000000e+00 : f32
    %868 = vector.broadcast %cst_285 : f32 to vector<1x16xf32>
    %869 = arith.addf %868, %867 : vector<1x16xf32>
    %870 = arith.divf %868, %869 : vector<1x16xf32>
    %871 = math.tanh %865 : vector<1x16xf32>
    %872 = vector.extract_strided_slice %870 {offsets = [0, 0], sizes = [1, 4], strides = [1, 1]} : vector<1x16xf32> to vector<1x4xf32>
    %873 = vector.extract_strided_slice %870 {offsets = [0, 4], sizes = [1, 4], strides = [1, 1]} : vector<1x16xf32> to vector<1x4xf32>
    %874 = vector.extract_strided_slice %871 {offsets = [0, 8], sizes = [1, 4], strides = [1, 1]} : vector<1x16xf32> to vector<1x4xf32>
    %875 = vector.extract_strided_slice %870 {offsets = [0, 12], sizes = [1, 4], strides = [1, 1]} : vector<1x16xf32> to vector<1x4xf32>
    %876 = arith.mulf %753, %872 : vector<1x4xf32>
    %877 = arith.mulf %873, %874 : vector<1x4xf32>
    %878 = arith.addf %876, %877 : vector<1x4xf32>
    %879 = math.tanh %878 : vector<1x4xf32>
    %880 = arith.mulf %875, %879 : vector<1x4xf32>
    %881 = arith.mulf %880, %880 : vector<1x4xf32>
    %882 = tpu.concatenate %880, %881 in 1 : vector<1x4xf32>, vector<1x4xf32> -> vector<1x8xf32>
    %883 = math.absf %882 : vector<1x8xf32>
    %cst_286 = arith.constant 1.000000e+00 : f32
    %884 = vector.broadcast %cst_286 : f32 to vector<1x8xf32>
    %885 = arith.cmpf ogt, %883, %884 : vector<1x8xf32>
    %cst_287 = arith.constant 1.000000e-30 : f32
    %886 = vector.broadcast %cst_287 : f32 to vector<1x8xf32>
    %887 = arith.maximumf %883, %886 : vector<1x8xf32>
    %cst_288 = arith.constant 1.000000e+00 : f32
    %888 = vector.broadcast %cst_288 : f32 to vector<1x8xf32>
    %889 = arith.divf %888, %887 : vector<1x8xf32>
    %890 = arith.select %885, %889, %883 : vector<1x8xi1>, vector<1x8xf32>
    %cst_289 = arith.constant 0.414213568 : f32
    %891 = vector.broadcast %cst_289 : f32 to vector<1x8xf32>
    %892 = arith.cmpf ogt, %890, %891 : vector<1x8xf32>
    %cst_290 = arith.constant 1.000000e+00 : f32
    %893 = vector.broadcast %cst_290 : f32 to vector<1x8xf32>
    %894 = arith.subf %890, %893 : vector<1x8xf32>
    %cst_291 = arith.constant 1.000000e+00 : f32
    %895 = vector.broadcast %cst_291 : f32 to vector<1x8xf32>
    %896 = arith.addf %890, %895 : vector<1x8xf32>
    %897 = arith.divf %894, %896 : vector<1x8xf32>
    %898 = arith.select %892, %897, %890 : vector<1x8xi1>, vector<1x8xf32>
    %899 = arith.mulf %898, %898 : vector<1x8xf32>
    %cst_292 = arith.constant 0.0769230798 : f32
    %900 = vector.broadcast %cst_292 : f32 to vector<1x8xf32>
    %901 = arith.mulf %899, %900 : vector<1x8xf32>
    %cst_293 = arith.constant 0.0909090936 : f32
    %902 = vector.broadcast %cst_293 : f32 to vector<1x8xf32>
    %903 = arith.subf %902, %901 : vector<1x8xf32>
    %904 = arith.mulf %899, %903 : vector<1x8xf32>
    %cst_294 = arith.constant 0.111111112 : f32
    %905 = vector.broadcast %cst_294 : f32 to vector<1x8xf32>
    %906 = arith.subf %905, %904 : vector<1x8xf32>
    %907 = arith.mulf %899, %906 : vector<1x8xf32>
    %cst_295 = arith.constant 0.142857149 : f32
    %908 = vector.broadcast %cst_295 : f32 to vector<1x8xf32>
    %909 = arith.subf %908, %907 : vector<1x8xf32>
    %910 = arith.mulf %899, %909 : vector<1x8xf32>
    %cst_296 = arith.constant 2.000000e-01 : f32
    %911 = vector.broadcast %cst_296 : f32 to vector<1x8xf32>
    %912 = arith.subf %911, %910 : vector<1x8xf32>
    %913 = arith.mulf %899, %912 : vector<1x8xf32>
    %cst_297 = arith.constant 0.333333343 : f32
    %914 = vector.broadcast %cst_297 : f32 to vector<1x8xf32>
    %915 = arith.subf %914, %913 : vector<1x8xf32>
    %916 = arith.mulf %899, %915 : vector<1x8xf32>
    %cst_298 = arith.constant 1.000000e+00 : f32
    %917 = vector.broadcast %cst_298 : f32 to vector<1x8xf32>
    %918 = arith.subf %917, %916 : vector<1x8xf32>
    %919 = arith.mulf %898, %918 : vector<1x8xf32>
    %cst_299 = arith.constant 0.785398185 : f32
    %920 = vector.broadcast %cst_299 : f32 to vector<1x8xf32>
    %921 = arith.addf %919, %920 : vector<1x8xf32>
    %922 = arith.select %892, %921, %919 : vector<1x8xi1>, vector<1x8xf32>
    %cst_300 = arith.constant 1.57079637 : f32
    %923 = vector.broadcast %cst_300 : f32 to vector<1x8xf32>
    %924 = arith.subf %923, %922 : vector<1x8xf32>
    %925 = arith.select %885, %924, %922 : vector<1x8xi1>, vector<1x8xf32>
    %cst_301 = arith.constant 0.000000e+00 : f32
    %926 = vector.broadcast %cst_301 : f32 to vector<1x8xf32>
    %927 = arith.cmpf olt, %882, %926 : vector<1x8xf32>
    %cst_302 = arith.constant 0.000000e+00 : f32
    %928 = vector.broadcast %cst_302 : f32 to vector<1x8xf32>
    %929 = arith.subf %928, %925 : vector<1x8xf32>
    %930 = arith.select %927, %929, %925 : vector<1x8xi1>, vector<1x8xf32>
    %cst_303 = arith.constant dense<0.000000e+00> : vector<1x4xf32>
    %931 = tpu.matmul %930, %58, %cst_303 {dimension_numbers = #tpu.dot_dimension_numbers<[1], [0], [0], [1], [0, 0, 1, 1], [], []>} : vector<1x8xf32>, vector<8x4xf32>, vector<1x4xf32> -> vector<1x4xf32>
    %932 = math.tanh %931 : vector<1x4xf32>
    %933 = tpu.concatenate %932, %878, %880 in 1 : vector<1x4xf32>, vector<1x4xf32>, vector<1x4xf32> -> vector<1x12xf32>
    %934 = arith.index_cast %c6_i32 : i32 to index
    %c0_304 = arith.constant 0 : index
    %935 = vector.load %arg14[%934, %c0_304] : memref<8x12xf32, #tpu.memory_space<vmem>>, vector<1x12xf32>
    tpu.vector_store %arg14[%934, %c0_304], %933 {strides = array<i32>} : memref<8x12xf32, #tpu.memory_space<vmem>>, vector<1x12xf32>,
    %c7_i32 = arith.constant 7 : i32
    %936 = arith.mulf %932, %932 : vector<1x4xf32>
    %937 = tpu.concatenate %932, %936 in 1 : vector<1x4xf32>, vector<1x4xf32> -> vector<1x8xf32>
    %938 = math.absf %937 : vector<1x8xf32>
    %cst_305 = arith.constant 1.000000e+00 : f32
    %939 = vector.broadcast %cst_305 : f32 to vector<1x8xf32>
    %940 = arith.cmpf ogt, %938, %939 : vector<1x8xf32>
    %cst_306 = arith.constant 1.000000e-30 : f32
    %941 = vector.broadcast %cst_306 : f32 to vector<1x8xf32>
    %942 = arith.maximumf %938, %941 : vector<1x8xf32>
    %cst_307 = arith.constant 1.000000e+00 : f32
    %943 = vector.broadcast %cst_307 : f32 to vector<1x8xf32>
    %944 = arith.divf %943, %942 : vector<1x8xf32>
    %945 = arith.select %940, %944, %938 : vector<1x8xi1>, vector<1x8xf32>
    %cst_308 = arith.constant 0.414213568 : f32
    %946 = vector.broadcast %cst_308 : f32 to vector<1x8xf32>
    %947 = arith.cmpf ogt, %945, %946 : vector<1x8xf32>
    %cst_309 = arith.constant 1.000000e+00 : f32
    %948 = vector.broadcast %cst_309 : f32 to vector<1x8xf32>
    %949 = arith.subf %945, %948 : vector<1x8xf32>
    %cst_310 = arith.constant 1.000000e+00 : f32
    %950 = vector.broadcast %cst_310 : f32 to vector<1x8xf32>
    %951 = arith.addf %945, %950 : vector<1x8xf32>
    %952 = arith.divf %949, %951 : vector<1x8xf32>
    %953 = arith.select %947, %952, %945 : vector<1x8xi1>, vector<1x8xf32>
    %954 = arith.mulf %953, %953 : vector<1x8xf32>
    %cst_311 = arith.constant 0.0769230798 : f32
    %955 = vector.broadcast %cst_311 : f32 to vector<1x8xf32>
    %956 = arith.mulf %954, %955 : vector<1x8xf32>
    %cst_312 = arith.constant 0.0909090936 : f32
    %957 = vector.broadcast %cst_312 : f32 to vector<1x8xf32>
    %958 = arith.subf %957, %956 : vector<1x8xf32>
    %959 = arith.mulf %954, %958 : vector<1x8xf32>
    %cst_313 = arith.constant 0.111111112 : f32
    %960 = vector.broadcast %cst_313 : f32 to vector<1x8xf32>
    %961 = arith.subf %960, %959 : vector<1x8xf32>
    %962 = arith.mulf %954, %961 : vector<1x8xf32>
    %cst_314 = arith.constant 0.142857149 : f32
    %963 = vector.broadcast %cst_314 : f32 to vector<1x8xf32>
    %964 = arith.subf %963, %962 : vector<1x8xf32>
    %965 = arith.mulf %954, %964 : vector<1x8xf32>
    %cst_315 = arith.constant 2.000000e-01 : f32
    %966 = vector.broadcast %cst_315 : f32 to vector<1x8xf32>
    %967 = arith.subf %966, %965 : vector<1x8xf32>
    %968 = arith.mulf %954, %967 : vector<1x8xf32>
    %cst_316 = arith.constant 0.333333343 : f32
    %969 = vector.broadcast %cst_316 : f32 to vector<1x8xf32>
    %970 = arith.subf %969, %968 : vector<1x8xf32>
    %971 = arith.mulf %954, %970 : vector<1x8xf32>
    %cst_317 = arith.constant 1.000000e+00 : f32
    %972 = vector.broadcast %cst_317 : f32 to vector<1x8xf32>
    %973 = arith.subf %972, %971 : vector<1x8xf32>
    %974 = arith.mulf %953, %973 : vector<1x8xf32>
    %cst_318 = arith.constant 0.785398185 : f32
    %975 = vector.broadcast %cst_318 : f32 to vector<1x8xf32>
    %976 = arith.addf %974, %975 : vector<1x8xf32>
    %977 = arith.select %947, %976, %974 : vector<1x8xi1>, vector<1x8xf32>
    %cst_319 = arith.constant 1.57079637 : f32
    %978 = vector.broadcast %cst_319 : f32 to vector<1x8xf32>
    %979 = arith.subf %978, %977 : vector<1x8xf32>
    %980 = arith.select %940, %979, %977 : vector<1x8xi1>, vector<1x8xf32>
    %cst_320 = arith.constant 0.000000e+00 : f32
    %981 = vector.broadcast %cst_320 : f32 to vector<1x8xf32>
    %982 = arith.cmpf olt, %937, %981 : vector<1x8xf32>
    %cst_321 = arith.constant 0.000000e+00 : f32
    %983 = vector.broadcast %cst_321 : f32 to vector<1x8xf32>
    %984 = arith.subf %983, %980 : vector<1x8xf32>
    %985 = arith.select %982, %984, %980 : vector<1x8xi1>, vector<1x8xf32>
    %986 = arith.index_cast %c7_i32 : i32 to index
    %c0_322 = arith.constant 0 : index
    %987 = vector.load %arg13[%986, %c0_322] : memref<8x16xf32, #tpu.memory_space<vmem>>, vector<1x16xf32>
    %cst_323 = arith.constant dense<0.000000e+00> : vector<1x16xf32>
    %988 = tpu.matmul %985, %57, %cst_323 {dimension_numbers = #tpu.dot_dimension_numbers<[1], [0], [0], [1], [0, 0, 1, 1], [], []>} : vector<1x8xf32>, vector<8x16xf32>, vector<1x16xf32> -> vector<1x16xf32>
    %989 = arith.addf %987, %988 : vector<1x16xf32>
    %990 = math.tanh %989 : vector<1x16xf32>
    %991 = arith.negf %990 : vector<1x16xf32>
    %992 = math.exp %991 : vector<1x16xf32>
    %cst_324 = arith.constant 1.000000e+00 : f32
    %993 = vector.broadcast %cst_324 : f32 to vector<1x16xf32>
    %994 = arith.addf %993, %992 : vector<1x16xf32>
    %995 = arith.divf %993, %994 : vector<1x16xf32>
    %996 = math.tanh %990 : vector<1x16xf32>
    %997 = vector.extract_strided_slice %995 {offsets = [0, 0], sizes = [1, 4], strides = [1, 1]} : vector<1x16xf32> to vector<1x4xf32>
    %998 = vector.extract_strided_slice %995 {offsets = [0, 4], sizes = [1, 4], strides = [1, 1]} : vector<1x16xf32> to vector<1x4xf32>
    %999 = vector.extract_strided_slice %996 {offsets = [0, 8], sizes = [1, 4], strides = [1, 1]} : vector<1x16xf32> to vector<1x4xf32>
    %1000 = vector.extract_strided_slice %995 {offsets = [0, 12], sizes = [1, 4], strides = [1, 1]} : vector<1x16xf32> to vector<1x4xf32>
    %1001 = arith.mulf %878, %997 : vector<1x4xf32>
    %1002 = arith.mulf %998, %999 : vector<1x4xf32>
    %1003 = arith.addf %1001, %1002 : vector<1x4xf32>
    %1004 = math.tanh %1003 : vector<1x4xf32>
    %1005 = arith.mulf %1000, %1004 : vector<1x4xf32>
    %1006 = arith.mulf %1005, %1005 : vector<1x4xf32>
    %1007 = tpu.concatenate %1005, %1006 in 1 : vector<1x4xf32>, vector<1x4xf32> -> vector<1x8xf32>
    %1008 = math.absf %1007 : vector<1x8xf32>
    %cst_325 = arith.constant 1.000000e+00 : f32
    %1009 = vector.broadcast %cst_325 : f32 to vector<1x8xf32>
    %1010 = arith.cmpf ogt, %1008, %1009 : vector<1x8xf32>
    %cst_326 = arith.constant 1.000000e-30 : f32
    %1011 = vector.broadcast %cst_326 : f32 to vector<1x8xf32>
    %1012 = arith.maximumf %1008, %1011 : vector<1x8xf32>
    %cst_327 = arith.constant 1.000000e+00 : f32
    %1013 = vector.broadcast %cst_327 : f32 to vector<1x8xf32>
    %1014 = arith.divf %1013, %1012 : vector<1x8xf32>
    %1015 = arith.select %1010, %1014, %1008 : vector<1x8xi1>, vector<1x8xf32>
    %cst_328 = arith.constant 0.414213568 : f32
    %1016 = vector.broadcast %cst_328 : f32 to vector<1x8xf32>
    %1017 = arith.cmpf ogt, %1015, %1016 : vector<1x8xf32>
    %cst_329 = arith.constant 1.000000e+00 : f32
    %1018 = vector.broadcast %cst_329 : f32 to vector<1x8xf32>
    %1019 = arith.subf %1015, %1018 : vector<1x8xf32>
    %cst_330 = arith.constant 1.000000e+00 : f32
    %1020 = vector.broadcast %cst_330 : f32 to vector<1x8xf32>
    %1021 = arith.addf %1015, %1020 : vector<1x8xf32>
    %1022 = arith.divf %1019, %1021 : vector<1x8xf32>
    %1023 = arith.select %1017, %1022, %1015 : vector<1x8xi1>, vector<1x8xf32>
    %1024 = arith.mulf %1023, %1023 : vector<1x8xf32>
    %cst_331 = arith.constant 0.0769230798 : f32
    %1025 = vector.broadcast %cst_331 : f32 to vector<1x8xf32>
    %1026 = arith.mulf %1024, %1025 : vector<1x8xf32>
    %cst_332 = arith.constant 0.0909090936 : f32
    %1027 = vector.broadcast %cst_332 : f32 to vector<1x8xf32>
    %1028 = arith.subf %1027, %1026 : vector<1x8xf32>
    %1029 = arith.mulf %1024, %1028 : vector<1x8xf32>
    %cst_333 = arith.constant 0.111111112 : f32
    %1030 = vector.broadcast %cst_333 : f32 to vector<1x8xf32>
    %1031 = arith.subf %1030, %1029 : vector<1x8xf32>
    %1032 = arith.mulf %1024, %1031 : vector<1x8xf32>
    %cst_334 = arith.constant 0.142857149 : f32
    %1033 = vector.broadcast %cst_334 : f32 to vector<1x8xf32>
    %1034 = arith.subf %1033, %1032 : vector<1x8xf32>
    %1035 = arith.mulf %1024, %1034 : vector<1x8xf32>
    %cst_335 = arith.constant 2.000000e-01 : f32
    %1036 = vector.broadcast %cst_335 : f32 to vector<1x8xf32>
    %1037 = arith.subf %1036, %1035 : vector<1x8xf32>
    %1038 = arith.mulf %1024, %1037 : vector<1x8xf32>
    %cst_336 = arith.constant 0.333333343 : f32
    %1039 = vector.broadcast %cst_336 : f32 to vector<1x8xf32>
    %1040 = arith.subf %1039, %1038 : vector<1x8xf32>
    %1041 = arith.mulf %1024, %1040 : vector<1x8xf32>
    %cst_337 = arith.constant 1.000000e+00 : f32
    %1042 = vector.broadcast %cst_337 : f32 to vector<1x8xf32>
    %1043 = arith.subf %1042, %1041 : vector<1x8xf32>
    %1044 = arith.mulf %1023, %1043 : vector<1x8xf32>
    %cst_338 = arith.constant 0.785398185 : f32
    %1045 = vector.broadcast %cst_338 : f32 to vector<1x8xf32>
    %1046 = arith.addf %1044, %1045 : vector<1x8xf32>
    %1047 = arith.select %1017, %1046, %1044 : vector<1x8xi1>, vector<1x8xf32>
    %cst_339 = arith.constant 1.57079637 : f32
    %1048 = vector.broadcast %cst_339 : f32 to vector<1x8xf32>
    %1049 = arith.subf %1048, %1047 : vector<1x8xf32>
    %1050 = arith.select %1010, %1049, %1047 : vector<1x8xi1>, vector<1x8xf32>
    %cst_340 = arith.constant 0.000000e+00 : f32
    %1051 = vector.broadcast %cst_340 : f32 to vector<1x8xf32>
    %1052 = arith.cmpf olt, %1007, %1051 : vector<1x8xf32>
    %cst_341 = arith.constant 0.000000e+00 : f32
    %1053 = vector.broadcast %cst_341 : f32 to vector<1x8xf32>
    %1054 = arith.subf %1053, %1050 : vector<1x8xf32>
    %1055 = arith.select %1052, %1054, %1050 : vector<1x8xi1>, vector<1x8xf32>
    %cst_342 = arith.constant dense<0.000000e+00> : vector<1x4xf32>
    %1056 = tpu.matmul %1055, %58, %cst_342 {dimension_numbers = #tpu.dot_dimension_numbers<[1], [0], [0], [1], [0, 0, 1, 1], [], []>} : vector<1x8xf32>, vector<8x4xf32>, vector<1x4xf32> -> vector<1x4xf32>
    %1057 = math.tanh %1056 : vector<1x4xf32>
    %1058 = tpu.concatenate %1057, %1003, %1005 in 1 : vector<1x4xf32>, vector<1x4xf32>, vector<1x4xf32> -> vector<1x12xf32>
    %1059 = arith.index_cast %c7_i32 : i32 to index
    %c0_343 = arith.constant 0 : index
    %1060 = vector.load %arg14[%1059, %c0_343] : memref<8x12xf32, #tpu.memory_space<vmem>>, vector<1x12xf32>
    tpu.vector_store %arg14[%1059, %c0_343], %1058 {strides = array<i32>} : memref<8x12xf32, #tpu.memory_space<vmem>>, vector<1x12xf32>,
    %c8_i32 = arith.constant 8 : i32
    %c0_344 = arith.constant 0 : index
    %c0_345 = arith.constant 0 : index
    %1061 = vector.load %arg11[%c0_344, %c0_345] : memref<1x4xf32, #tpu.memory_space<vmem>>, vector<1x4xf32>
    tpu.vector_store %arg11[%c0_344, %c0_345], %1057 {strides = array<i32>} : memref<1x4xf32, #tpu.memory_space<vmem>>, vector<1x4xf32>,
    %c0_346 = arith.constant 0 : index
    %c0_347 = arith.constant 0 : index
    %1062 = vector.load %arg12[%c0_346, %c0_347] : memref<1x4xf32, #tpu.memory_space<vmem>>, vector<1x4xf32>
    tpu.vector_store %arg12[%c0_346, %c0_347], %1003 {strides = array<i32>} : memref<1x4xf32, #tpu.memory_space<vmem>>, vector<1x4xf32>,
    %c0_348 = arith.constant 0 : index
    %c0_349 = arith.constant 0 : index
    %1063 = vector.load %arg14[%c0_348, %c0_349] : memref<8x12xf32, #tpu.memory_space<vmem>>, vector<8x12xf32>
    %1064 = vector.extract_strided_slice %1063 {offsets = [0, 8], sizes = [8, 4], strides = [1, 1]} : vector<8x12xf32> to vector<8x4xf32>
    %1065 = arith.mulf %1064, %1064 : vector<8x4xf32>
    %1066 = tpu.concatenate %1064, %1065 in 1 : vector<8x4xf32>, vector<8x4xf32> -> vector<8x8xf32>
    %1067 = math.absf %1066 : vector<8x8xf32>
    %cst_350 = arith.constant 1.000000e+00 : f32
    %1068 = vector.broadcast %cst_350 : f32 to vector<8x8xf32>
    %1069 = arith.cmpf ogt, %1067, %1068 : vector<8x8xf32>
    %cst_351 = arith.constant 1.000000e-30 : f32
    %1070 = vector.broadcast %cst_351 : f32 to vector<8x8xf32>
    %1071 = arith.maximumf %1067, %1070 : vector<8x8xf32>
    %cst_352 = arith.constant 1.000000e+00 : f32
    %1072 = vector.broadcast %cst_352 : f32 to vector<8x8xf32>
    %1073 = arith.divf %1072, %1071 : vector<8x8xf32>
    %1074 = arith.select %1069, %1073, %1067 : vector<8x8xi1>, vector<8x8xf32>
    %cst_353 = arith.constant 0.414213568 : f32
    %1075 = vector.broadcast %cst_353 : f32 to vector<8x8xf32>
    %1076 = arith.cmpf ogt, %1074, %1075 : vector<8x8xf32>
    %cst_354 = arith.constant 1.000000e+00 : f32
    %1077 = vector.broadcast %cst_354 : f32 to vector<8x8xf32>
    %1078 = arith.subf %1074, %1077 : vector<8x8xf32>
    %cst_355 = arith.constant 1.000000e+00 : f32
    %1079 = vector.broadcast %cst_355 : f32 to vector<8x8xf32>
    %1080 = arith.addf %1074, %1079 : vector<8x8xf32>
    %1081 = arith.divf %1078, %1080 : vector<8x8xf32>
    %1082 = arith.select %1076, %1081, %1074 : vector<8x8xi1>, vector<8x8xf32>
    %1083 = arith.mulf %1082, %1082 : vector<8x8xf32>
    %cst_356 = arith.constant 0.0769230798 : f32
    %1084 = vector.broadcast %cst_356 : f32 to vector<8x8xf32>
    %1085 = arith.mulf %1083, %1084 : vector<8x8xf32>
    %cst_357 = arith.constant 0.0909090936 : f32
    %1086 = vector.broadcast %cst_357 : f32 to vector<8x8xf32>
    %1087 = arith.subf %1086, %1085 : vector<8x8xf32>
    %1088 = arith.mulf %1083, %1087 : vector<8x8xf32>
    %cst_358 = arith.constant 0.111111112 : f32
    %1089 = vector.broadcast %cst_358 : f32 to vector<8x8xf32>
    %1090 = arith.subf %1089, %1088 : vector<8x8xf32>
    %1091 = arith.mulf %1083, %1090 : vector<8x8xf32>
    %cst_359 = arith.constant 0.142857149 : f32
    %1092 = vector.broadcast %cst_359 : f32 to vector<8x8xf32>
    %1093 = arith.subf %1092, %1091 : vector<8x8xf32>
    %1094 = arith.mulf %1083, %1093 : vector<8x8xf32>
    %cst_360 = arith.constant 2.000000e-01 : f32
    %1095 = vector.broadcast %cst_360 : f32 to vector<8x8xf32>
    %1096 = arith.subf %1095, %1094 : vector<8x8xf32>
    %1097 = arith.mulf %1083, %1096 : vector<8x8xf32>
    %cst_361 = arith.constant 0.333333343 : f32
    %1098 = vector.broadcast %cst_361 : f32 to vector<8x8xf32>
    %1099 = arith.subf %1098, %1097 : vector<8x8xf32>
    %1100 = arith.mulf %1083, %1099 : vector<8x8xf32>
    %cst_362 = arith.constant 1.000000e+00 : f32
    %1101 = vector.broadcast %cst_362 : f32 to vector<8x8xf32>
    %1102 = arith.subf %1101, %1100 : vector<8x8xf32>
    %1103 = arith.mulf %1082, %1102 : vector<8x8xf32>
    %cst_363 = arith.constant 0.785398185 : f32
    %1104 = vector.broadcast %cst_363 : f32 to vector<8x8xf32>
    %1105 = arith.addf %1103, %1104 : vector<8x8xf32>
    %1106 = arith.select %1076, %1105, %1103 : vector<8x8xi1>, vector<8x8xf32>
    %cst_364 = arith.constant 1.57079637 : f32
    %1107 = vector.broadcast %cst_364 : f32 to vector<8x8xf32>
    %1108 = arith.subf %1107, %1106 : vector<8x8xf32>
    %1109 = arith.select %1069, %1108, %1106 : vector<8x8xi1>, vector<8x8xf32>
    %cst_365 = arith.constant 0.000000e+00 : f32
    %1110 = vector.broadcast %cst_365 : f32 to vector<8x8xf32>
    %1111 = arith.cmpf olt, %1066, %1110 : vector<8x8xf32>
    %cst_366 = arith.constant 0.000000e+00 : f32
    %1112 = vector.broadcast %cst_366 : f32 to vector<8x8xf32>
    %1113 = arith.subf %1112, %1109 : vector<8x8xf32>
    %1114 = arith.select %1111, %1113, %1109 : vector<8x8xi1>, vector<8x8xf32>
    %c0_367 = arith.constant 0 : index
    %c0_368 = arith.constant 0 : index
    %1115 = vector.load %arg7[%c0_367, %c0_368] : memref<8x4xf32, #tpu.memory_space<vmem>>, vector<8x4xf32>
    %cst_369 = arith.constant dense<0.000000e+00> : vector<8x4xf32>
    %1116 = tpu.matmul %1114, %1115, %cst_369 {dimension_numbers = #tpu.dot_dimension_numbers<[1], [0], [0], [1], [0, 0, 1, 1], [], []>} : vector<8x8xf32>, vector<8x4xf32>, vector<8x4xf32> -> vector<8x4xf32>
    %1117 = math.tanh %1116 : vector<8x4xf32>
    %c0_370 = arith.constant 0 : index
    %c0_371 = arith.constant 0 : index
    %1118 = vector.load %arg8[%c0_370, %c0_371] : memref<4x1xf32, #tpu.memory_space<vmem>>, vector<4x1xf32>
    %cst_372 = arith.constant dense<0.000000e+00> : vector<8x1xf32>
    %1119 = tpu.matmul %1117, %1118, %cst_372 {dimension_numbers = #tpu.dot_dimension_numbers<[1], [0], [0], [1], [0, 0, 1, 1], [], []>} : vector<8x4xf32>, vector<4x1xf32>, vector<8x1xf32> -> vector<8x1xf32>
    %c0_373 = arith.constant 0 : index
    %c0_374 = arith.constant 0 : index
    %1120 = vector.load %arg9[%c0_373, %c0_374] : memref<1x1xf32, #tpu.memory_space<vmem>>, vector<1x1xf32>
    %1121 = vector.broadcast %1120 : vector<1x1xf32> to vector<8x1xf32>
    %1122 = arith.addf %1119, %1121 : vector<8x1xf32>
    %1123 = vector.extract_strided_slice %1063 {offsets = [0, 0], sizes = [8, 8], strides = [1, 1]} : vector<8x12xf32> to vector<8x8xf32>
    %1124 = tpu.concatenate %1123, %1122 in 1 : vector<8x8xf32>, vector<8x1xf32> -> vector<8x9xf32>
    %c0_375 = arith.constant 0 : index
    %c0_376 = arith.constant 0 : index
    %1125 = vector.load %arg10[%c0_375, %c0_376] : memref<8x9xf32, #tpu.memory_space<vmem>>, vector<8x9xf32>
    tpu.vector_store %arg10[%c0_375, %c0_376], %1124 {strides = array<i32>} : memref<8x9xf32, #tpu.memory_space<vmem>>, vector<8x9xf32>,
    return
  }
  func.func @transform_0(%arg0: i32) -> (i32, i32) {
    %c0_i32 = arith.constant 0 : i32
    %c0_i32_0 = arith.constant 0 : i32
    return %arg0, %c0_i32 : i32, i32
  }
  func.func @transform_1(%arg0: i32) -> (i32, i32) {
    %c0_i32 = arith.constant 0 : i32
    %c0_i32_0 = arith.constant 0 : i32
    %c0_i32_1 = arith.constant 0 : i32
    return %c0_i32, %c0_i32_0 : i32, i32
  }
  func.func @transform_2(%arg0: i32) -> (i32, i32) {
    %c0_i32 = arith.constant 0 : i32
    %c0_i32_0 = arith.constant 0 : i32
    %c0_i32_1 = arith.constant 0 : i32
    return %c0_i32, %c0_i32_0 : i32, i32
  }
  func.func @transform_3(%arg0: i32) -> (i32, i32) {
    %c0_i32 = arith.constant 0 : i32
    %c0_i32_0 = arith.constant 0 : i32
    %c0_i32_1 = arith.constant 0 : i32
    return %c0_i32, %c0_i32_0 : i32, i32
  }
  func.func @transform_4(%arg0: i32) -> (i32, i32) {
    %c0_i32 = arith.constant 0 : i32
    %c0_i32_0 = arith.constant 0 : i32
    %c0_i32_1 = arith.constant 0 : i32
    return %c0_i32, %c0_i32_0 : i32, i32
  }
  func.func @transform_5(%arg0: i32) -> (i32, i32) {
    %c0_i32 = arith.constant 0 : i32
    %c0_i32_0 = arith.constant 0 : i32
    %c0_i32_1 = arith.constant 0 : i32
    return %c0_i32, %c0_i32_0 : i32, i32
  }
  func.func @transform_6(%arg0: i32) -> (i32, i32) {
    %c0_i32 = arith.constant 0 : i32
    %c0_i32_0 = arith.constant 0 : i32
    %c0_i32_1 = arith.constant 0 : i32
    return %c0_i32, %c0_i32_0 : i32, i32
  }
  func.func @transform_7(%arg0: i32) -> (i32, i32) {
    %c0_i32 = arith.constant 0 : i32
    %c0_i32_0 = arith.constant 0 : i32
    %c0_i32_1 = arith.constant 0 : i32
    return %c0_i32, %c0_i32_0 : i32, i32
  }
  func.func @transform_8(%arg0: i32) -> (i32, i32) {
    %c0_i32 = arith.constant 0 : i32
    %c0_i32_0 = arith.constant 0 : i32
    %c0_i32_1 = arith.constant 0 : i32
    return %c0_i32, %c0_i32_0 : i32, i32
  }
  func.func @transform_9(%arg0: i32) -> (i32, i32) {
    %c0_i32 = arith.constant 0 : i32
    %c0_i32_0 = arith.constant 0 : i32
    return %arg0, %c0_i32 : i32, i32
  }
}

</mosaic_0001>

<bundles_post_ra>
// kernel: tpu_custom_call.1
= control target key start
LH: loop header
LB: loop body
LE: loop exit
PB: predicated region body
PF: predicated region fallthrough
CT: control target
= control target key end

     0   :  { %s2913_s0 = inlined_call_operand.vmem [shape: f32[8,4], index: 0, kind: input, shape index: {}]   ;;  %s2914_s1 = inlined_call_operand.vmem [shape: f32[1,4], index: 1, kind: input, shape index: {}]   ;;  %s2915_s2 = inlined_call_operand.vmem [shape: f32[1,4], index: 2, kind: input, shape index: {}]   ;;  %s2916_s3 = inlined_call_operand.vmem [shape: f32[8,16], index: 3, kind: input, shape index: {}]   ;;  %s2917_s4 = inlined_call_operand.vmem [shape: f32[8,16], index: 4, kind: input, shape index: {}]   ;;  %s2918_s5 = inlined_call_operand.vmem [shape: f32[8,4], index: 5, kind: input, shape index: {}]   ;;  %s2919_s6 = inlined_call_operand.vmem [shape: f32[8,4], index: 6, kind: input, shape index: {}]   ;;  %s2920_s7 = inlined_call_operand.vmem [shape: f32[4,1], index: 7, kind: input, shape index: {}]   ;;  %s2921_s8 = inlined_call_operand.<no memory space> [shape: f32[1,1], index: 8, kind: input, shape index: {}]   ;;  %s2922_s9 = inlined_call_operand.hbm [shape: f32[8,9], index: 9, kind: output, shape index: {}]  }
   0x1   :  { %v14_v0 = vstv %s2921_s8 }
   0x2   :  { %15 = vst [vmem:[#allocation6] sm:$0x1] %v14_v0 }
   0x3   :  { %v44_v1 = vld [vmem:[%s2913_s0] sm:$0xff]  ;;  %vm40_vm0 = vcmask 24576  }
   0x4   :  { %v39_v2 = vld [vmem:[%s2914_s1] sm:$0x1]  ;;  %v45_v3 = vmul.f32 %v44_v1, %v44_v1 }
   0x5   :  { %41 = vst.msk [vmem:[#allocation2] sm:$0x1] %vm40_vm0, %v39_v2 }
   0x6   :  { %16 = vsyncpa [#allocation8], 0  ;;  %s2413_s15 = smov 4   ;;  %v111_v7 = vld [vmem:[%s2916_s3] sm:$0xff]  ;;  %vm50_vm1 = vcmask 31744   ;;  %s2414_s18 = smov 124  }
   0x7   :  { %47 = vrot.lane.b32.xlu0 %v45_v3, %s2413_s15  ;;  %131 = vmatpush.msra.mxu0 %v111_v7  ;;  %v2521_v0 = vld [vmem:[%s2917_s4] sm:$0xff]  ;;  %s2416_s19 = smov 116   ;;  %s2417_s20 = smov 120  }
   0x8   :  { %227 = vmatpush.msra.mxu1 %v2521_v0  ;;  %461 = vmatpush.msra.mxu3 %v2521_v0  ;;  %s2418_s28 = smov 8   ;;  %s2419_s29 = smov [#allocation7]  }
   0x9   :  { %s2150_s30 = sshll.u32 %s2419_s29, 4  ;;  %s2152_s12 = sshll.u32 %s2922_s9, 4  ;;  %s2151_s30 = int_to_ptr.vmem [resolvable:$true] %s2150_s30  ;;  %s2153_s12 = int_to_ptr.hbm [resolvable:$true] %s2152_s12 }
   0xa   :  { %694 = vmatpush.msrb.mxu1 %v2521_v0  ;;  %927 = vmatpush.msrb.mxu3 %v2521_v0 }
   0xc   :  { %v140_v4 = vld [vmem:[#allocation2] sm:$0x1] }
   0xd   :  { %v142_v5 = vmul.f32 %v140_v4, %v140_v4 }
   0xf   :  { %v144_v6 = vperm.slane %v142_v5, 0 }
  0x11   :  { %145 = vrot.lane.b32.xlu0 %v144_v6, %s2413_s15 }
  0x79   :  { %v48_v8 = vpop.permute.xlu0 %47 }
  0x7a   :  { %v2486_v9 = vsel %vm50_vm1, %v44_v1, %v48_v8 }
  0x7b   :  { %v2489_v10 = vand.u32 2147483647, %v2486_v9 }
  0x7d   :  { %v54_v11 = vmax.f32 %v2489_v10, 1e-30  ;;  %vm53_vm6 = vcmp.gt.f32.partialorder %v2489_v10, 1.0 }
  0x7f   :  { %2215 = vrcp.f32 %v54_v11  ;;  %v66_v19 = vand.u32 2147483648, %v54_v11  ;;  %v64_v21 = vand.u32 2147483647, %v54_v11  ;;  %vm60_vm3 = vweird.f32 %v54_v11 }
  0x81   :  { %v67_v23 = vor.u32 1.1754944e-38, %v66_v19  ;;  %vm65_vm5 = vcmp.eq.f32.partialorder %v64_v21, 8.507059e+37 }
  0x83   :  { %v146_v12 = vpop.permute.xlu0 %145 }
  0x84   :  { %v2493_v13 = vsel %vm50_vm1, %v140_v4, %v146_v12 }
  0x85   :  { %v2216_v14 = vpop.eup %2215  ;;  %v2496_v15 = vand.u32 2147483647, %v2493_v13 }
  0x86   :  { %v56_v16 = vmul.f32 %v2216_v14, %v54_v11  ;;  %vm61_vm2 = vweird.f32 %v2216_v14 }
  0x87   :  { %v151_v17 = vmax.f32 %v2496_v15, 1e-30  ;;  %vm62_vm4 = vmor %vm60_vm3, %vm61_vm2  ;;  %vm150_vm11 = vcmp.gt.f32.partialorder %v2496_v15, 1.0 }
  0x88   :  { %v57_v18 = vsub.f32 1.0, %v56_v16 }
  0x89   :  { %2217 = vrcp.f32 %v151_v17  ;;  %v163_v31 = vand.u32 2147483648, %v151_v17  ;;  %v161_v33 = vand.u32 2147483647, %v151_v17  ;;  %vm157_vm8 = vweird.f32 %v151_v17 }
  0x8a   :  { %v58_v20 = vmul.f32 %v2216_v14, %v57_v18 }
  0x8b   :  { %v164_v35 = vor.u32 1.1754944e-38, %v163_v31  ;;  %vm162_vm10 = vcmp.eq.f32.partialorder %v161_v33, 8.507059e+37 }
  0x8c   :  { %v59_v22 = vadd.f32 %v2216_v14, %v58_v20 }
  0x8e   :  { %v63_v24 = vsel %vm62_vm4, %v2216_v14, %v59_v22 }
  0x8f   :  { %v2218_v25 = vpop.eup %2217  ;;  %v68_v26 = vsel %vm65_vm5, %v67_v23, %v63_v24 }
  0x90   :  { %v153_v27 = vmul.f32 %v2218_v25, %v151_v17  ;;  %v2503_v28 = vsel %vm53_vm6, %v68_v26, %v2489_v10  ;;  %vm158_vm7 = vweird.f32 %v2218_v25 }
  0x91   :  { %v73_v29 = vadd.f32 1.0, %v2503_v28  ;;  %vm159_vm9 = vmor %vm157_vm8, %vm158_vm7  ;;  %v2161_v48 = vadd.f32 -1.0, %v2503_v28  ;;  %vm71_vm2 = vcmp.gt.f32.partialorder %v2503_v28, 0.41421357 }
  0x92   :  { %v154_v30 = vsub.f32 1.0, %v153_v27 }
  0x93   :  { %2219 = vrcp.f32 %v73_v29  ;;  %v85_v43 = vand.u32 2147483648, %v73_v29  ;;  %v83_v45 = vand.u32 2147483647, %v73_v29  ;;  %vm79_vm13 = vweird.f32 %v73_v29 }
  0x94   :  { %v155_v32 = vmul.f32 %v2218_v25, %v154_v30 }
  0x95   :  { %v86_v47 = vor.u32 1.1754944e-38, %v85_v43  ;;  %vm84_vm15 = vcmp.eq.f32.partialorder %v83_v45, 8.507059e+37 }
  0x96   :  { %v156_v34 = vadd.f32 %v2218_v25, %v155_v32 }
  0x98   :  { %v160_v36 = vsel %vm159_vm9, %v2218_v25, %v156_v34  ;;  %vm112_vm9 = vcmask 64512  }
  0x99   :  { %v2220_v37 = vpop.eup %2219  ;;  %v165_v38 = vsel %vm162_vm10, %v164_v35, %v160_v36  ;;  %vm108_vm10 = vcmp.lt.f32.partialorder %v2486_v9, 0.0 }
  0x9a   :  { %v75_v39 = vmul.f32 %v2220_v37, %v73_v29  ;;  %v2510_v40 = vsel %vm150_vm11, %v165_v38, %v2496_v15  ;;  %vm80_vm12 = vweird.f32 %v2220_v37 }
  0x9b   :  { %v170_v41 = vadd.f32 1.0, %v2510_v40  ;;  %vm81_vm14 = vmor %vm79_vm13, %vm80_vm12  ;;  %v2163_v1 = vadd.f32 -1.0, %v2510_v40  ;;  %vm168_vm8 = vcmp.gt.f32.partialorder %v2510_v40, 0.41421357  ;;  %vm136_vm12 = vcmask 130048  }
  0x9c   :  { %v76_v42 = vsub.f32 1.0, %v75_v39 }
  0x9d   :  { %2221 = vrcp.f32 %v170_v41  ;;  %v182_v57 = vand.u32 2147483648, %v170_v41  ;;  %v180_v59 = vand.u32 2147483647, %v170_v41  ;;  %vm176_vm4 = vweird.f32 %v170_v41 }
  0x9e   :  { %v77_v44 = vmul.f32 %v2220_v37, %v76_v42 }
  0x9f   :  { %v183_v63 = vor.u32 1.1754944e-38, %v182_v57  ;;  %vm181_vm7 = vcmp.eq.f32.partialorder %v180_v59, 8.507059e+37 }
  0xa0   :  { %v78_v46 = vadd.f32 %v2220_v37, %v77_v44 }
  0xa2   :  { %v82_v49 = vsel %vm81_vm14, %v2220_v37, %v78_v46 }
  0xa3   :  { %v2222_v50 = vpop.eup %2221  ;;  %v87_v51 = vsel %vm84_vm15, %v86_v47, %v82_v49 }
  0xa4   :  { %v88_v52 = vmul.f32 %v2161_v48, %v87_v51  ;;  %v172_v53 = vmul.f32 %v2222_v50, %v170_v41  ;;  %vm177_vm3 = vweird.f32 %v2222_v50 }
  0xa5   :  { %vm178_vm5 = vmor %vm176_vm4, %vm177_vm3 }
  0xa6   :  { %v89_v54 = vsel %vm71_vm2, %v88_v52, %v2503_v28  ;;  %v173_v55 = vsub.f32 1.0, %v172_v53 }
  0xa7   :  { %v90_v56 = vmul.f32 %v89_v54, %v89_v54 }
  0xa8   :  { %v174_v58 = vmul.f32 %v2222_v50, %v173_v55 }
  0xa9   :  { %v91_v60 = vmul.f32 0.07692308, %v90_v56 }
  0xaa   :  { %v175_v61 = vadd.f32 %v2222_v50, %v174_v58 }
  0xab   :  { %v92_v62 = vsub.f32 0.09090909, %v91_v60 }
  0xac   :  { %v179_v2 = vsel %vm178_vm5, %v2222_v50, %v175_v61 }
  0xad   :  { %v93_v3 = vmul.f32 %v92_v62, %v90_v56  ;;  %v184_v4 = vsel %vm181_vm7, %v183_v63, %v179_v2 }
  0xae   :  { %v185_v5 = vmul.f32 %v2163_v1, %v184_v4 }
  0xaf   :  { %v94_v6 = vsub.f32 0.11111111, %v93_v3 }
  0xb0   :  { %v186_v7 = vsel %vm168_vm8, %v185_v5, %v2510_v40  ;;  %v42_v40 = vld [vmem:[%s2915_s2] sm:$0x1]  ;;  %s2415_s2 = smov 12  }
  0xb1   :  { %v95_v8 = vmul.f32 %v94_v6, %v90_v56  ;;  %v187_v11 = vmul.f32 %v186_v7, %v186_v7  ;;  %43 = vst.msk [vmem:[#allocation3] sm:$0x1] %vm40_vm0, %v42_v40 }
  0xb3   :  { %v96_v12 = vsub.f32 0.14285715, %v95_v8  ;;  %v188_v14 = vmul.f32 0.07692308, %v187_v11 }
  0xb5   :  { %v97_v16 = vmul.f32 %v96_v12, %v90_v56  ;;  %v189_v17 = vsub.f32 0.09090909, %v188_v14  ;;  %v2565_v14 = vld [vmem:[%s2918_s5] sm:$0xff] }
  0xb6   :  { %359 = vmatpush.msra.mxu2 %v2565_v14  ;;  %593 = vmatpush.msrb.mxu0 %v2565_v14 }
  0xb7   :  { %v98_v18 = vsub.f32 0.2, %v97_v16  ;;  %v190_v19 = vmul.f32 %v189_v17, %v187_v11 }
  0xb8   :  { %v141_v2 = vld [vmem:[#allocation3] sm:$0x1]  ;;  %826 = vmatpush.msrb.mxu2 %v2565_v14 }
  0xb9   :  { %v99_v20 = vmul.f32 %v98_v18, %v90_v56  ;;  %v191_v21 = vsub.f32 0.11111111, %v190_v19 }
  0xbb   :  { %v100_v22 = vsub.f32 0.33333334, %v99_v20  ;;  %v192_v23 = vmul.f32 %v191_v21, %v187_v11 }
  0xbd   :  { %v101_v24 = vmul.f32 %v100_v22, %v90_v56  ;;  %v193_v25 = vsub.f32 0.14285715, %v192_v23 }
  0xbf   :  { %v102_v26 = vsub.f32 1.0, %v101_v24  ;;  %v194_v27 = vmul.f32 %v193_v25, %v187_v11 }
  0xc1   :  { %v103_v29 = vmul.f32 %v102_v26, %v89_v54  ;;  %v195_v30 = vsub.f32 0.2, %v194_v27 }
  0xc3   :  { %v104_v31 = vadd.f32 0.7853982, %v103_v29  ;;  %v196_v32 = vmul.f32 %v195_v30, %v187_v11 }
  0xc5   :  { %v105_v33 = vsel %vm71_vm2, %v104_v31, %v103_v29  ;;  %v197_v34 = vsub.f32 0.33333334, %v196_v32 }
  0xc6   :  { %v106_v35 = vsub.f32 1.5707964, %v105_v33 }
  0xc7   :  { %v198_v36 = vmul.f32 %v197_v34, %v187_v11 }
  0xc8   :  { %v107_v37 = vsel %vm53_vm6, %v106_v35, %v105_v33  ;;  %vm205_vm6 = vcmp.lt.f32.partialorder %v2493_v13, 0.0 }
  0xc9   :  { %v109_v38 = vsub.f32 0.0, %v107_v37  ;;  %v199_v39 = vsub.f32 1.0, %v198_v36 }
  0xcb   :  { %v110_v41 = vsel %vm108_vm10, %v109_v38, %v107_v37  ;;  %v200_v42 = vmul.f32 %v199_v39, %v186_v7 }
  0xcc   :  { %2162 = vmatmul.msk.f32.vlgmr.msra.gmra.mxu0 %vm112_vm9, %v110_v41 }
  0xcd   :  { %v201_v43 = vadd.f32 0.7853982, %v200_v42  ;;  %1059 = vmatpush.msra.mxu0 %v2565_v14 }
  0xcf   :  { %v202_v28 = vsel %vm168_vm8, %v201_v43, %v200_v42 }
  0xd0   :  { %v203_v44 = vsub.f32 1.5707964, %v202_v28 }
  0xd2   :  { %v204_v45 = vsel %vm150_vm11, %v203_v44, %v202_v28 }
  0xd3   :  { %v206_v46 = vsub.f32 0.0, %v204_v45 }
  0xd5   :  { %v207_v10 = vsel %vm205_vm6, %v206_v46, %v204_v45 }
  0xd6   :  { %2164 = vmatmul.msk.f32.vlgmr.msra.gmra.mxu1 %vm112_vm9, %v207_v10 }
  0xd7   :  { %1160 = vmatpush.msra.mxu1 %v2521_v0 }
 0x149   :  { %v133_v9 = vpop.f32.mrf.mxu0 }
 0x14a   :  { %137 = vst.msk [vmem:[#allocation4] sm:$0xff] %vm136_vm12, %v133_v9 }
 0x151   :  { %v208_v47 = vld [vmem:[#allocation4] sm:$0x1] }
 0x153   :  { %v229_v15 = vpop.f32.mrf.mxu1 }
 0x154   :  { %v232_v48 = vadd.f32 %v229_v15, %v208_v47 }
 0x156   :  { %2223 = vtanh.f32 %v232_v48 }
 0x15c   :  { %v2224_v49 = vpop.eup %2223 }
 0x15d   :  { %2225 = vtanh.f32 %v2224_v49  ;;  %v2165_v50 = vmul.f32 -1.442695, %v2224_v49 }
 0x15f   :  { %2227 = vpow2.f32 %v2165_v50 }
 0x163   :  { %v2226_v13 = vpop.eup %2225 }
 0x164   :  { %256 = vrot.lane.b32.xlu1 %v2226_v13, %s2414_s18 }
 0x165   :  { %v2228_v51 = vpop.eup %2227 }
 0x166   :  { %v237_v52 = vadd.f32 1.0, %v2228_v51 }
 0x168   :  { %2229 = vrcp.f32 %v237_v52  ;;  %v249_v58 = vand.u32 2147483648, %v237_v52  ;;  %vm243_vm13 = vweird.f32 %v237_v52  ;;  %v247_v59 = vand.u32 2147483647, %v237_v52 }
 0x16a   :  { %v250_v61 = vor.u32 1.1754944e-38, %v249_v58  ;;  %vm248_vm15 = vcmp.eq.f32.partialorder %v247_v59, 8.507059e+37 }
 0x16e   :  { %v2230_v53 = vpop.eup %2229 }
 0x16f   :  { %v239_v54 = vmul.f32 %v2230_v53, %v237_v52  ;;  %vm244_vm11 = vweird.f32 %v2230_v53 }
 0x170   :  { %vm245_vm14 = vmor %vm243_vm13, %vm244_vm11 }
 0x171   :  { %v240_v55 = vsub.f32 1.0, %v239_v54 }
 0x173   :  { %v241_v56 = vmul.f32 %v2230_v53, %v240_v55 }
 0x175   :  { %v242_v57 = vadd.f32 %v2230_v53, %v241_v56 }
 0x177   :  { %v246_v60 = vsel %vm245_vm14, %v2230_v53, %v242_v57 }
 0x178   :  { %v251_v63 = vsel %vm248_vm15, %v250_v61, %v246_v60 }
 0x179   :  { %v254_v3 = vmul.f32 %v251_v63, %v141_v2 }
 0x1d6   :  { %v257_v62 = vpop.permute.xlu1 %256 }
 0x1d7   :  { %v259_v1 = vmul.f32 %v257_v62, %v251_v63 }
 0x1d9   :  { %261 = vrot.lane.b32.xlu1 %v259_v1, %s2414_s18 }
 0x24b   :  { %v262_v4 = vpop.permute.xlu1 %261 }
 0x24c   :  { %v2551_v5 = vadd.f32 %v262_v4, %v254_v3 }
 0x24e   :  { %2231 = vtanh.f32 %v2551_v5 }
 0x254   :  { %v2232_v6 = vpop.eup %2231 }
 0x255   :  { %v267_v7 = vperm.slane %v2232_v6, 0 }
 0x257   :  { %268 = vrot.lane.b32.xlu2 %v267_v7, %s2415_s2 }
 0x2b1   :  { %v269_v8 = vpop.permute.xlu2 %268 }
 0x2b2   :  { %v2555_v11 = vmul.f32 %v269_v8, %v251_v63 }
 0x2b4   :  { %274 = vrot.lane.b32.xlu2 %v2555_v11, %s2416_s19  ;;  %v272_v12 = vmul.f32 %v2555_v11, %v2555_v11 }
 0x2b6   :  { %278 = vrot.lane.b32.xlu0 %v272_v12, %s2417_s20 }
 0x30e   :  { %v275_v16 = vpop.permute.xlu2 %274 }
 0x328   :  { %v279_v17 = vpop.permute.xlu0 %278 }
 0x329   :  { %v281_v18 = vsel %vm50_vm1, %v275_v16, %v279_v17 }
 0x32a   :  { %v282_v19 = vand.u32 2147483647, %v281_v18  ;;  %vm338_vm13 = vcmp.lt.f32.partialorder %v281_v18, 0.0 }
 0x32c   :  { %v284_v20 = vmax.f32 %v282_v19, 1e-30  ;;  %vm283_vm7 = vcmp.gt.f32.partialorder %v282_v19, 1.0 }
 0x32e   :  { %2233 = vrcp.f32 %v284_v20  ;;  %v296_v24 = vand.u32 2147483648, %v284_v20  ;;  %v294_v26 = vand.u32 2147483647, %v284_v20  ;;  %vm290_vm3 = vweird.f32 %v284_v20 }
 0x330   :  { %v297_v29 = vor.u32 1.1754944e-38, %v296_v24  ;;  %vm295_vm5 = vcmp.eq.f32.partialorder %v294_v26, 8.507059e+37 }
 0x334   :  { %v2234_v21 = vpop.eup %2233 }
 0x335   :  { %v286_v22 = vmul.f32 %v2234_v21, %v284_v20  ;;  %vm291_vm2 = vweird.f32 %v2234_v21 }
 0x336   :  { %vm292_vm4 = vmor %vm290_vm3, %vm291_vm2 }
 0x337   :  { %v287_v23 = vsub.f32 1.0, %v286_v22 }
 0x339   :  { %v288_v25 = vmul.f32 %v2234_v21, %v287_v23 }
 0x33b   :  { %v289_v27 = vadd.f32 %v2234_v21, %v288_v25 }
 0x33d   :  { %v293_v30 = vsel %vm292_vm4, %v2234_v21, %v289_v27 }
 0x33e   :  { %v298_v31 = vsel %vm295_vm5, %v297_v29, %v293_v30 }
 0x33f   :  { %v300_v32 = vsel %vm283_vm7, %v298_v31, %v282_v19 }
 0x340   :  { %v303_v33 = vadd.f32 1.0, %v300_v32  ;;  %v2166_v43 = vadd.f32 -1.0, %v300_v32  ;;  %vm301_vm11 = vcmp.gt.f32.partialorder %v300_v32, 0.41421357 }
 0x342   :  { %2235 = vrcp.f32 %v303_v33  ;;  %v315_v37 = vand.u32 2147483648, %v303_v33  ;;  %v313_v39 = vand.u32 2147483647, %v303_v33  ;;  %vm309_vm10 = vweird.f32 %v303_v33 }
 0x344   :  { %v316_v42 = vor.u32 1.1754944e-38, %v315_v37  ;;  %vm314_vm12 = vcmp.eq.f32.partialorder %v313_v39, 8.507059e+37 }
 0x348   :  { %v2236_v34 = vpop.eup %2235 }
 0x349   :  { %v305_v35 = vmul.f32 %v2236_v34, %v303_v33  ;;  %vm310_vm8 = vweird.f32 %v2236_v34 }
 0x34a   :  { %vm311_vm6 = vmor %vm309_vm10, %vm310_vm8 }
 0x34b   :  { %v306_v36 = vsub.f32 1.0, %v305_v35 }
 0x34d   :  { %v307_v38 = vmul.f32 %v2236_v34, %v306_v36 }
 0x34f   :  { %v308_v41 = vadd.f32 %v2236_v34, %v307_v38 }
 0x351   :  { %v312_v28 = vsel %vm311_vm6, %v2236_v34, %v308_v41 }
 0x352   :  { %v317_v44 = vsel %vm314_vm12, %v316_v42, %v312_v28 }
 0x353   :  { %v318_v45 = vmul.f32 %v2166_v43, %v317_v44 }
 0x355   :  { %v319_v46 = vsel %vm301_vm11, %v318_v45, %v300_v32 }
 0x356   :  { %v320_v10 = vmul.f32 %v319_v46, %v319_v46 }
 0x358   :  { %v321_v9 = vmul.f32 0.07692308, %v320_v10 }
 0x35a   :  { %v322_v40 = vsub.f32 0.09090909, %v321_v9 }
 0x35c   :  { %v323_v47 = vmul.f32 %v322_v40, %v320_v10 }
 0x35e   :  { %v324_v15 = vsub.f32 0.11111111, %v323_v47 }
 0x360   :  { %v325_v48 = vmul.f32 %v324_v15, %v320_v10 }
 0x362   :  { %v326_v49 = vsub.f32 0.14285715, %v325_v48 }
 0x364   :  { %v327_v13 = vmul.f32 %v326_v49, %v320_v10 }
 0x366   :  { %v328_v50 = vsub.f32 0.2, %v327_v13 }
 0x368   :  { %v329_v51 = vmul.f32 %v328_v50, %v320_v10 }
 0x36a   :  { %v330_v52 = vsub.f32 0.33333334, %v329_v51 }
 0x36c   :  { %v331_v53 = vmul.f32 %v330_v52, %v320_v10 }
 0x36e   :  { %v332_v54 = vsub.f32 1.0, %v331_v53 }
 0x370   :  { %v333_v55 = vmul.f32 %v332_v54, %v319_v46  ;;  %v442_v54 = vld [vmem:[#allocation4 + $0x1] sm:$0x1] }
 0x372   :  { %v334_v56 = vadd.f32 0.7853982, %v333_v55 }
 0x374   :  { %v335_v57 = vsel %vm301_vm11, %v334_v56, %v333_v55 }
 0x375   :  { %v336_v58 = vsub.f32 1.5707964, %v335_v57 }
 0x377   :  { %v337_v59 = vsel %vm283_vm7, %v336_v58, %v335_v57 }
 0x378   :  { %v339_v60 = vsub.f32 0.0, %v337_v59 }
 0x37a   :  { %v340_v61 = vsel %vm338_vm13, %v339_v60, %v337_v59 }
 0x37b   :  { %2167 = vmatmul.msk.f32.vlgmr.msra.gmra.mxu2 %vm112_vm9, %v340_v61 }
 0x37c   :  { %1292 = vmatpush.msra.mxu2 %v2565_v14 }
 0x3fe   :  { %v361_v62 = vpop.f32.mrf.mxu2 }
 0x3ff   :  { %2237 = vtanh.f32 %v361_v62 }
 0x405   :  { %v2578_v63 = vpop.eup %2237 }
 0x406   :  { %v377_v1 = vmul.f32 %v2578_v63, %v2578_v63 }
 0x408   :  { %379 = vrot.lane.b32.xlu1 %v377_v1, %s2413_s15 }
 0x47a   :  { %v380_v2 = vpop.permute.xlu1 %379 }
 0x47b   :  { %v382_v3 = vsel %vm50_vm1, %v2578_v63, %v380_v2 }
 0x47c   :  { %v383_v4 = vand.u32 2147483647, %v382_v3  ;;  %vm439_vm12 = vcmp.lt.f32.partialorder %v382_v3, 0.0 }
 0x47e   :  { %v385_v6 = vmax.f32 %v383_v4, 1e-30  ;;  %vm384_vm4 = vcmp.gt.f32.partialorder %v383_v4, 1.0 }
 0x480   :  { %2239 = vrcp.f32 %v385_v6  ;;  %v397_v16 = vand.u32 2147483648, %v385_v6  ;;  %v395_v18 = vand.u32 2147483647, %v385_v6  ;;  %vm391_vm15 = vweird.f32 %v385_v6 }
 0x482   :  { %v398_v20 = vor.u32 1.1754944e-38, %v397_v16  ;;  %vm396_vm3 = vcmp.eq.f32.partialorder %v395_v18, 8.507059e+37 }
 0x486   :  { %v2240_v7 = vpop.eup %2239 }
 0x487   :  { %v387_v8 = vmul.f32 %v2240_v7, %v385_v6  ;;  %vm392_vm14 = vweird.f32 %v2240_v7 }
 0x488   :  { %vm393_vm2 = vmor %vm391_vm15, %vm392_vm14 }
 0x489   :  { %v388_v12 = vsub.f32 1.0, %v387_v8 }
 0x48b   :  { %v389_v17 = vmul.f32 %v2240_v7, %v388_v12 }
 0x48d   :  { %v390_v19 = vadd.f32 %v2240_v7, %v389_v17 }
 0x48f   :  { %v394_v21 = vsel %vm393_vm2, %v2240_v7, %v390_v19 }
 0x490   :  { %v399_v22 = vsel %vm396_vm3, %v398_v20, %v394_v21 }
 0x491   :  { %v401_v23 = vsel %vm384_vm4, %v399_v22, %v383_v4 }
 0x492   :  { %v404_v24 = vadd.f32 1.0, %v401_v23  ;;  %v2168_v34 = vadd.f32 -1.0, %v401_v23  ;;  %vm402_vm6 = vcmp.gt.f32.partialorder %v401_v23, 0.41421357 }
 0x494   :  { %2241 = vrcp.f32 %v404_v24  ;;  %v416_v29 = vand.u32 2147483648, %v404_v24  ;;  %v414_v31 = vand.u32 2147483647, %v404_v24  ;;  %vm410_vm7 = vweird.f32 %v404_v24 }
 0x496   :  { %v417_v33 = vor.u32 1.1754944e-38, %v416_v29  ;;  %vm415_vm10 = vcmp.eq.f32.partialorder %v414_v31, 8.507059e+37 }
 0x49a   :  { %v2242_v25 = vpop.eup %2241 }
 0x49b   :  { %v406_v26 = vmul.f32 %v2242_v25, %v404_v24  ;;  %vm411_vm5 = vweird.f32 %v2242_v25 }
 0x49c   :  { %vm412_vm8 = vmor %vm410_vm7, %vm411_vm5 }
 0x49d   :  { %v407_v27 = vsub.f32 1.0, %v406_v26 }
 0x49f   :  { %v408_v30 = vmul.f32 %v2242_v25, %v407_v27 }
 0x4a1   :  { %v409_v32 = vadd.f32 %v2242_v25, %v408_v30 }
 0x4a3   :  { %v413_v35 = vsel %vm412_vm8, %v2242_v25, %v409_v32 }
 0x4a4   :  { %v418_v36 = vsel %vm415_vm10, %v417_v33, %v413_v35 }
 0x4a5   :  { %v419_v37 = vmul.f32 %v2168_v34, %v418_v36 }
 0x4a7   :  { %v420_v38 = vsel %vm402_vm6, %v419_v37, %v401_v23 }
 0x4a8   :  { %v421_v39 = vmul.f32 %v420_v38, %v420_v38 }
 0x4aa   :  { %v422_v41 = vmul.f32 0.07692308, %v421_v39 }
 0x4ac   :  { %v423_v42 = vsub.f32 0.09090909, %v422_v41 }
 0x4ae   :  { %v424_v43 = vmul.f32 %v423_v42, %v421_v39 }
 0x4b0   :  { %v425_v28 = vsub.f32 0.11111111, %v424_v43 }
 0x4b2   :  { %v426_v44 = vmul.f32 %v425_v28, %v421_v39 }
 0x4b4   :  { %v427_v45 = vsub.f32 0.14285715, %v426_v44 }
 0x4b6   :  { %v428_v46 = vmul.f32 %v427_v45, %v421_v39 }
 0x4b8   :  { %v429_v10 = vsub.f32 0.2, %v428_v46 }
 0x4ba   :  { %v430_v9 = vmul.f32 %v429_v10, %v421_v39 }
 0x4bc   :  { %v431_v40 = vsub.f32 0.33333334, %v430_v9 }
 0x4be   :  { %v432_v47 = vmul.f32 %v431_v40, %v421_v39 }
 0x4c0   :  { %v433_v15 = vsub.f32 1.0, %v432_v47 }
 0x4c2   :  { %v434_v48 = vmul.f32 %v433_v15, %v420_v38 }
 0x4c4   :  { %v435_v49 = vadd.f32 0.7853982, %v434_v48 }
 0x4c6   :  { %v436_v13 = vsel %vm402_vm6, %v435_v49, %v434_v48 }
 0x4c7   :  { %v437_v50 = vsub.f32 1.5707964, %v436_v13 }
 0x4c9   :  { %v438_v51 = vsel %vm384_vm4, %v437_v50, %v436_v13 }
 0x4ca   :  { %v440_v52 = vsub.f32 0.0, %v438_v51 }
 0x4cc   :  { %v441_v53 = vsel %vm439_vm12, %v440_v52, %v438_v51 }
 0x4cd   :  { %2169 = vmatmul.msk.f32.vlgmr.msra.gmra.mxu3 %vm112_vm9, %v441_v53 }
 0x4ce   :  { %1393 = vmatpush.msra.mxu3 %v2521_v0 }
 0x550   :  { %v463_v55 = vpop.f32.mrf.mxu3 }
 0x551   :  { %v466_v56 = vadd.f32 %v463_v55, %v442_v54 }
 0x553   :  { %2243 = vtanh.f32 %v466_v56 }
 0x559   :  { %v2244_v57 = vpop.eup %2243 }
 0x55a   :  { %2245 = vtanh.f32 %v2244_v57  ;;  %v2170_v59 = vmul.f32 -1.442695, %v2244_v57 }
 0x55c   :  { %2247 = vpow2.f32 %v2170_v59 }
 0x560   :  { %v2246_v58 = vpop.eup %2245 }
 0x561   :  { %490 = vrot.lane.b32.xlu2 %v2246_v58, %s2414_s18 }
 0x562   :  { %v2248_v60 = vpop.eup %2247 }
 0x563   :  { %v471_v61 = vadd.f32 1.0, %v2248_v60 }
 0x565   :  { %2249 = vrcp.f32 %v471_v61  ;;  %v483_v6 = vand.u32 2147483648, %v471_v61  ;;  %vm477_vm13 = vweird.f32 %v471_v61  ;;  %v481_v7 = vand.u32 2147483647, %v471_v61 }
 0x567   :  { %v484_v12 = vor.u32 1.1754944e-38, %v483_v6  ;;  %vm482_vm15 = vcmp.eq.f32.partialorder %v481_v7, 8.507059e+37 }
 0x56b   :  { %v2250_v62 = vpop.eup %2249 }
 0x56c   :  { %v473_v1 = vmul.f32 %v2250_v62, %v471_v61  ;;  %vm478_vm11 = vweird.f32 %v2250_v62 }
 0x56d   :  { %vm479_vm14 = vmor %vm477_vm13, %vm478_vm11 }
 0x56e   :  { %v474_v2 = vsub.f32 1.0, %v473_v1 }
 0x570   :  { %v475_v3 = vmul.f32 %v2250_v62, %v474_v2 }
 0x572   :  { %v476_v4 = vadd.f32 %v2250_v62, %v475_v3 }
 0x574   :  { %v480_v8 = vsel %vm479_vm14, %v2250_v62, %v476_v4 }
 0x575   :  { %v485_v17 = vsel %vm482_vm15, %v484_v12, %v480_v8 }
 0x576   :  { %v488_v19 = vmul.f32 %v485_v17, %v2551_v5 }
 0x5bb   :  { %v491_v16 = vpop.permute.xlu2 %490 }
 0x5bc   :  { %v493_v18 = vmul.f32 %v491_v16, %v485_v17 }
 0x5be   :  { %495 = vrot.lane.b32.xlu0 %v493_v18, %s2414_s18 }
 0x630   :  { %v496_v20 = vpop.permute.xlu0 %495 }
 0x631   :  { %v2594_v21 = vadd.f32 %v496_v20, %v488_v19 }
 0x633   :  { %2251 = vtanh.f32 %v2594_v21 }
 0x639   :  { %v2252_v22 = vpop.eup %2251 }
 0x63a   :  { %v501_v23 = vperm.slane %v2252_v22, 0 }
 0x63c   :  { %502 = vrot.lane.b32.xlu1 %v501_v23, %s2415_s2 }
 0x6ae   :  { %v503_v24 = vpop.permute.xlu1 %502 }
 0x6af   :  { %v2598_v25 = vmul.f32 %v503_v24, %v485_v17 }
 0x6b1   :  { %508 = vrot.lane.b32.xlu2 %v2598_v25, %s2416_s19  ;;  %v506_v26 = vmul.f32 %v2598_v25, %v2598_v25 }
 0x6b3   :  { %512 = vrot.lane.b32.xlu0 %v506_v26, %s2417_s20 }
 0x70b   :  { %v509_v27 = vpop.permute.xlu2 %508 }
 0x725   :  { %v513_v29 = vpop.permute.xlu0 %512 }
 0x726   :  { %v515_v30 = vsel %vm50_vm1, %v509_v27, %v513_v29 }
 0x727   :  { %v516_v31 = vand.u32 2147483647, %v515_v30  ;;  %vm572_vm13 = vcmp.lt.f32.partialorder %v515_v30, 0.0 }
 0x729   :  { %v518_v32 = vmax.f32 %v516_v31, 1e-30  ;;  %vm517_vm7 = vcmp.gt.f32.partialorder %v516_v31, 1.0 }
 0x72b   :  { %2253 = vrcp.f32 %v518_v32  ;;  %v530_v36 = vand.u32 2147483648, %v518_v32  ;;  %v528_v38 = vand.u32 2147483647, %v518_v32  ;;  %vm524_vm3 = vweird.f32 %v518_v32 }
 0x72d   :  { %v531_v41 = vor.u32 1.1754944e-38, %v530_v36  ;;  %vm529_vm5 = vcmp.eq.f32.partialorder %v528_v38, 8.507059e+37 }
 0x731   :  { %v2254_v33 = vpop.eup %2253 }
 0x732   :  { %v520_v34 = vmul.f32 %v2254_v33, %v518_v32  ;;  %vm525_vm2 = vweird.f32 %v2254_v33 }
 0x733   :  { %vm526_vm4 = vmor %vm524_vm3, %vm525_vm2 }
 0x734   :  { %v521_v35 = vsub.f32 1.0, %v520_v34 }
 0x736   :  { %v522_v37 = vmul.f32 %v2254_v33, %v521_v35 }
 0x738   :  { %v523_v39 = vadd.f32 %v2254_v33, %v522_v37 }
 0x73a   :  { %v527_v42 = vsel %vm526_vm4, %v2254_v33, %v523_v39 }
 0x73b   :  { %v532_v43 = vsel %vm529_vm5, %v531_v41, %v527_v42 }
 0x73c   :  { %v534_v28 = vsel %vm517_vm7, %v532_v43, %v516_v31 }
 0x73d   :  { %v537_v44 = vadd.f32 1.0, %v534_v28  ;;  %v2171_v49 = vadd.f32 -1.0, %v534_v28  ;;  %vm535_vm11 = vcmp.gt.f32.partialorder %v534_v28, 0.41421357 }
 0x73f   :  { %2255 = vrcp.f32 %v537_v44  ;;  %v549_v9 = vand.u32 2147483648, %v537_v44  ;;  %v547_v47 = vand.u32 2147483647, %v537_v44  ;;  %vm543_vm10 = vweird.f32 %v537_v44 }
 0x741   :  { %v550_v48 = vor.u32 1.1754944e-38, %v549_v9  ;;  %vm548_vm12 = vcmp.eq.f32.partialorder %v547_v47, 8.507059e+37 }
 0x745   :  { %v2256_v45 = vpop.eup %2255 }
 0x746   :  { %v539_v46 = vmul.f32 %v2256_v45, %v537_v44  ;;  %vm544_vm8 = vweird.f32 %v2256_v45 }
 0x747   :  { %vm545_vm6 = vmor %vm543_vm10, %vm544_vm8 }
 0x748   :  { %v540_v10 = vsub.f32 1.0, %v539_v46 }
 0x74a   :  { %v541_v40 = vmul.f32 %v2256_v45, %v540_v10 }
 0x74c   :  { %v542_v15 = vadd.f32 %v2256_v45, %v541_v40 }
 0x74e   :  { %v546_v13 = vsel %vm545_vm6, %v2256_v45, %v542_v15 }
 0x74f   :  { %v551_v50 = vsel %vm548_vm12, %v550_v48, %v546_v13 }
 0x750   :  { %v552_v51 = vmul.f32 %v2171_v49, %v551_v50 }
 0x752   :  { %v553_v52 = vsel %vm535_vm11, %v552_v51, %v534_v28 }
 0x753   :  { %v554_v53 = vmul.f32 %v553_v52, %v553_v52 }
 0x755   :  { %v555_v54 = vmul.f32 0.07692308, %v554_v53 }
 0x757   :  { %v556_v55 = vsub.f32 0.09090909, %v555_v54 }
 0x759   :  { %v557_v56 = vmul.f32 %v556_v55, %v554_v53 }
 0x75b   :  { %v558_v57 = vsub.f32 0.11111111, %v557_v56 }
 0x75d   :  { %v559_v58 = vmul.f32 %v558_v57, %v554_v53 }
 0x75f   :  { %v560_v59 = vsub.f32 0.14285715, %v559_v58 }
 0x761   :  { %v561_v60 = vmul.f32 %v560_v59, %v554_v53 }
 0x763   :  { %v562_v61 = vsub.f32 0.2, %v561_v60 }
 0x765   :  { %v563_v62 = vmul.f32 %v562_v61, %v554_v53 }
 0x767   :  { %v564_v1 = vsub.f32 0.33333334, %v563_v62 }
 0x769   :  { %v565_v2 = vmul.f32 %v564_v1, %v554_v53 }
 0x76b   :  { %v566_v3 = vsub.f32 1.0, %v565_v2 }
 0x76d   :  { %v567_v4 = vmul.f32 %v566_v3, %v553_v52 }
 0x76f   :  { %v568_v6 = vadd.f32 0.7853982, %v567_v4 }
 0x771   :  { %v569_v7 = vsel %vm535_vm11, %v568_v6, %v567_v4 }
 0x772   :  { %v570_v8 = vsub.f32 1.5707964, %v569_v7 }
 0x774   :  { %v571_v12 = vsel %vm517_vm7, %v570_v8, %v569_v7  ;;  %v675_v7 = vld [vmem:[#allocation4 + $0x2] sm:$0x1] }
 0x775   :  { %v573_v16 = vsub.f32 0.0, %v571_v12 }
 0x777   :  { %v574_v17 = vsel %vm572_vm13, %v573_v16, %v571_v12 }
 0x778   :  { %2172 = vmatmul.msk.f32.vlgmr.msrb.gmra.mxu0 %vm112_vm9, %v574_v17 }
 0x779   :  { %1525 = vmatpush.msrb.mxu0 %v2565_v14 }
 0x7f5   :  { %v595_v18 = vpop.f32.mrf.mxu0 }
 0x7f6   :  { %2257 = vtanh.f32 %v595_v18 }
 0x7fc   :  { %v2612_v19 = vpop.eup %2257 }
 0x7fd   :  { %v610_v20 = vmul.f32 %v2612_v19, %v2612_v19 }
 0x7ff   :  { %612 = vrot.lane.b32.xlu1 %v610_v20, %s2413_s15 }
 0x871   :  { %v613_v22 = vpop.permute.xlu1 %612 }
 0x872   :  { %v615_v23 = vsel %vm50_vm1, %v2612_v19, %v613_v22 }
 0x873   :  { %v616_v24 = vand.u32 2147483647, %v615_v23  ;;  %vm672_vm12 = vcmp.lt.f32.partialorder %v615_v23, 0.0 }
 0x875   :  { %v618_v26 = vmax.f32 %v616_v24, 1e-30  ;;  %vm617_vm4 = vcmp.gt.f32.partialorder %v616_v24, 1.0 }
 0x877   :  { %2259 = vrcp.f32 %v618_v26  ;;  %v630_v31 = vand.u32 2147483648, %v618_v26  ;;  %v628_v33 = vand.u32 2147483647, %v618_v26  ;;  %vm624_vm15 = vweird.f32 %v618_v26 }
 0x879   :  { %v631_v35 = vor.u32 1.1754944e-38, %v630_v31  ;;  %vm629_vm3 = vcmp.eq.f32.partialorder %v628_v33, 8.507059e+37 }
 0x87d   :  { %v2260_v27 = vpop.eup %2259 }
 0x87e   :  { %v620_v29 = vmul.f32 %v2260_v27, %v618_v26  ;;  %vm625_vm14 = vweird.f32 %v2260_v27 }
 0x87f   :  { %vm626_vm2 = vmor %vm624_vm15, %vm625_vm14 }
 0x880   :  { %v621_v30 = vsub.f32 1.0, %v620_v29 }
 0x882   :  { %v622_v32 = vmul.f32 %v2260_v27, %v621_v30 }
 0x884   :  { %v623_v34 = vadd.f32 %v2260_v27, %v622_v32 }
 0x886   :  { %v627_v36 = vsel %vm626_vm2, %v2260_v27, %v623_v34 }
 0x887   :  { %v632_v37 = vsel %vm629_vm3, %v631_v35, %v627_v36 }
 0x888   :  { %v634_v38 = vsel %vm617_vm4, %v632_v37, %v616_v24 }
 0x889   :  { %v637_v39 = vadd.f32 1.0, %v634_v38  ;;  %v2173_v9 = vadd.f32 -1.0, %v634_v38  ;;  %vm635_vm6 = vcmp.gt.f32.partialorder %v634_v38, 0.41421357 }
 0x88b   :  { %2261 = vrcp.f32 %v637_v39  ;;  %v649_v28 = vand.u32 2147483648, %v637_v39  ;;  %v647_v45 = vand.u32 2147483647, %v637_v39  ;;  %vm643_vm7 = vweird.f32 %v637_v39 }
 0x88d   :  { %v650_v10 = vor.u32 1.1754944e-38, %v649_v28  ;;  %vm648_vm10 = vcmp.eq.f32.partialorder %v647_v45, 8.507059e+37 }
 0x891   :  { %v2262_v41 = vpop.eup %2261 }
 0x892   :  { %v639_v42 = vmul.f32 %v2262_v41, %v637_v39  ;;  %vm644_vm5 = vweird.f32 %v2262_v41 }
 0x893   :  { %vm645_vm8 = vmor %vm643_vm7, %vm644_vm5 }
 0x894   :  { %v640_v43 = vsub.f32 1.0, %v639_v42 }
 0x896   :  { %v641_v44 = vmul.f32 %v2262_v41, %v640_v43 }
 0x898   :  { %v642_v46 = vadd.f32 %v2262_v41, %v641_v44 }
 0x89a   :  { %v646_v40 = vsel %vm645_vm8, %v2262_v41, %v642_v46 }
 0x89b   :  { %v651_v47 = vsel %vm648_vm10, %v650_v10, %v646_v40 }
 0x89c   :  { %v652_v15 = vmul.f32 %v2173_v9, %v651_v47 }
 0x89e   :  { %v653_v48 = vsel %vm635_vm6, %v652_v15, %v634_v38 }
 0x89f   :  { %v654_v49 = vmul.f32 %v653_v48, %v653_v48 }
 0x8a1   :  { %v655_v13 = vmul.f32 0.07692308, %v654_v49 }
 0x8a3   :  { %v656_v50 = vsub.f32 0.09090909, %v655_v13 }
 0x8a5   :  { %v657_v51 = vmul.f32 %v656_v50, %v654_v49 }
 0x8a7   :  { %v658_v52 = vsub.f32 0.11111111, %v657_v51 }
 0x8a9   :  { %v659_v53 = vmul.f32 %v658_v52, %v654_v49 }
 0x8ab   :  { %v660_v54 = vsub.f32 0.14285715, %v659_v53 }
 0x8ad   :  { %v661_v55 = vmul.f32 %v660_v54, %v654_v49 }
 0x8af   :  { %v662_v56 = vsub.f32 0.2, %v661_v55 }
 0x8b1   :  { %v663_v57 = vmul.f32 %v662_v56, %v654_v49 }
 0x8b3   :  { %v664_v58 = vsub.f32 0.33333334, %v663_v57 }
 0x8b5   :  { %v665_v59 = vmul.f32 %v664_v58, %v654_v49 }
 0x8b7   :  { %v666_v60 = vsub.f32 1.0, %v665_v59 }
 0x8b9   :  { %v667_v61 = vmul.f32 %v666_v60, %v653_v48 }
 0x8bb   :  { %v668_v62 = vadd.f32 0.7853982, %v667_v61 }
 0x8bd   :  { %v669_v1 = vsel %vm635_vm6, %v668_v62, %v667_v61 }
 0x8be   :  { %v670_v2 = vsub.f32 1.5707964, %v669_v1 }
 0x8c0   :  { %v671_v3 = vsel %vm617_vm4, %v670_v2, %v669_v1 }
 0x8c1   :  { %v673_v4 = vsub.f32 0.0, %v671_v3 }
 0x8c3   :  { %v674_v6 = vsel %vm672_vm12, %v673_v4, %v671_v3 }
 0x8c4   :  { %2174 = vmatmul.msk.f32.vlgmr.msrb.gmra.mxu1 %vm112_vm9, %v674_v6 }
 0x8c5   :  { %1626 = vmatpush.msrb.mxu1 %v2521_v0 }
 0x941   :  { %v696_v8 = vpop.f32.mrf.mxu1 }
 0x942   :  { %v699_v12 = vadd.f32 %v696_v8, %v675_v7 }
 0x944   :  { %2263 = vtanh.f32 %v699_v12 }
 0x94a   :  { %v2264_v16 = vpop.eup %2263 }
 0x94b   :  { %2265 = vtanh.f32 %v2264_v16  ;;  %v2175_v18 = vmul.f32 -1.442695, %v2264_v16 }
 0x94d   :  { %2267 = vpow2.f32 %v2175_v18 }
 0x951   :  { %v2266_v17 = vpop.eup %2265 }
 0x952   :  { %723 = vrot.lane.b32.xlu2 %v2266_v17, %s2414_s18 }
 0x953   :  { %v2268_v20 = vpop.eup %2267 }
 0x954   :  { %v704_v22 = vadd.f32 1.0, %v2268_v20 }
 0x956   :  { %2269 = vrcp.f32 %v704_v22  ;;  %v716_v0 = vand.u32 2147483648, %v704_v22  ;;  %vm710_vm13 = vweird.f32 %v704_v22  ;;  %v714_v30 = vand.u32 2147483647, %v704_v22 }
 0x958   :  { %v717_v32 = vor.u32 1.1754944e-38, %v716_v0  ;;  %vm715_vm15 = vcmp.eq.f32.partialorder %v714_v30, 8.507059e+37 }
 0x95c   :  { %v2270_v23 = vpop.eup %2269 }
 0x95d   :  { %v706_v24 = vmul.f32 %v2270_v23, %v704_v22  ;;  %vm711_vm11 = vweird.f32 %v2270_v23 }
 0x95e   :  { %vm712_vm14 = vmor %vm710_vm13, %vm711_vm11 }
 0x95f   :  { %v707_v26 = vsub.f32 1.0, %v706_v24 }
 0x961   :  { %v708_v27 = vmul.f32 %v2270_v23, %v707_v26 }
 0x963   :  { %v709_v29 = vadd.f32 %v2270_v23, %v708_v27 }
 0x965   :  { %v713_v31 = vsel %vm712_vm14, %v2270_v23, %v709_v29 }
 0x966   :  { %v718_v34 = vsel %vm715_vm15, %v717_v32, %v713_v31 }
 0x967   :  { %v721_v36 = vmul.f32 %v718_v34, %v2594_v21 }
 0x9ac   :  { %v724_v33 = vpop.permute.xlu2 %723 }
 0x9ad   :  { %v726_v35 = vmul.f32 %v724_v33, %v718_v34 }
 0x9af   :  { %728 = vrot.lane.b32.xlu0 %v726_v35, %s2414_s18 }
 0xa21   :  { %v729_v37 = vpop.permute.xlu0 %728 }
 0xa22   :  { %v2628_v38 = vadd.f32 %v729_v37, %v721_v36 }
 0xa24   :  { %2271 = vtanh.f32 %v2628_v38 }
 0xa2a   :  { %v2272_v39 = vpop.eup %2271 }
 0xa2b   :  { %v734_v41 = vperm.slane %v2272_v39, 0 }
 0xa2d   :  { %735 = vrot.lane.b32.xlu1 %v734_v41, %s2415_s2 }
 0xa9f   :  { %v736_v42 = vpop.permute.xlu1 %735 }
 0xaa0   :  { %v2632_v43 = vmul.f32 %v736_v42, %v718_v34 }
 0xaa2   :  { %741 = vrot.lane.b32.xlu2 %v2632_v43, %s2416_s19  ;;  %v739_v28 = vmul.f32 %v2632_v43, %v2632_v43 }
 0xaa4   :  { %745 = vrot.lane.b32.xlu0 %v739_v28, %s2417_s20 }
 0xafc   :  { %v742_v44 = vpop.permute.xlu2 %741 }
 0xb16   :  { %v746_v45 = vpop.permute.xlu0 %745 }
 0xb17   :  { %v748_v46 = vsel %vm50_vm1, %v742_v44, %v746_v45 }
 0xb18   :  { %v749_v10 = vand.u32 2147483647, %v748_v46  ;;  %vm805_vm13 = vcmp.lt.f32.partialorder %v748_v46, 0.0 }
 0xb1a   :  { %v751_v9 = vmax.f32 %v749_v10, 1e-30  ;;  %vm750_vm7 = vcmp.gt.f32.partialorder %v749_v10, 1.0 }
 0xb1c   :  { %2273 = vrcp.f32 %v751_v9  ;;  %v763_v48 = vand.u32 2147483648, %v751_v9  ;;  %v761_v13 = vand.u32 2147483647, %v751_v9  ;;  %vm757_vm3 = vweird.f32 %v751_v9 }
 0xb1e   :  { %v764_v51 = vor.u32 1.1754944e-38, %v763_v48  ;;  %vm762_vm5 = vcmp.eq.f32.partialorder %v761_v13, 8.507059e+37 }
 0xb22   :  { %v2274_v40 = vpop.eup %2273 }
 0xb23   :  { %v753_v47 = vmul.f32 %v2274_v40, %v751_v9  ;;  %vm758_vm2 = vweird.f32 %v2274_v40 }
 0xb24   :  { %vm759_vm4 = vmor %vm757_vm3, %vm758_vm2 }
 0xb25   :  { %v754_v15 = vsub.f32 1.0, %v753_v47 }
 0xb27   :  { %v755_v49 = vmul.f32 %v2274_v40, %v754_v15 }
 0xb29   :  { %v756_v50 = vadd.f32 %v2274_v40, %v755_v49 }
 0xb2b   :  { %v760_v52 = vsel %vm759_vm4, %v2274_v40, %v756_v50 }
 0xb2c   :  { %v765_v53 = vsel %vm762_vm5, %v764_v51, %v760_v52 }
 0xb2d   :  { %v767_v54 = vsel %vm750_vm7, %v765_v53, %v749_v10 }
 0xb2e   :  { %v770_v55 = vadd.f32 1.0, %v767_v54  ;;  %v2176_v2 = vadd.f32 -1.0, %v767_v54  ;;  %vm768_vm11 = vcmp.gt.f32.partialorder %v767_v54, 0.41421357 }
 0xb30   :  { %2275 = vrcp.f32 %v770_v55  ;;  %v782_v59 = vand.u32 2147483648, %v770_v55  ;;  %v780_v61 = vand.u32 2147483647, %v770_v55  ;;  %vm776_vm10 = vweird.f32 %v770_v55 }
 0xb32   :  { %v783_v1 = vor.u32 1.1754944e-38, %v782_v59  ;;  %vm781_vm12 = vcmp.eq.f32.partialorder %v780_v61, 8.507059e+37 }
 0xb36   :  { %v2276_v56 = vpop.eup %2275 }
 0xb37   :  { %v772_v57 = vmul.f32 %v2276_v56, %v770_v55  ;;  %vm777_vm8 = vweird.f32 %v2276_v56 }
 0xb38   :  { %vm778_vm6 = vmor %vm776_vm10, %vm777_vm8 }
 0xb39   :  { %v773_v58 = vsub.f32 1.0, %v772_v57 }
 0xb3b   :  { %v774_v60 = vmul.f32 %v2276_v56, %v773_v58 }
 0xb3d   :  { %v775_v62 = vadd.f32 %v2276_v56, %v774_v60 }
 0xb3f   :  { %v779_v3 = vsel %vm778_vm6, %v2276_v56, %v775_v62 }
 0xb40   :  { %v784_v4 = vsel %vm781_vm12, %v783_v1, %v779_v3 }
 0xb41   :  { %v785_v6 = vmul.f32 %v2176_v2, %v784_v4 }
 0xb43   :  { %v786_v7 = vsel %vm768_vm11, %v785_v6, %v767_v54 }
 0xb44   :  { %v787_v8 = vmul.f32 %v786_v7, %v786_v7 }
 0xb46   :  { %v788_v12 = vmul.f32 0.07692308, %v787_v8 }
 0xb48   :  { %v789_v16 = vsub.f32 0.09090909, %v788_v12 }
 0xb4a   :  { %v790_v17 = vmul.f32 %v789_v16, %v787_v8 }
 0xb4c   :  { %v791_v18 = vsub.f32 0.11111111, %v790_v17 }
 0xb4e   :  { %v792_v20 = vmul.f32 %v791_v18, %v787_v8 }
 0xb50   :  { %v793_v22 = vsub.f32 0.14285715, %v792_v20 }
 0xb52   :  { %v794_v23 = vmul.f32 %v793_v22, %v787_v8 }
 0xb54   :  { %v795_v24 = vsub.f32 0.2, %v794_v23 }
 0xb56   :  { %v796_v26 = vmul.f32 %v795_v24, %v787_v8 }
 0xb58   :  { %v797_v27 = vsub.f32 0.33333334, %v796_v26 }
 0xb5a   :  { %v798_v29 = vmul.f32 %v797_v27, %v787_v8 }
 0xb5c   :  { %v799_v0 = vsub.f32 1.0, %v798_v29 }
 0xb5e   :  { %v800_v30 = vmul.f32 %v799_v0, %v786_v7 }
 0xb60   :  { %v801_v31 = vadd.f32 0.7853982, %v800_v30 }
 0xb62   :  { %v802_v32 = vsel %vm768_vm11, %v801_v31, %v800_v30 }
 0xb63   :  { %v803_v33 = vsub.f32 1.5707964, %v802_v32 }
 0xb65   :  { %v804_v34 = vsel %vm750_vm7, %v803_v33, %v802_v32  ;;  %v2385_v33 = vld [vmem:[%s2917_s4] sm:$0xff] }
 0xb66   :  { %v806_v35 = vsub.f32 0.0, %v804_v34 }
 0xb68   :  { %v807_v36 = vsel %vm805_vm13, %v806_v35, %v804_v34  ;;  %v908_v34 = vld [vmem:[#allocation4 + $0x3] sm:$0x1] }
 0xb69   :  { %2177 = vmatmul.msk.f32.vlgmr.msrb.gmra.mxu2 %vm112_vm9, %v807_v36 }
 0xb6a   :  { %1758 = vmatpush.msrb.mxu2 %v2565_v14 }
 0xbec   :  { %v828_v37 = vpop.f32.mrf.mxu2 }
 0xbed   :  { %2277 = vtanh.f32 %v828_v37 }
 0xbf3   :  { %v2646_v39 = vpop.eup %2277 }
 0xbf4   :  { %v843_v41 = vmul.f32 %v2646_v39, %v2646_v39 }
 0xbf6   :  { %845 = vrot.lane.b32.xlu1 %v843_v41, %s2413_s15 }
 0xc68   :  { %v846_v42 = vpop.permute.xlu1 %845 }
 0xc69   :  { %v848_v28 = vsel %vm50_vm1, %v2646_v39, %v846_v42 }
 0xc6a   :  { %v849_v44 = vand.u32 2147483647, %v848_v28  ;;  %vm905_vm12 = vcmp.lt.f32.partialorder %v848_v28, 0.0 }
 0xc6c   :  { %v851_v45 = vmax.f32 %v849_v44, 1e-30  ;;  %vm850_vm4 = vcmp.gt.f32.partialorder %v849_v44, 1.0 }
 0xc6e   :  { %2279 = vrcp.f32 %v851_v45  ;;  %v863_v14 = vand.u32 2147483648, %v851_v45  ;;  %v861_v47 = vand.u32 2147483647, %v851_v45  ;;  %vm857_vm15 = vweird.f32 %v851_v45 }
 0xc70   :  { %v864_v48 = vor.u32 1.1754944e-38, %v863_v14  ;;  %vm862_vm3 = vcmp.eq.f32.partialorder %v861_v47, 8.507059e+37 }
 0xc74   :  { %v2280_v46 = vpop.eup %2279 }
 0xc75   :  { %v853_v10 = vmul.f32 %v2280_v46, %v851_v45  ;;  %vm858_vm14 = vweird.f32 %v2280_v46 }
 0xc76   :  { %vm859_vm2 = vmor %vm857_vm15, %vm858_vm14 }
 0xc77   :  { %v854_v9 = vsub.f32 1.0, %v853_v10 }
 0xc79   :  { %v855_v40 = vmul.f32 %v2280_v46, %v854_v9 }
 0xc7b   :  { %v856_v15 = vadd.f32 %v2280_v46, %v855_v40 }
 0xc7d   :  { %v860_v49 = vsel %vm859_vm2, %v2280_v46, %v856_v15 }
 0xc7e   :  { %v865_v13 = vsel %vm862_vm3, %v864_v48, %v860_v49 }
 0xc7f   :  { %v867_v50 = vsel %vm850_vm4, %v865_v13, %v849_v44 }
 0xc80   :  { %v870_v51 = vadd.f32 1.0, %v867_v50  ;;  %v2178_v60 = vadd.f32 -1.0, %v867_v50  ;;  %vm868_vm6 = vcmp.gt.f32.partialorder %v867_v50, 0.41421357 }
 0xc82   :  { %2281 = vrcp.f32 %v870_v51  ;;  %v882_v55 = vand.u32 2147483648, %v870_v51  ;;  %v880_v57 = vand.u32 2147483647, %v870_v51  ;;  %vm876_vm7 = vweird.f32 %v870_v51 }
 0xc84   :  { %v883_v59 = vor.u32 1.1754944e-38, %v882_v55  ;;  %vm881_vm10 = vcmp.eq.f32.partialorder %v880_v57, 8.507059e+37 }
 0xc88   :  { %v2282_v52 = vpop.eup %2281 }
 0xc89   :  { %v872_v53 = vmul.f32 %v2282_v52, %v870_v51  ;;  %vm877_vm5 = vweird.f32 %v2282_v52 }
 0xc8a   :  { %vm878_vm8 = vmor %vm876_vm7, %vm877_vm5 }
 0xc8b   :  { %v873_v54 = vsub.f32 1.0, %v872_v53 }
 0xc8d   :  { %v874_v56 = vmul.f32 %v2282_v52, %v873_v54 }
 0xc8f   :  { %v875_v58 = vadd.f32 %v2282_v52, %v874_v56 }
 0xc91   :  { %v879_v61 = vsel %vm878_vm8, %v2282_v52, %v875_v58 }
 0xc92   :  { %v884_v62 = vsel %vm881_vm10, %v883_v59, %v879_v61 }
 0xc93   :  { %v885_v1 = vmul.f32 %v2178_v60, %v884_v62 }
 0xc95   :  { %v886_v2 = vsel %vm868_vm6, %v885_v1, %v867_v50 }
 0xc96   :  { %v887_v3 = vmul.f32 %v886_v2, %v886_v2 }
 0xc98   :  { %v888_v4 = vmul.f32 0.07692308, %v887_v3 }
 0xc9a   :  { %v889_v6 = vsub.f32 0.09090909, %v888_v4 }
 0xc9c   :  { %v890_v7 = vmul.f32 %v889_v6, %v887_v3 }
 0xc9e   :  { %v891_v8 = vsub.f32 0.11111111, %v890_v7 }
 0xca0   :  { %v892_v12 = vmul.f32 %v891_v8, %v887_v3 }
 0xca2   :  { %v893_v16 = vsub.f32 0.14285715, %v892_v12 }
 0xca4   :  { %v894_v17 = vmul.f32 %v893_v16, %v887_v3 }
 0xca6   :  { %v895_v18 = vsub.f32 0.2, %v894_v17 }
 0xca8   :  { %v896_v20 = vmul.f32 %v895_v18, %v887_v3 }
 0xcaa   :  { %v897_v22 = vsub.f32 0.33333334, %v896_v20 }
 0xcac   :  { %v898_v23 = vmul.f32 %v897_v22, %v887_v3 }
 0xcae   :  { %v899_v24 = vsub.f32 1.0, %v898_v23 }
 0xcb0   :  { %v900_v26 = vmul.f32 %v899_v24, %v886_v2 }
 0xcb2   :  { %v901_v27 = vadd.f32 0.7853982, %v900_v26 }
 0xcb4   :  { %v902_v29 = vsel %vm868_vm6, %v901_v27, %v900_v26 }
 0xcb5   :  { %v903_v0 = vsub.f32 1.5707964, %v902_v29 }
 0xcb7   :  { %v904_v30 = vsel %vm850_vm4, %v903_v0, %v902_v29 }
 0xcb8   :  { %v906_v31 = vsub.f32 0.0, %v904_v30 }
 0xcba   :  { %v907_v32 = vsel %vm905_vm12, %v906_v31, %v904_v30 }
 0xcbb   :  { %2179 = vmatmul.msk.f32.vlgmr.msrb.gmra.mxu3 %vm112_vm9, %v907_v32 }
 0xcbc   :  { %1859 = vmatpush.msrb.mxu3 %v2385_v33 }
 0xd3e   :  { %v929_v35 = vpop.f32.mrf.mxu3 }
 0xd3f   :  { %v932_v36 = vadd.f32 %v929_v35, %v908_v34 }
 0xd41   :  { %2283 = vtanh.f32 %v932_v36 }
 0xd47   :  { %v2284_v37 = vpop.eup %2283 }
 0xd48   :  { %2285 = vtanh.f32 %v2284_v37  ;;  %v2180_v42 = vmul.f32 -1.442695, %v2284_v37 }
 0xd4a   :  { %2287 = vpow2.f32 %v2180_v42 }
 0xd4e   :  { %v2286_v41 = vpop.eup %2285 }
 0xd4f   :  { %956 = vrot.lane.b32.xlu2 %v2286_v41, %s2414_s18 }
 0xd50   :  { %v2288_v28 = vpop.eup %2287 }
 0xd51   :  { %v937_v44 = vadd.f32 1.0, %v2288_v28 }
 0xd53   :  { %2289 = vrcp.f32 %v937_v44  ;;  %v949_v40 = vand.u32 2147483648, %v937_v44  ;;  %vm943_vm13 = vweird.f32 %v937_v44  ;;  %v947_v47 = vand.u32 2147483647, %v937_v44 }
 0xd55   :  { %v950_v48 = vor.u32 1.1754944e-38, %v949_v40  ;;  %vm948_vm15 = vcmp.eq.f32.partialorder %v947_v47, 8.507059e+37 }
 0xd59   :  { %v2290_v45 = vpop.eup %2289 }
 0xd5a   :  { %v939_v46 = vmul.f32 %v2290_v45, %v937_v44  ;;  %vm944_vm11 = vweird.f32 %v2290_v45 }
 0xd5b   :  { %vm945_vm14 = vmor %vm943_vm13, %vm944_vm11 }
 0xd5c   :  { %v940_v10 = vsub.f32 1.0, %v939_v46 }
 0xd5e   :  { %v941_v9 = vmul.f32 %v2290_v45, %v940_v10 }
 0xd60   :  { %v942_v14 = vadd.f32 %v2290_v45, %v941_v9 }
 0xd62   :  { %v946_v15 = vsel %vm945_vm14, %v2290_v45, %v942_v14 }
 0xd63   :  { %v951_v13 = vsel %vm948_vm15, %v950_v48, %v946_v15 }
 0xd64   :  { %v954_v51 = vmul.f32 %v951_v13, %v2628_v38 }
 0xda9   :  { %v957_v49 = vpop.permute.xlu2 %956 }
 0xdaa   :  { %v959_v50 = vmul.f32 %v957_v49, %v951_v13 }
 0xdac   :  { %961 = vrot.lane.b32.xlu0 %v959_v50, %s2414_s18 }
 0xe1e   :  { %v962_v52 = vpop.permute.xlu0 %961 }
 0xe1f   :  { %v2664_v53 = vadd.f32 %v962_v52, %v954_v51 }
 0xe21   :  { %2291 = vtanh.f32 %v2664_v53 }
 0xe27   :  { %v2292_v54 = vpop.eup %2291 }
 0xe28   :  { %v967_v55 = vperm.slane %v2292_v54, 0 }
 0xe2a   :  { %968 = vrot.lane.b32.xlu1 %v967_v55, %s2415_s2  ;;  %v2386_v55 = vld [vmem:[%s2918_s5] sm:$0xff] }
 0xe9c   :  { %v969_v56 = vpop.permute.xlu1 %968 }
 0xe9d   :  { %v2668_v57 = vmul.f32 %v969_v56, %v951_v13 }
 0xe9f   :  { %974 = vrot.lane.b32.xlu2 %v2668_v57, %s2416_s19  ;;  %v972_v58 = vmul.f32 %v2668_v57, %v2668_v57 }
 0xea1   :  { %978 = vrot.lane.b32.xlu0 %v972_v58, %s2417_s20 }
 0xef9   :  { %v975_v59 = vpop.permute.xlu2 %974 }
 0xf13   :  { %v979_v60 = vpop.permute.xlu0 %978 }
 0xf14   :  { %v981_v61 = vsel %vm50_vm1, %v975_v59, %v979_v60 }
 0xf15   :  { %v982_v62 = vand.u32 2147483647, %v981_v61  ;;  %vm1038_vm13 = vcmp.lt.f32.partialorder %v981_v61, 0.0 }
 0xf17   :  { %v984_v1 = vmax.f32 %v982_v62, 1e-30  ;;  %vm983_vm7 = vcmp.gt.f32.partialorder %v982_v62, 1.0 }
 0xf19   :  { %2293 = vrcp.f32 %v984_v1  ;;  %v996_v6 = vand.u32 2147483648, %v984_v1  ;;  %v994_v8 = vand.u32 2147483647, %v984_v1  ;;  %vm990_vm3 = vweird.f32 %v984_v1 }
 0xf1b   :  { %v997_v16 = vor.u32 1.1754944e-38, %v996_v6  ;;  %vm995_vm5 = vcmp.eq.f32.partialorder %v994_v8, 8.507059e+37 }
 0xf1f   :  { %v2294_v2 = vpop.eup %2293 }
 0xf20   :  { %v986_v3 = vmul.f32 %v2294_v2, %v984_v1  ;;  %vm991_vm2 = vweird.f32 %v2294_v2 }
 0xf21   :  { %vm992_vm4 = vmor %vm990_vm3, %vm991_vm2 }
 0xf22   :  { %v987_v4 = vsub.f32 1.0, %v986_v3 }
 0xf24   :  { %v988_v7 = vmul.f32 %v2294_v2, %v987_v4 }
 0xf26   :  { %v989_v12 = vadd.f32 %v2294_v2, %v988_v7 }
 0xf28   :  { %v993_v17 = vsel %vm992_vm4, %v2294_v2, %v989_v12 }
 0xf29   :  { %v998_v18 = vsel %vm995_vm5, %v997_v16, %v993_v17 }
 0xf2a   :  { %v1000_v20 = vsel %vm983_vm7, %v998_v18, %v982_v62 }
 0xf2b   :  { %v1003_v22 = vadd.f32 1.0, %v1000_v20  ;;  %v2181_v32 = vadd.f32 -1.0, %v1000_v20  ;;  %vm1001_vm11 = vcmp.gt.f32.partialorder %v1000_v20, 0.41421357 }
 0xf2d   :  { %2295 = vrcp.f32 %v1003_v22  ;;  %v1015_v27 = vand.u32 2147483648, %v1003_v22  ;;  %v1013_v0 = vand.u32 2147483647, %v1003_v22  ;;  %vm1009_vm10 = vweird.f32 %v1003_v22 }
 0xf2f   :  { %v1016_v31 = vor.u32 1.1754944e-38, %v1015_v27  ;;  %vm1014_vm12 = vcmp.eq.f32.partialorder %v1013_v0, 8.507059e+37 }
 0xf33   :  { %v2296_v23 = vpop.eup %2295 }
 0xf34   :  { %v1005_v24 = vmul.f32 %v2296_v23, %v1003_v22  ;;  %vm1010_vm8 = vweird.f32 %v2296_v23 }
 0xf35   :  { %vm1011_vm6 = vmor %vm1009_vm10, %vm1010_vm8 }
 0xf36   :  { %v1006_v26 = vsub.f32 1.0, %v1005_v24 }
 0xf38   :  { %v1007_v29 = vmul.f32 %v2296_v23, %v1006_v26 }
 0xf3a   :  { %v1008_v30 = vadd.f32 %v2296_v23, %v1007_v29 }
 0xf3c   :  { %v1012_v33 = vsel %vm1011_vm6, %v2296_v23, %v1008_v30 }
 0xf3d   :  { %v1017_v34 = vsel %vm1014_vm12, %v1016_v31, %v1012_v33 }
 0xf3e   :  { %v1018_v35 = vmul.f32 %v2181_v32, %v1017_v34 }
 0xf40   :  { %v1019_v36 = vsel %vm1001_vm11, %v1018_v35, %v1000_v20 }
 0xf41   :  { %v1020_v37 = vmul.f32 %v1019_v36, %v1019_v36 }
 0xf43   :  { %v1021_v41 = vmul.f32 0.07692308, %v1020_v37 }
 0xf45   :  { %v1022_v42 = vsub.f32 0.09090909, %v1021_v41 }
 0xf47   :  { %v1023_v28 = vmul.f32 %v1022_v42, %v1020_v37 }
 0xf49   :  { %v1024_v44 = vsub.f32 0.11111111, %v1023_v28 }
 0xf4b   :  { %v1025_v45 = vmul.f32 %v1024_v44, %v1020_v37 }
 0xf4d   :  { %v1026_v46 = vsub.f32 0.14285715, %v1025_v45 }
 0xf4f   :  { %v1027_v10 = vmul.f32 %v1026_v46, %v1020_v37 }
 0xf51   :  { %v1028_v9 = vsub.f32 0.2, %v1027_v10 }
 0xf53   :  { %v1029_v14 = vmul.f32 %v1028_v9, %v1020_v37 }
 0xf55   :  { %v1030_v40 = vsub.f32 0.33333334, %v1029_v14 }
 0xf57   :  { %v1031_v47 = vmul.f32 %v1030_v40, %v1020_v37 }
 0xf59   :  { %v1032_v15 = vsub.f32 1.0, %v1031_v47 }
 0xf5b   :  { %v1033_v48 = vmul.f32 %v1032_v15, %v1019_v36 }
 0xf5d   :  { %v1034_v49 = vadd.f32 0.7853982, %v1033_v48 }
 0xf5f   :  { %v1035_v13 = vsel %vm1001_vm11, %v1034_v49, %v1033_v48 }
 0xf60   :  { %v1036_v50 = vsub.f32 1.5707964, %v1035_v13 }
 0xf62   :  { %v1037_v51 = vsel %vm983_vm7, %v1036_v50, %v1035_v13 }
 0xf63   :  { %v1039_v52 = vsub.f32 0.0, %v1037_v51 }
 0xf65   :  { %v1040_v54 = vsel %vm1038_vm13, %v1039_v52, %v1037_v51 }
 0xf66   :  { %2182 = vmatmul.msk.f32.vlgmr.msra.gmra.mxu0 %vm112_vm9, %v1040_v54 }
 0xf67   :  { %1991 = vmatpush.msra.mxu0 %v2386_v55  ;;  %v1141_v55 = vld [vmem:[#allocation4 + $0x4] sm:$0x1] }
 0xfe3   :  { %v1061_v56 = vpop.f32.mrf.mxu0 }
 0xfe4   :  { %2297 = vtanh.f32 %v1061_v56 }
 0xfea   :  { %v2684_v58 = vpop.eup %2297 }
 0xfeb   :  { %v1076_v59 = vmul.f32 %v2684_v58, %v2684_v58 }
 0xfed   :  { %1078 = vrot.lane.b32.xlu1 %v1076_v59, %s2413_s15 }
0x105f   :  { %v1079_v60 = vpop.permute.xlu1 %1078 }
0x1060   :  { %v1081_v61 = vsel %vm50_vm1, %v2684_v58, %v1079_v60 }
0x1061   :  { %v1082_v62 = vand.u32 2147483647, %v1081_v61  ;;  %vm1138_vm12 = vcmp.lt.f32.partialorder %v1081_v61, 0.0 }
0x1063   :  { %v1084_v1 = vmax.f32 %v1082_v62, 1e-30  ;;  %vm1083_vm4 = vcmp.gt.f32.partialorder %v1082_v62, 1.0 }
0x1065   :  { %2299 = vrcp.f32 %v1084_v1  ;;  %v1096_v6 = vand.u32 2147483648, %v1084_v1  ;;  %v1094_v8 = vand.u32 2147483647, %v1084_v1  ;;  %vm1090_vm15 = vweird.f32 %v1084_v1 }
0x1067   :  { %v1097_v16 = vor.u32 1.1754944e-38, %v1096_v6  ;;  %vm1095_vm3 = vcmp.eq.f32.partialorder %v1094_v8, 8.507059e+37 }
0x106b   :  { %v2300_v2 = vpop.eup %2299 }
0x106c   :  { %v1086_v3 = vmul.f32 %v2300_v2, %v1084_v1  ;;  %vm1091_vm14 = vweird.f32 %v2300_v2 }
0x106d   :  { %vm1092_vm2 = vmor %vm1090_vm15, %vm1091_vm14 }
0x106e   :  { %v1087_v4 = vsub.f32 1.0, %v1086_v3 }
0x1070   :  { %v1088_v7 = vmul.f32 %v2300_v2, %v1087_v4 }
0x1072   :  { %v1089_v12 = vadd.f32 %v2300_v2, %v1088_v7 }
0x1074   :  { %v1093_v17 = vsel %vm1092_vm2, %v2300_v2, %v1089_v12 }
0x1075   :  { %v1098_v18 = vsel %vm1095_vm3, %v1097_v16, %v1093_v17 }
0x1076   :  { %v1100_v20 = vsel %vm1083_vm4, %v1098_v18, %v1082_v62 }
0x1077   :  { %v1103_v22 = vadd.f32 1.0, %v1100_v20  ;;  %v2183_v32 = vadd.f32 -1.0, %v1100_v20  ;;  %vm1101_vm6 = vcmp.gt.f32.partialorder %v1100_v20, 0.41421357 }
0x1079   :  { %2301 = vrcp.f32 %v1103_v22  ;;  %v1115_v27 = vand.u32 2147483648, %v1103_v22  ;;  %v1113_v0 = vand.u32 2147483647, %v1103_v22  ;;  %vm1109_vm7 = vweird.f32 %v1103_v22 }
0x107b   :  { %v1116_v31 = vor.u32 1.1754944e-38, %v1115_v27  ;;  %vm1114_vm10 = vcmp.eq.f32.partialorder %v1113_v0, 8.507059e+37 }
0x107f   :  { %v2302_v23 = vpop.eup %2301 }
0x1080   :  { %v1105_v24 = vmul.f32 %v2302_v23, %v1103_v22  ;;  %vm1110_vm5 = vweird.f32 %v2302_v23 }
0x1081   :  { %vm1111_vm8 = vmor %vm1109_vm7, %vm1110_vm5 }
0x1082   :  { %v1106_v26 = vsub.f32 1.0, %v1105_v24 }
0x1084   :  { %v1107_v29 = vmul.f32 %v2302_v23, %v1106_v26 }
0x1086   :  { %v1108_v30 = vadd.f32 %v2302_v23, %v1107_v29 }
0x1088   :  { %v1112_v33 = vsel %vm1111_vm8, %v2302_v23, %v1108_v30 }
0x1089   :  { %v1117_v34 = vsel %vm1114_vm10, %v1116_v31, %v1112_v33 }
0x108a   :  { %v1118_v35 = vmul.f32 %v2183_v32, %v1117_v34 }
0x108c   :  { %v1119_v36 = vsel %vm1101_vm6, %v1118_v35, %v1100_v20 }
0x108d   :  { %v1120_v37 = vmul.f32 %v1119_v36, %v1119_v36 }
0x108f   :  { %v1121_v41 = vmul.f32 0.07692308, %v1120_v37 }
0x1091   :  { %v1122_v42 = vsub.f32 0.09090909, %v1121_v41 }
0x1093   :  { %v1123_v28 = vmul.f32 %v1122_v42, %v1120_v37 }
0x1095   :  { %v1124_v44 = vsub.f32 0.11111111, %v1123_v28 }
0x1097   :  { %v1125_v45 = vmul.f32 %v1124_v44, %v1120_v37 }
0x1099   :  { %v1126_v46 = vsub.f32 0.14285715, %v1125_v45 }
0x109b   :  { %v1127_v10 = vmul.f32 %v1126_v46, %v1120_v37 }
0x109d   :  { %v1128_v9 = vsub.f32 0.2, %v1127_v10 }
0x109f   :  { %v1129_v14 = vmul.f32 %v1128_v9, %v1120_v37 }
0x10a1   :  { %v1130_v40 = vsub.f32 0.33333334, %v1129_v14 }
0x10a3   :  { %v1131_v47 = vmul.f32 %v1130_v40, %v1120_v37 }
0x10a5   :  { %v1132_v15 = vsub.f32 1.0, %v1131_v47 }
0x10a7   :  { %v1133_v48 = vmul.f32 %v1132_v15, %v1119_v36 }
0x10a9   :  { %v1134_v49 = vadd.f32 0.7853982, %v1133_v48 }
0x10ab   :  { %v1135_v13 = vsel %vm1101_vm6, %v1134_v49, %v1133_v48 }
0x10ac   :  { %v1136_v50 = vsub.f32 1.5707964, %v1135_v13 }
0x10ae   :  { %v1137_v51 = vsel %vm1083_vm4, %v1136_v50, %v1135_v13 }
0x10af   :  { %v1139_v52 = vsub.f32 0.0, %v1137_v51 }
0x10b1   :  { %v1140_v54 = vsel %vm1138_vm12, %v1139_v52, %v1137_v51 }
0x10b2   :  { %2184 = vmatmul.msk.f32.vlgmr.msra.gmra.mxu1 %vm112_vm9, %v1140_v54 }
0x112f   :  { %v1162_v56 = vpop.f32.mrf.mxu1 }
0x1130   :  { %v1165_v59 = vadd.f32 %v1162_v56, %v1141_v55 }
0x1132   :  { %2303 = vtanh.f32 %v1165_v59 }
0x1138   :  { %v2304_v60 = vpop.eup %2303 }
0x1139   :  { %2305 = vtanh.f32 %v2304_v60  ;;  %v2185_v2 = vmul.f32 -1.442695, %v2304_v60 }
0x113b   :  { %2307 = vpow2.f32 %v2185_v2 }
0x113f   :  { %v2306_v1 = vpop.eup %2305 }
0x1140   :  { %1189 = vrot.lane.b32.xlu2 %v2306_v1, %s2414_s18 }
0x1141   :  { %v2308_v3 = vpop.eup %2307 }
0x1142   :  { %v1170_v4 = vadd.f32 1.0, %v2308_v3 }
0x1144   :  { %2309 = vrcp.f32 %v1170_v4  ;;  %v1182_v12 = vand.u32 2147483648, %v1170_v4  ;;  %vm1176_vm13 = vweird.f32 %v1170_v4  ;;  %v1180_v16 = vand.u32 2147483647, %v1170_v4 }
0x1146   :  { %v1183_v18 = vor.u32 1.1754944e-38, %v1182_v12  ;;  %vm1181_vm15 = vcmp.eq.f32.partialorder %v1180_v16, 8.507059e+37 }
0x114a   :  { %v2310_v62 = vpop.eup %2309 }
0x114b   :  { %v1172_v6 = vmul.f32 %v2310_v62, %v1170_v4  ;;  %vm1177_vm11 = vweird.f32 %v2310_v62 }
0x114c   :  { %vm1178_vm14 = vmor %vm1176_vm13, %vm1177_vm11 }
0x114d   :  { %v1173_v61 = vsub.f32 1.0, %v1172_v6 }
0x114f   :  { %v1174_v7 = vmul.f32 %v2310_v62, %v1173_v61 }
0x1151   :  { %v1175_v8 = vadd.f32 %v2310_v62, %v1174_v7 }
0x1153   :  { %v1179_v17 = vsel %vm1178_vm14, %v2310_v62, %v1175_v8 }
0x1154   :  { %v1184_v22 = vsel %vm1181_vm15, %v1183_v18, %v1179_v17 }
0x1155   :  { %v1187_v24 = vmul.f32 %v1184_v22, %v2664_v53 }
0x119a   :  { %v1190_v20 = vpop.permute.xlu2 %1189 }
0x119b   :  { %v1192_v23 = vmul.f32 %v1190_v20, %v1184_v22 }
0x119d   :  { %1194 = vrot.lane.b32.xlu0 %v1192_v23, %s2414_s18 }
0x120f   :  { %v1195_v26 = vpop.permute.xlu0 %1194 }
0x1210   :  { %v2699_v27 = vadd.f32 %v1195_v26, %v1187_v24 }
0x1212   :  { %2311 = vtanh.f32 %v2699_v27 }
0x1218   :  { %v2312_v29 = vpop.eup %2311 }
0x1219   :  { %v1200_v0 = vperm.slane %v2312_v29, 0 }
0x121b   :  { %1201 = vrot.lane.b32.xlu1 %v1200_v0, %s2415_s2 }
0x128d   :  { %v1202_v30 = vpop.permute.xlu1 %1201 }
0x128e   :  { %v2703_v31 = vmul.f32 %v1202_v30, %v1184_v22 }
0x1290   :  { %1207 = vrot.lane.b32.xlu2 %v2703_v31, %s2416_s19  ;;  %v1205_v32 = vmul.f32 %v2703_v31, %v2703_v31 }
0x1292   :  { %1211 = vrot.lane.b32.xlu0 %v1205_v32, %s2417_s20 }
0x12ea   :  { %v1208_v33 = vpop.permute.xlu2 %1207 }
0x1304   :  { %v1212_v34 = vpop.permute.xlu0 %1211 }
0x1305   :  { %v1214_v35 = vsel %vm50_vm1, %v1208_v33, %v1212_v34 }
0x1306   :  { %v1215_v36 = vand.u32 2147483647, %v1214_v35  ;;  %vm1271_vm13 = vcmp.lt.f32.partialorder %v1214_v35, 0.0 }
0x1308   :  { %v1217_v37 = vmax.f32 %v1215_v36, 1e-30  ;;  %vm1216_vm7 = vcmp.gt.f32.partialorder %v1215_v36, 1.0 }
0x130a   :  { %2313 = vrcp.f32 %v1217_v37  ;;  %v1229_v44 = vand.u32 2147483648, %v1217_v37  ;;  %v1227_v46 = vand.u32 2147483647, %v1217_v37  ;;  %vm1223_vm3 = vweird.f32 %v1217_v37 }
0x130c   :  { %v1230_v9 = vor.u32 1.1754944e-38, %v1229_v44  ;;  %vm1228_vm5 = vcmp.eq.f32.partialorder %v1227_v46, 8.507059e+37 }
0x1310   :  { %v2314_v41 = vpop.eup %2313 }
0x1311   :  { %v1219_v42 = vmul.f32 %v2314_v41, %v1217_v37  ;;  %vm1224_vm2 = vweird.f32 %v2314_v41 }
0x1312   :  { %vm1225_vm4 = vmor %vm1223_vm3, %vm1224_vm2 }
0x1313   :  { %v1220_v28 = vsub.f32 1.0, %v1219_v42 }
0x1315   :  { %v1221_v45 = vmul.f32 %v2314_v41, %v1220_v28 }
0x1317   :  { %v1222_v10 = vadd.f32 %v2314_v41, %v1221_v45 }
0x1319   :  { %v1226_v14 = vsel %vm1225_vm4, %v2314_v41, %v1222_v10 }
0x131a   :  { %v1231_v40 = vsel %vm1228_vm5, %v1230_v9, %v1226_v14 }
0x131b   :  { %v1233_v47 = vsel %vm1216_vm7, %v1231_v40, %v1215_v36 }
0x131c   :  { %v1236_v15 = vadd.f32 1.0, %v1233_v47  ;;  %v2186_v56 = vadd.f32 -1.0, %v1233_v47  ;;  %vm1234_vm11 = vcmp.gt.f32.partialorder %v1233_v47, 0.41421357 }
0x131e   :  { %2315 = vrcp.f32 %v1236_v15  ;;  %v1248_v50 = vand.u32 2147483648, %v1236_v15  ;;  %v1246_v52 = vand.u32 2147483647, %v1236_v15  ;;  %vm1242_vm10 = vweird.f32 %v1236_v15 }
0x1320   :  { %v1249_v55 = vor.u32 1.1754944e-38, %v1248_v50  ;;  %vm1247_vm12 = vcmp.eq.f32.partialorder %v1246_v52, 8.507059e+37 }
0x1324   :  { %v2316_v48 = vpop.eup %2315 }
0x1325   :  { %v1238_v49 = vmul.f32 %v2316_v48, %v1236_v15  ;;  %vm1243_vm8 = vweird.f32 %v2316_v48 }
0x1326   :  { %vm1244_vm6 = vmor %vm1242_vm10, %vm1243_vm8 }
0x1327   :  { %v1239_v13 = vsub.f32 1.0, %v1238_v49 }
0x1329   :  { %v1240_v51 = vmul.f32 %v2316_v48, %v1239_v13 }
0x132b   :  { %v1241_v54 = vadd.f32 %v2316_v48, %v1240_v51 }
0x132d   :  { %v1245_v59 = vsel %vm1244_vm6, %v2316_v48, %v1241_v54 }
0x132e   :  { %v1250_v60 = vsel %vm1247_vm12, %v1249_v55, %v1245_v59 }
0x132f   :  { %v1251_v1 = vmul.f32 %v2186_v56, %v1250_v60 }
0x1331   :  { %v1252_v2 = vsel %vm1234_vm11, %v1251_v1, %v1233_v47 }
0x1332   :  { %v1253_v3 = vmul.f32 %v1252_v2, %v1252_v2 }
0x1334   :  { %v1254_v4 = vmul.f32 0.07692308, %v1253_v3 }
0x1336   :  { %v1255_v62 = vsub.f32 0.09090909, %v1254_v4 }
0x1338   :  { %v1256_v6 = vmul.f32 %v1255_v62, %v1253_v3 }
0x133a   :  { %v1257_v61 = vsub.f32 0.11111111, %v1256_v6 }
0x133c   :  { %v1258_v7 = vmul.f32 %v1257_v61, %v1253_v3 }
0x133e   :  { %v1259_v8 = vsub.f32 0.14285715, %v1258_v7 }
0x1340   :  { %v1260_v12 = vmul.f32 %v1259_v8, %v1253_v3 }
0x1342   :  { %v1261_v16 = vsub.f32 0.2, %v1260_v12 }
0x1344   :  { %v1262_v17 = vmul.f32 %v1261_v16, %v1253_v3 }
0x1346   :  { %v1263_v18 = vsub.f32 0.33333334, %v1262_v17 }
0x1348   :  { %v1264_v20 = vmul.f32 %v1263_v18, %v1253_v3 }
0x134a   :  { %v1265_v22 = vsub.f32 1.0, %v1264_v20 }
0x134c   :  { %v1266_v23 = vmul.f32 %v1265_v22, %v1252_v2 }
0x134e   :  { %v1267_v24 = vadd.f32 0.7853982, %v1266_v23 }
0x1350   :  { %v1268_v26 = vsel %vm1234_vm11, %v1267_v24, %v1266_v23 }
0x1351   :  { %v1269_v29 = vsub.f32 1.5707964, %v1268_v26 }
0x1353   :  { %v1270_v0 = vsel %vm1216_vm7, %v1269_v29, %v1268_v26 }
0x1354   :  { %v1272_v30 = vsub.f32 0.0, %v1270_v0 }
0x1356   :  { %v1273_v32 = vsel %vm1271_vm13, %v1272_v30, %v1270_v0 }
0x1357   :  { %2187 = vmatmul.msk.f32.vlgmr.msra.gmra.mxu2 %vm112_vm9, %v1273_v32 }
0x13da   :  { %v1294_v33 = vpop.f32.mrf.mxu2 }
0x13db   :  { %2317 = vtanh.f32 %v1294_v33 }
0x13e1   :  { %v2716_v34 = vpop.eup %2317 }
0x13e2   :  { %v1309_v37 = vmul.f32 %v2716_v34, %v2716_v34 }
0x13e4   :  { %1311 = vrot.lane.b32.xlu1 %v1309_v37, %s2413_s15 }
0x1456   :  { %v1312_v41 = vpop.permute.xlu1 %1311 }
0x1457   :  { %v1314_v42 = vsel %vm50_vm1, %v2716_v34, %v1312_v41  ;;  %v1374_v41 = vld [vmem:[#allocation4 + $0x5] sm:$0x1] }
0x1458   :  { %v1315_v36 = vand.u32 2147483647, %v1314_v42  ;;  %vm1371_vm12 = vcmp.lt.f32.partialorder %v1314_v42, 0.0 }
0x145a   :  { %v1317_v28 = vmax.f32 %v1315_v36, 1e-30  ;;  %vm1316_vm4 = vcmp.gt.f32.partialorder %v1315_v36, 1.0 }
0x145c   :  { %2319 = vrcp.f32 %v1317_v28  ;;  %v1329_v46 = vand.u32 2147483648, %v1317_v28  ;;  %v1327_v9 = vand.u32 2147483647, %v1317_v28  ;;  %vm1323_vm15 = vweird.f32 %v1317_v28 }
0x145e   :  { %v1330_v40 = vor.u32 1.1754944e-38, %v1329_v46  ;;  %vm1328_vm3 = vcmp.eq.f32.partialorder %v1327_v9, 8.507059e+37 }
0x1462   :  { %v2320_v35 = vpop.eup %2319 }
0x1463   :  { %v1319_v44 = vmul.f32 %v2320_v35, %v1317_v28  ;;  %vm1324_vm14 = vweird.f32 %v2320_v35 }
0x1464   :  { %vm1325_vm2 = vmor %vm1323_vm15, %vm1324_vm14 }
0x1465   :  { %v1320_v45 = vsub.f32 1.0, %v1319_v44 }
0x1467   :  { %v1321_v10 = vmul.f32 %v2320_v35, %v1320_v45 }
0x1469   :  { %v1322_v14 = vadd.f32 %v2320_v35, %v1321_v10 }
0x146b   :  { %v1326_v47 = vsel %vm1325_vm2, %v2320_v35, %v1322_v14 }
0x146c   :  { %v1331_v15 = vsel %vm1328_vm3, %v1330_v40, %v1326_v47 }
0x146d   :  { %v1333_v48 = vsel %vm1316_vm4, %v1331_v15, %v1315_v36 }
0x146e   :  { %v1336_v49 = vadd.f32 1.0, %v1333_v48  ;;  %v2188_v60 = vadd.f32 -1.0, %v1333_v48  ;;  %vm1334_vm6 = vcmp.gt.f32.partialorder %v1333_v48, 0.41421357 }
0x1470   :  { %2321 = vrcp.f32 %v1336_v49  ;;  %v1348_v52 = vand.u32 2147483648, %v1336_v49  ;;  %v1346_v55 = vand.u32 2147483647, %v1336_v49  ;;  %vm1342_vm7 = vweird.f32 %v1336_v49 }
0x1472   :  { %v1349_v59 = vor.u32 1.1754944e-38, %v1348_v52  ;;  %vm1347_vm10 = vcmp.eq.f32.partialorder %v1346_v55, 8.507059e+37 }
0x1476   :  { %v2322_v13 = vpop.eup %2321 }
0x1477   :  { %v1338_v50 = vmul.f32 %v2322_v13, %v1336_v49  ;;  %vm1343_vm5 = vweird.f32 %v2322_v13 }
0x1478   :  { %vm1344_vm8 = vmor %vm1342_vm7, %vm1343_vm5 }
0x1479   :  { %v1339_v51 = vsub.f32 1.0, %v1338_v50 }
0x147b   :  { %v1340_v54 = vmul.f32 %v2322_v13, %v1339_v51 }
0x147d   :  { %v1341_v56 = vadd.f32 %v2322_v13, %v1340_v54 }
0x147f   :  { %v1345_v1 = vsel %vm1344_vm8, %v2322_v13, %v1341_v56 }
0x1480   :  { %v1350_v2 = vsel %vm1347_vm10, %v1349_v59, %v1345_v1 }
0x1481   :  { %v1351_v3 = vmul.f32 %v2188_v60, %v1350_v2 }
0x1483   :  { %v1352_v4 = vsel %vm1334_vm6, %v1351_v3, %v1333_v48 }
0x1484   :  { %v1353_v62 = vmul.f32 %v1352_v4, %v1352_v4 }
0x1486   :  { %v1354_v6 = vmul.f32 0.07692308, %v1353_v62 }
0x1488   :  { %v1355_v61 = vsub.f32 0.09090909, %v1354_v6 }
0x148a   :  { %v1356_v7 = vmul.f32 %v1355_v61, %v1353_v62 }
0x148c   :  { %v1357_v8 = vsub.f32 0.11111111, %v1356_v7 }
0x148e   :  { %v1358_v12 = vmul.f32 %v1357_v8, %v1353_v62 }
0x1490   :  { %v1359_v16 = vsub.f32 0.14285715, %v1358_v12 }
0x1492   :  { %v1360_v17 = vmul.f32 %v1359_v16, %v1353_v62 }
0x1494   :  { %v1361_v18 = vsub.f32 0.2, %v1360_v17 }
0x1496   :  { %v1362_v20 = vmul.f32 %v1361_v18, %v1353_v62 }
0x1498   :  { %v1363_v22 = vsub.f32 0.33333334, %v1362_v20 }
0x149a   :  { %v1364_v23 = vmul.f32 %v1363_v22, %v1353_v62 }
0x149c   :  { %v1365_v24 = vsub.f32 1.0, %v1364_v23 }
0x149e   :  { %v1366_v26 = vmul.f32 %v1365_v24, %v1352_v4 }
0x14a0   :  { %v1367_v29 = vadd.f32 0.7853982, %v1366_v26 }
0x14a2   :  { %v1368_v0 = vsel %vm1334_vm6, %v1367_v29, %v1366_v26 }
0x14a3   :  { %v1369_v30 = vsub.f32 1.5707964, %v1368_v0 }
0x14a5   :  { %v1370_v32 = vsel %vm1316_vm4, %v1369_v30, %v1368_v0 }
0x14a6   :  { %v1372_v33 = vsub.f32 0.0, %v1370_v32 }
0x14a8   :  { %v1373_v37 = vsel %vm1371_vm12, %v1372_v33, %v1370_v32 }
0x14a9   :  { %2189 = vmatmul.msk.f32.vlgmr.msra.gmra.mxu3 %vm112_vm9, %v1373_v37 }
0x152c   :  { %v1395_v28 = vpop.f32.mrf.mxu3 }
0x152d   :  { %v1398_v35 = vadd.f32 %v1395_v28, %v1374_v41 }
0x152f   :  { %2323 = vtanh.f32 %v1398_v35 }
0x1535   :  { %v2324_v44 = vpop.eup %2323 }
0x1536   :  { %2325 = vtanh.f32 %v2324_v44  ;;  %v2190_v46 = vmul.f32 -1.442695, %v2324_v44 }
0x1538   :  { %2327 = vpow2.f32 %v2190_v46 }
0x153c   :  { %v2326_v45 = vpop.eup %2325 }
0x153d   :  { %1422 = vrot.lane.b32.xlu2 %v2326_v45, %s2414_s18 }
0x153e   :  { %v2328_v10 = vpop.eup %2327 }
0x153f   :  { %v1403_v9 = vadd.f32 1.0, %v2328_v10 }
0x1541   :  { %2329 = vrcp.f32 %v1403_v9  ;;  %v1415_v15 = vand.u32 2147483648, %v1403_v9  ;;  %vm1409_vm13 = vweird.f32 %v1403_v9  ;;  %v1413_v48 = vand.u32 2147483647, %v1403_v9 }
0x1543   :  { %v1416_v13 = vor.u32 1.1754944e-38, %v1415_v15  ;;  %vm1414_vm15 = vcmp.eq.f32.partialorder %v1413_v48, 8.507059e+37 }
0x1547   :  { %v2330_v36 = vpop.eup %2329 }
0x1548   :  { %v1405_v14 = vmul.f32 %v2330_v36, %v1403_v9  ;;  %vm1410_vm11 = vweird.f32 %v2330_v36 }
0x1549   :  { %vm1411_vm14 = vmor %vm1409_vm13, %vm1410_vm11 }
0x154a   :  { %v1406_v42 = vsub.f32 1.0, %v1405_v14 }
0x154c   :  { %v1407_v40 = vmul.f32 %v2330_v36, %v1406_v42 }
0x154e   :  { %v1408_v47 = vadd.f32 %v2330_v36, %v1407_v40 }
0x1550   :  { %v1412_v49 = vsel %vm1411_vm14, %v2330_v36, %v1408_v47 }
0x1551   :  { %v1417_v51 = vsel %vm1414_vm15, %v1416_v13, %v1412_v49 }
0x1552   :  { %v1420_v54 = vmul.f32 %v1417_v51, %v2699_v27 }
0x1597   :  { %v1423_v50 = vpop.permute.xlu2 %1422 }
0x1598   :  { %v1425_v52 = vmul.f32 %v1423_v50, %v1417_v51 }
0x159a   :  { %1427 = vrot.lane.b32.xlu0 %v1425_v52, %s2414_s18 }
0x160c   :  { %v1428_v55 = vpop.permute.xlu0 %1427 }
0x160d   :  { %v2731_v56 = vadd.f32 %v1428_v55, %v1420_v54 }
0x160f   :  { %2331 = vtanh.f32 %v2731_v56 }
0x1615   :  { %v2332_v59 = vpop.eup %2331 }
0x1616   :  { %v1433_v60 = vperm.slane %v2332_v59, 0 }
0x1618   :  { %1434 = vrot.lane.b32.xlu1 %v1433_v60, %s2415_s2 }
0x168a   :  { %v1435_v1 = vpop.permute.xlu1 %1434 }
0x168b   :  { %v2735_v2 = vmul.f32 %v1435_v1, %v1417_v51 }
0x168d   :  { %1440 = vrot.lane.b32.xlu2 %v2735_v2, %s2416_s19  ;;  %v1438_v3 = vmul.f32 %v2735_v2, %v2735_v2 }
0x168f   :  { %1444 = vrot.lane.b32.xlu0 %v1438_v3, %s2417_s20 }
0x16e7   :  { %v1441_v4 = vpop.permute.xlu2 %1440 }
0x1701   :  { %v1445_v62 = vpop.permute.xlu0 %1444 }
0x1702   :  { %v1447_v6 = vsel %vm50_vm1, %v1441_v4, %v1445_v62 }
0x1703   :  { %v1448_v61 = vand.u32 2147483647, %v1447_v6  ;;  %vm1504_vm13 = vcmp.lt.f32.partialorder %v1447_v6, 0.0 }
0x1705   :  { %v1450_v7 = vmax.f32 %v1448_v61, 1e-30  ;;  %vm1449_vm7 = vcmp.gt.f32.partialorder %v1448_v61, 1.0 }
0x1707   :  { %2333 = vrcp.f32 %v1450_v7  ;;  %v1462_v17 = vand.u32 2147483648, %v1450_v7  ;;  %v1460_v20 = vand.u32 2147483647, %v1450_v7  ;;  %vm1456_vm3 = vweird.f32 %v1450_v7 }
0x1709   :  { %v1463_v23 = vor.u32 1.1754944e-38, %v1462_v17  ;;  %vm1461_vm5 = vcmp.eq.f32.partialorder %v1460_v20, 8.507059e+37 }
0x170d   :  { %v2334_v8 = vpop.eup %2333 }
0x170e   :  { %v1452_v12 = vmul.f32 %v2334_v8, %v1450_v7  ;;  %vm1457_vm2 = vweird.f32 %v2334_v8 }
0x170f   :  { %vm1458_vm4 = vmor %vm1456_vm3, %vm1457_vm2 }
0x1710   :  { %v1453_v16 = vsub.f32 1.0, %v1452_v12 }
0x1712   :  { %v1454_v18 = vmul.f32 %v2334_v8, %v1453_v16 }
0x1714   :  { %v1455_v22 = vadd.f32 %v2334_v8, %v1454_v18 }
0x1716   :  { %v1459_v24 = vsel %vm1458_vm4, %v2334_v8, %v1455_v22 }
0x1717   :  { %v1464_v26 = vsel %vm1461_vm5, %v1463_v23, %v1459_v24 }
0x1718   :  { %v1466_v29 = vsel %vm1449_vm7, %v1464_v26, %v1448_v61 }
0x1719   :  { %v1469_v0 = vadd.f32 1.0, %v1466_v29  ;;  %v2191_v45 = vadd.f32 -1.0, %v1466_v29  ;;  %vm1467_vm11 = vcmp.gt.f32.partialorder %v1466_v29, 0.41421357 }
0x171b   :  { %2335 = vrcp.f32 %v1469_v0  ;;  %v1481_v37 = vand.u32 2147483648, %v1469_v0  ;;  %v1479_v28 = vand.u32 2147483647, %v1469_v0  ;;  %vm1475_vm10 = vweird.f32 %v1469_v0 }
0x171d   :  { %v1482_v44 = vor.u32 1.1754944e-38, %v1481_v37  ;;  %vm1480_vm12 = vcmp.eq.f32.partialorder %v1479_v28, 8.507059e+37 }
0x1721   :  { %v2336_v30 = vpop.eup %2335 }
0x1722   :  { %v1471_v32 = vmul.f32 %v2336_v30, %v1469_v0  ;;  %vm1476_vm8 = vweird.f32 %v2336_v30 }
0x1723   :  { %vm1477_vm6 = vmor %vm1475_vm10, %vm1476_vm8 }
0x1724   :  { %v1472_v33 = vsub.f32 1.0, %v1471_v32 }
0x1726   :  { %v1473_v41 = vmul.f32 %v2336_v30, %v1472_v33 }
0x1728   :  { %v1474_v35 = vadd.f32 %v2336_v30, %v1473_v41 }
0x172a   :  { %v1478_v46 = vsel %vm1477_vm6, %v2336_v30, %v1474_v35 }
0x172b   :  { %v1483_v10 = vsel %vm1480_vm12, %v1482_v44, %v1478_v46 }
0x172c   :  { %v1484_v9 = vmul.f32 %v2191_v45, %v1483_v10 }
0x172e   :  { %v1485_v36 = vsel %vm1467_vm11, %v1484_v9, %v1466_v29 }
0x172f   :  { %v1486_v14 = vmul.f32 %v1485_v36, %v1485_v36 }
0x1731   :  { %v1487_v42 = vmul.f32 0.07692308, %v1486_v14 }
0x1733   :  { %v1488_v40 = vsub.f32 0.09090909, %v1487_v42 }
0x1735   :  { %v1489_v47 = vmul.f32 %v1488_v40, %v1486_v14 }
0x1737   :  { %v1490_v15 = vsub.f32 0.11111111, %v1489_v47 }
0x1739   :  { %v1491_v48 = vmul.f32 %v1490_v15, %v1486_v14 }
0x173b   :  { %v1492_v49 = vsub.f32 0.14285715, %v1491_v48 }
0x173d   :  { %v1493_v13 = vmul.f32 %v1492_v49, %v1486_v14 }
0x173f   :  { %v1494_v50 = vsub.f32 0.2, %v1493_v13 }
0x1741   :  { %v1495_v51 = vmul.f32 %v1494_v50, %v1486_v14 }
0x1743   :  { %v1496_v52 = vsub.f32 0.33333334, %v1495_v51 }
0x1745   :  { %v1497_v54 = vmul.f32 %v1496_v52, %v1486_v14 }
0x1747   :  { %v1498_v55 = vsub.f32 1.0, %v1497_v54 }
0x1749   :  { %v1499_v59 = vmul.f32 %v1498_v55, %v1485_v36 }
0x174b   :  { %v1500_v60 = vadd.f32 0.7853982, %v1499_v59 }
0x174d   :  { %v1501_v1 = vsel %vm1467_vm11, %v1500_v60, %v1499_v59 }
0x174e   :  { %v1502_v3 = vsub.f32 1.5707964, %v1501_v1 }
0x1750   :  { %v1503_v4 = vsel %vm1449_vm7, %v1502_v3, %v1501_v1 }
0x1751   :  { %v1505_v62 = vsub.f32 0.0, %v1503_v4 }
0x1753   :  { %v1506_v7 = vsel %vm1504_vm13, %v1505_v62, %v1503_v4 }
0x1754   :  { %2192 = vmatmul.msk.f32.vlgmr.msrb.gmra.mxu0 %vm112_vm9, %v1506_v7 }
0x17d1   :  { %v1527_v8 = vpop.f32.mrf.mxu0 }
0x17d2   :  { %2337 = vtanh.f32 %v1527_v8 }
0x17d8   :  { %v2748_v12 = vpop.eup %2337 }
0x17d9   :  { %v1542_v16 = vmul.f32 %v2748_v12, %v2748_v12 }
0x17db   :  { %1544 = vrot.lane.b32.xlu1 %v1542_v16, %s2413_s15 }
0x184d   :  { %v1545_v17 = vpop.permute.xlu1 %1544 }
0x184e   :  { %v1547_v18 = vsel %vm50_vm1, %v2748_v12, %v1545_v17 }
0x184f   :  { %v1548_v61 = vand.u32 2147483647, %v1547_v18  ;;  %vm1604_vm12 = vcmp.lt.f32.partialorder %v1547_v18, 0.0 }
0x1851   :  { %v1550_v20 = vmax.f32 %v1548_v61, 1e-30  ;;  %vm1549_vm4 = vcmp.gt.f32.partialorder %v1548_v61, 1.0 }
0x1853   :  { %2339 = vrcp.f32 %v1550_v20  ;;  %v1562_v24 = vand.u32 2147483648, %v1550_v20  ;;  %v1560_v29 = vand.u32 2147483647, %v1550_v20  ;;  %vm1556_vm15 = vweird.f32 %v1550_v20 }
0x1855   :  { %v1563_v30 = vor.u32 1.1754944e-38, %v1562_v24  ;;  %vm1561_vm3 = vcmp.eq.f32.partialorder %v1560_v29, 8.507059e+37 }
0x1859   :  { %v2340_v6 = vpop.eup %2339 }
0x185a   :  { %v1552_v22 = vmul.f32 %v2340_v6, %v1550_v20  ;;  %vm1557_vm14 = vweird.f32 %v2340_v6 }
0x185b   :  { %vm1558_vm2 = vmor %vm1556_vm15, %vm1557_vm14 }
0x185c   :  { %v1553_v23 = vsub.f32 1.0, %v1552_v22  ;;  %v1607_v22 = vld [vmem:[#allocation4 + $0x6] sm:$0x1] }
0x185e   :  { %v1554_v26 = vmul.f32 %v2340_v6, %v1553_v23 }
0x1860   :  { %v1555_v0 = vadd.f32 %v2340_v6, %v1554_v26 }
0x1862   :  { %v1559_v32 = vsel %vm1558_vm2, %v2340_v6, %v1555_v0 }
0x1863   :  { %v1564_v33 = vsel %vm1561_vm3, %v1563_v30, %v1559_v32 }
0x1864   :  { %v1566_v37 = vsel %vm1549_vm4, %v1564_v33, %v1548_v61 }
0x1865   :  { %v1569_v41 = vadd.f32 1.0, %v1566_v37  ;;  %v2193_v14 = vadd.f32 -1.0, %v1566_v37  ;;  %vm1567_vm6 = vcmp.gt.f32.partialorder %v1566_v37, 0.41421357 }
0x1867   :  { %2341 = vrcp.f32 %v1569_v41  ;;  %v1581_v45 = vand.u32 2147483648, %v1569_v41  ;;  %v1579_v10 = vand.u32 2147483647, %v1569_v41  ;;  %vm1575_vm7 = vweird.f32 %v1569_v41 }
0x1869   :  { %v1582_v36 = vor.u32 1.1754944e-38, %v1581_v45  ;;  %vm1580_vm10 = vcmp.eq.f32.partialorder %v1579_v10, 8.507059e+37 }
0x186d   :  { %v2342_v28 = vpop.eup %2341 }
0x186e   :  { %v1571_v35 = vmul.f32 %v2342_v28, %v1569_v41  ;;  %vm1576_vm5 = vweird.f32 %v2342_v28 }
0x186f   :  { %vm1577_vm8 = vmor %vm1575_vm7, %vm1576_vm5 }
0x1870   :  { %v1572_v44 = vsub.f32 1.0, %v1571_v35 }
0x1872   :  { %v1573_v46 = vmul.f32 %v2342_v28, %v1572_v44 }
0x1874   :  { %v1574_v9 = vadd.f32 %v2342_v28, %v1573_v46 }
0x1876   :  { %v1578_v42 = vsel %vm1577_vm8, %v2342_v28, %v1574_v9 }
0x1877   :  { %v1583_v40 = vsel %vm1580_vm10, %v1582_v36, %v1578_v42 }
0x1878   :  { %v1584_v47 = vmul.f32 %v2193_v14, %v1583_v40 }
0x187a   :  { %v1585_v15 = vsel %vm1567_vm6, %v1584_v47, %v1566_v37 }
0x187b   :  { %v1586_v48 = vmul.f32 %v1585_v15, %v1585_v15 }
0x187d   :  { %v1587_v49 = vmul.f32 0.07692308, %v1586_v48 }
0x187f   :  { %v1588_v13 = vsub.f32 0.09090909, %v1587_v49 }
0x1881   :  { %v1589_v50 = vmul.f32 %v1588_v13, %v1586_v48 }
0x1883   :  { %v1590_v51 = vsub.f32 0.11111111, %v1589_v50 }
0x1885   :  { %v1591_v52 = vmul.f32 %v1590_v51, %v1586_v48 }
0x1887   :  { %v1592_v54 = vsub.f32 0.14285715, %v1591_v52 }
0x1889   :  { %v1593_v55 = vmul.f32 %v1592_v54, %v1586_v48 }
0x188b   :  { %v1594_v59 = vsub.f32 0.2, %v1593_v55 }
0x188d   :  { %v1595_v60 = vmul.f32 %v1594_v59, %v1586_v48 }
0x188f   :  { %v1596_v1 = vsub.f32 0.33333334, %v1595_v60 }
0x1891   :  { %v1597_v3 = vmul.f32 %v1596_v1, %v1586_v48 }
0x1893   :  { %v1598_v4 = vsub.f32 1.0, %v1597_v3 }
0x1895   :  { %v1599_v62 = vmul.f32 %v1598_v4, %v1585_v15 }
0x1897   :  { %v1600_v7 = vadd.f32 0.7853982, %v1599_v62 }
0x1899   :  { %v1601_v8 = vsel %vm1567_vm6, %v1600_v7, %v1599_v62 }
0x189a   :  { %v1602_v16 = vsub.f32 1.5707964, %v1601_v8 }
0x189c   :  { %v1603_v17 = vsel %vm1549_vm4, %v1602_v16, %v1601_v8 }
0x189d   :  { %v1605_v20 = vsub.f32 0.0, %v1603_v17 }
0x189f   :  { %v1606_v6 = vsel %vm1604_vm12, %v1605_v20, %v1603_v17 }
0x18a0   :  { %2194 = vmatmul.msk.f32.vlgmr.msrb.gmra.mxu1 %vm112_vm9, %v1606_v6 }
0x191d   :  { %v1628_v23 = vpop.f32.mrf.mxu1 }
0x191e   :  { %v1631_v24 = vadd.f32 %v1628_v23, %v1607_v22 }
0x1920   :  { %2343 = vtanh.f32 %v1631_v24 }
0x1926   :  { %v2344_v26 = vpop.eup %2343 }
0x1927   :  { %2345 = vtanh.f32 %v2344_v26  ;;  %v2195_v0 = vmul.f32 -1.442695, %v2344_v26 }
0x1929   :  { %2347 = vpow2.f32 %v2195_v0 }
0x192d   :  { %v2346_v29 = vpop.eup %2345 }
0x192e   :  { %1655 = vrot.lane.b32.xlu2 %v2346_v29, %s2414_s18 }
0x192f   :  { %v2348_v30 = vpop.eup %2347 }
0x1930   :  { %v1636_v32 = vadd.f32 1.0, %v2348_v30 }
0x1932   :  { %2349 = vrcp.f32 %v1636_v32  ;;  %v1648_v28 = vand.u32 2147483648, %v1636_v32  ;;  %vm1642_vm13 = vweird.f32 %v1636_v32  ;;  %v1646_v35 = vand.u32 2147483647, %v1636_v32 }
0x1934   :  { %v1649_v45 = vor.u32 1.1754944e-38, %v1648_v28  ;;  %vm1647_vm15 = vcmp.eq.f32.partialorder %v1646_v35, 8.507059e+37 }
0x1938   :  { %v2350_v61 = vpop.eup %2349 }
0x1939   :  { %v1638_v33 = vmul.f32 %v2350_v61, %v1636_v32  ;;  %vm1643_vm11 = vweird.f32 %v2350_v61 }
0x193a   :  { %vm1644_vm14 = vmor %vm1642_vm13, %vm1643_vm11 }
0x193b   :  { %v1639_v18 = vsub.f32 1.0, %v1638_v33 }
0x193d   :  { %v1640_v37 = vmul.f32 %v2350_v61, %v1639_v18 }
0x193f   :  { %v1641_v41 = vadd.f32 %v2350_v61, %v1640_v37 }
0x1941   :  { %v1645_v44 = vsel %vm1644_vm14, %v2350_v61, %v1641_v41 }
0x1942   :  { %v1650_v10 = vsel %vm1647_vm15, %v1649_v45, %v1645_v44 }
0x1943   :  { %v1653_v36 = vmul.f32 %v1650_v10, %v2731_v56 }
0x1988   :  { %v1656_v46 = vpop.permute.xlu2 %1655 }
0x1989   :  { %v1658_v9 = vmul.f32 %v1656_v46, %v1650_v10 }
0x198b   :  { %1660 = vrot.lane.b32.xlu0 %v1658_v9, %s2414_s18 }
0x19fd   :  { %v1661_v14 = vpop.permute.xlu0 %1660 }
0x19fe   :  { %v2763_v42 = vadd.f32 %v1661_v14, %v1653_v36 }
0x1a00   :  { %2351 = vtanh.f32 %v2763_v42 }
0x1a06   :  { %v2352_v40 = vpop.eup %2351 }
0x1a07   :  { %v1666_v47 = vperm.slane %v2352_v40, 0 }
0x1a09   :  { %1667 = vrot.lane.b32.xlu1 %v1666_v47, %s2415_s2 }
0x1a7b   :  { %v1668_v15 = vpop.permute.xlu1 %1667 }
0x1a7c   :  { %v2767_v48 = vmul.f32 %v1668_v15, %v1650_v10 }
0x1a7e   :  { %1673 = vrot.lane.b32.xlu2 %v2767_v48, %s2416_s19  ;;  %v1671_v49 = vmul.f32 %v2767_v48, %v2767_v48 }
0x1a80   :  { %1677 = vrot.lane.b32.xlu0 %v1671_v49, %s2417_s20 }
0x1ad8   :  { %v1674_v13 = vpop.permute.xlu2 %1673 }
0x1af2   :  { %v1678_v50 = vpop.permute.xlu0 %1677 }
0x1af3   :  { %v1680_v51 = vsel %vm50_vm1, %v1674_v13, %v1678_v50 }
0x1af4   :  { %v1681_v52 = vand.u32 2147483647, %v1680_v51  ;;  %vm1737_vm13 = vcmp.lt.f32.partialorder %v1680_v51, 0.0 }
0x1af6   :  { %v1683_v54 = vmax.f32 %v1681_v52, 1e-30  ;;  %vm1682_vm7 = vcmp.gt.f32.partialorder %v1681_v52, 1.0 }
0x1af8   :  { %2353 = vrcp.f32 %v1683_v54  ;;  %v1695_v1 = vand.u32 2147483648, %v1683_v54  ;;  %v1693_v4 = vand.u32 2147483647, %v1683_v54  ;;  %vm1689_vm3 = vweird.f32 %v1683_v54 }
0x1afa   :  { %v1696_v7 = vor.u32 1.1754944e-38, %v1695_v1  ;;  %vm1694_vm5 = vcmp.eq.f32.partialorder %v1693_v4, 8.507059e+37 }
0x1afe   :  { %v2354_v55 = vpop.eup %2353 }
0x1aff   :  { %v1685_v59 = vmul.f32 %v2354_v55, %v1683_v54  ;;  %vm1690_vm2 = vweird.f32 %v2354_v55 }
0x1b00   :  { %vm1691_vm4 = vmor %vm1689_vm3, %vm1690_vm2 }
0x1b01   :  { %v1686_v60 = vsub.f32 1.0, %v1685_v59 }
0x1b03   :  { %v1687_v3 = vmul.f32 %v2354_v55, %v1686_v60 }
0x1b05   :  { %v1688_v62 = vadd.f32 %v2354_v55, %v1687_v3 }
0x1b07   :  { %v1692_v8 = vsel %vm1691_vm4, %v2354_v55, %v1688_v62 }
0x1b08   :  { %v1697_v16 = vsel %vm1694_vm5, %v1696_v7, %v1692_v8 }
0x1b09   :  { %v1699_v17 = vsel %vm1682_vm7, %v1697_v16, %v1681_v52 }
0x1b0a   :  { %v1702_v20 = vadd.f32 1.0, %v1699_v17  ;;  %v2196_v32 = vadd.f32 -1.0, %v1699_v17  ;;  %vm1700_vm11 = vcmp.gt.f32.partialorder %v1699_v17, 0.41421357 }
0x1b0c   :  { %2355 = vrcp.f32 %v1702_v20  ;;  %v1714_v24 = vand.u32 2147483648, %v1702_v20  ;;  %v1712_v29 = vand.u32 2147483647, %v1702_v20  ;;  %vm1708_vm10 = vweird.f32 %v1702_v20 }
0x1b0e   :  { %v1715_v30 = vor.u32 1.1754944e-38, %v1714_v24  ;;  %vm1713_vm12 = vcmp.eq.f32.partialorder %v1712_v29, 8.507059e+37 }
0x1b12   :  { %v2356_v6 = vpop.eup %2355 }
0x1b13   :  { %v1704_v22 = vmul.f32 %v2356_v6, %v1702_v20  ;;  %vm1709_vm8 = vweird.f32 %v2356_v6 }
0x1b14   :  { %vm1710_vm6 = vmor %vm1708_vm10, %vm1709_vm8 }
0x1b15   :  { %v1705_v23 = vsub.f32 1.0, %v1704_v22 }
0x1b17   :  { %v1706_v26 = vmul.f32 %v2356_v6, %v1705_v23 }
0x1b19   :  { %v1707_v0 = vadd.f32 %v2356_v6, %v1706_v26 }
0x1b1b   :  { %v1711_v61 = vsel %vm1710_vm6, %v2356_v6, %v1707_v0 }
0x1b1c   :  { %v1716_v33 = vsel %vm1713_vm12, %v1715_v30, %v1711_v61 }
0x1b1d   :  { %v1717_v18 = vmul.f32 %v2196_v32, %v1716_v33 }
0x1b1f   :  { %v1718_v37 = vsel %vm1700_vm11, %v1717_v18, %v1699_v17 }
0x1b20   :  { %v1719_v41 = vmul.f32 %v1718_v37, %v1718_v37 }
0x1b22   :  { %v1720_v28 = vmul.f32 0.07692308, %v1719_v41 }
0x1b24   :  { %v1721_v35 = vsub.f32 0.09090909, %v1720_v28 }
0x1b26   :  { %v1722_v44 = vmul.f32 %v1721_v35, %v1719_v41 }
0x1b28   :  { %v1723_v45 = vsub.f32 0.11111111, %v1722_v44 }
0x1b2a   :  { %v1724_v46 = vmul.f32 %v1723_v45, %v1719_v41 }
0x1b2c   :  { %v1725_v10 = vsub.f32 0.14285715, %v1724_v46 }
0x1b2e   :  { %v1726_v9 = vmul.f32 %v1725_v10, %v1719_v41 }
0x1b30   :  { %v1727_v36 = vsub.f32 0.2, %v1726_v9 }
0x1b32   :  { %v1728_v14 = vmul.f32 %v1727_v36, %v1719_v41 }
0x1b34   :  { %v1729_v40 = vsub.f32 0.33333334, %v1728_v14 }
0x1b36   :  { %v1730_v47 = vmul.f32 %v1729_v40, %v1719_v41 }
0x1b38   :  { %v1731_v15 = vsub.f32 1.0, %v1730_v47 }
0x1b3a   :  { %v1732_v49 = vmul.f32 %v1731_v15, %v1718_v37 }
0x1b3c   :  { %v1733_v13 = vadd.f32 0.7853982, %v1732_v49 }
0x1b3e   :  { %v1734_v50 = vsel %vm1700_vm11, %v1733_v13, %v1732_v49 }
0x1b3f   :  { %v1735_v54 = vsub.f32 1.5707964, %v1734_v50 }
0x1b41   :  { %v1736_v55 = vsel %vm1682_vm7, %v1735_v54, %v1734_v50 }
0x1b42   :  { %v1738_v59 = vsub.f32 0.0, %v1736_v55 }
0x1b44   :  { %v1739_v60 = vsel %vm1737_vm13, %v1738_v59, %v1736_v55 }
0x1b45   :  { %2197 = vmatmul.msk.f32.vlgmr.msrb.gmra.mxu2 %vm112_vm9, %v1739_v60 }
0x1bc8   :  { %v1760_v1 = vpop.f32.mrf.mxu2 }
0x1bc9   :  { %2357 = vtanh.f32 %v1760_v1 }
0x1bcf   :  { %v2780_v3 = vpop.eup %2357 }
0x1bd0   :  { %v1775_v4 = vmul.f32 %v2780_v3, %v2780_v3 }
0x1bd2   :  { %1777 = vrot.lane.b32.xlu1 %v1775_v4, %s2413_s15 }
0x1c44   :  { %v1778_v62 = vpop.permute.xlu1 %1777 }
0x1c45   :  { %v1780_v7 = vsel %vm50_vm1, %v2780_v3, %v1778_v62 }
0x1c46   :  { %v1781_v52 = vand.u32 2147483647, %v1780_v7  ;;  %vm1837_vm12 = vcmp.lt.f32.partialorder %v1780_v7, 0.0 }
0x1c48   :  { %v1783_v8 = vmax.f32 %v1781_v52, 1e-30  ;;  %vm1782_vm4 = vcmp.gt.f32.partialorder %v1781_v52, 1.0 }
0x1c4a   :  { %2359 = vrcp.f32 %v1783_v8  ;;  %v1795_v20 = vand.u32 2147483648, %v1783_v8  ;;  %v1793_v22 = vand.u32 2147483647, %v1783_v8  ;;  %vm1789_vm15 = vweird.f32 %v1783_v8 }
0x1c4c   :  { %v1796_v24 = vor.u32 1.1754944e-38, %v1795_v20  ;;  %vm1794_vm3 = vcmp.eq.f32.partialorder %v1793_v22, 8.507059e+37 }
0x1c50   :  { %v2360_v51 = vpop.eup %2359 }
0x1c51   :  { %v1785_v16 = vmul.f32 %v2360_v51, %v1783_v8  ;;  %vm1790_vm14 = vweird.f32 %v2360_v51 }
0x1c52   :  { %vm1791_vm2 = vmor %vm1789_vm15, %vm1790_vm14 }
0x1c53   :  { %v1786_v17 = vsub.f32 1.0, %v1785_v16 }
0x1c55   :  { %v1787_v6 = vmul.f32 %v2360_v51, %v1786_v17 }
0x1c57   :  { %v1788_v23 = vadd.f32 %v2360_v51, %v1787_v6  ;;  %v1840_v6 = vld [vmem:[#allocation4 + $0x7] sm:$0x1] }
0x1c59   :  { %v1792_v26 = vsel %vm1791_vm2, %v2360_v51, %v1788_v23  ;;  %vm375_vm2 = vcmask 90112  }
0x1c5a   :  { %v1797_v29 = vsel %vm1794_vm3, %v1796_v24, %v1792_v26 }
0x1c5b   :  { %v1799_v0 = vsel %vm1782_vm4, %v1797_v29, %v1781_v52 }
0x1c5c   :  { %v1802_v30 = vadd.f32 1.0, %v1799_v0  ;;  %v2198_v44 = vadd.f32 -1.0, %v1799_v0  ;;  %vm1800_vm6 = vcmp.gt.f32.partialorder %v1799_v0, 0.41421357 }
0x1c5e   :  { %2361 = vrcp.f32 %v1802_v30  ;;  %v1814_v18 = vand.u32 2147483648, %v1802_v30  ;;  %v1812_v41 = vand.u32 2147483647, %v1802_v30  ;;  %vm1808_vm7 = vweird.f32 %v1802_v30 }
0x1c60   :  { %v1815_v35 = vor.u32 1.1754944e-38, %v1814_v18  ;;  %vm1813_vm10 = vcmp.eq.f32.partialorder %v1812_v41, 8.507059e+37 }
0x1c64   :  { %v2362_v32 = vpop.eup %2361 }
0x1c65   :  { %v1804_v61 = vmul.f32 %v2362_v32, %v1802_v30  ;;  %vm1809_vm5 = vweird.f32 %v2362_v32 }
0x1c66   :  { %vm1810_vm8 = vmor %vm1808_vm7, %vm1809_vm5 }
0x1c67   :  { %v1805_v33 = vsub.f32 1.0, %v1804_v61 }
0x1c69   :  { %v1806_v37 = vmul.f32 %v2362_v32, %v1805_v33 }
0x1c6b   :  { %v1807_v28 = vadd.f32 %v2362_v32, %v1806_v37 }
0x1c6d   :  { %v1811_v45 = vsel %vm1810_vm8, %v2362_v32, %v1807_v28 }
0x1c6e   :  { %v1816_v46 = vsel %vm1813_vm10, %v1815_v35, %v1811_v45 }
0x1c6f   :  { %v1817_v10 = vmul.f32 %v2198_v44, %v1816_v46 }
0x1c71   :  { %v1818_v9 = vsel %vm1800_vm6, %v1817_v10, %v1799_v0 }
0x1c72   :  { %v1819_v36 = vmul.f32 %v1818_v9, %v1818_v9 }
0x1c74   :  { %v1820_v14 = vmul.f32 0.07692308, %v1819_v36 }
0x1c76   :  { %v1821_v40 = vsub.f32 0.09090909, %v1820_v14 }
0x1c78   :  { %v1822_v47 = vmul.f32 %v1821_v40, %v1819_v36  ;;  %v366_v40 = vperm.slane %v2551_v5, 0 }
0x1c7a   :  { %v1823_v15 = vsub.f32 0.11111111, %v1822_v47  ;;  %v1066_v47 = vperm.slane %v2664_v53, 0  ;;  %v600_v53 = vperm.slane %v2594_v21, 0 }
0x1c7c   :  { %v1824_v49 = vmul.f32 %v1823_v15, %v1819_v36  ;;  %v1765_v15 = vperm.slane %v2763_v42, 0 }
0x1c7e   :  { %v1825_v13 = vsub.f32 0.14285715, %v1824_v49 }
0x1c80   :  { %v1826_v50 = vmul.f32 %v1825_v13, %v1819_v36 }
0x1c82   :  { %v1827_v54 = vsub.f32 0.2, %v1826_v50 }
0x1c84   :  { %v1828_v55 = vmul.f32 %v1827_v54, %v1819_v36 }
0x1c86   :  { %v1829_v59 = vsub.f32 0.33333334, %v1828_v55 }
0x1c88   :  { %v1830_v60 = vmul.f32 %v1829_v59, %v1819_v36 }
0x1c8a   :  { %v1831_v1 = vsub.f32 1.0, %v1830_v60 }
0x1c8c   :  { %v1832_v4 = vmul.f32 %v1831_v1, %v1818_v9 }
0x1c8e   :  { %v1833_v62 = vadd.f32 0.7853982, %v1832_v4 }
0x1c90   :  { %v1834_v8 = vsel %vm1800_vm6, %v1833_v62, %v1832_v4 }
0x1c91   :  { %v1835_v51 = vsub.f32 1.5707964, %v1834_v8 }
0x1c93   :  { %v1836_v16 = vsel %vm1782_vm4, %v1835_v51, %v1834_v8 }
0x1c94   :  { %v1838_v17 = vsub.f32 0.0, %v1836_v16 }
0x1c96   :  { %v1839_v20 = vsel %vm1837_vm12, %v1838_v17, %v1836_v16 }
0x1c97   :  { %2199 = vmatmul.msk.f32.vlgmr.msrb.gmra.mxu3 %vm112_vm9, %v1839_v20 }
0x1d1a   :  { %v1861_v22 = vpop.f32.mrf.mxu3 }
0x1d1b   :  { %v1864_v23 = vadd.f32 %v1861_v22, %v1840_v6 }
0x1d1d   :  { %2363 = vtanh.f32 %v1864_v23 }
0x1d23   :  { %v2364_v24 = vpop.eup %2363 }
0x1d24   :  { %2365 = vtanh.f32 %v2364_v24  ;;  %v2200_v29 = vmul.f32 -1.442695, %v2364_v24 }
0x1d26   :  { %2367 = vpow2.f32 %v2200_v29 }
0x1d2a   :  { %v2366_v26 = vpop.eup %2365 }
0x1d2b   :  { %1888 = vrot.lane.b32.xlu2 %v2366_v26, %s2414_s18 }
0x1d2c   :  { %v2368_v0 = vpop.eup %2367 }
0x1d2d   :  { %v1869_v30 = vadd.f32 1.0, %v2368_v0 }
0x1d2f   :  { %2369 = vrcp.f32 %v1869_v30  ;;  %v1881_v18 = vand.u32 2147483648, %v1869_v30  ;;  %vm1875_vm13 = vweird.f32 %v1869_v30  ;;  %v1879_v37 = vand.u32 2147483647, %v1869_v30 }
0x1d31   :  { %v1882_v28 = vor.u32 1.1754944e-38, %v1881_v18  ;;  %vm1880_vm15 = vcmp.eq.f32.partialorder %v1879_v37, 8.507059e+37 }
0x1d35   :  { %v2370_v52 = vpop.eup %2369 }
0x1d36   :  { %v1871_v32 = vmul.f32 %v2370_v52, %v1869_v30  ;;  %vm1876_vm11 = vweird.f32 %v2370_v52 }
0x1d37   :  { %vm1877_vm14 = vmor %vm1875_vm13, %vm1876_vm11 }
0x1d38   :  { %v1872_v7 = vsub.f32 1.0, %v1871_v32 }
0x1d3a   :  { %v1873_v61 = vmul.f32 %v2370_v52, %v1872_v7 }
0x1d3c   :  { %v1874_v33 = vadd.f32 %v2370_v52, %v1873_v61 }
0x1d3e   :  { %v1878_v41 = vsel %vm1877_vm14, %v2370_v52, %v1874_v33 }
0x1d3f   :  { %v1883_v44 = vsel %vm1880_vm15, %v1882_v28, %v1878_v41 }
0x1d40   :  { %v1886_v46 = vmul.f32 %v1883_v44, %v2763_v42  ;;  %v833_v42 = vperm.slane %v2628_v38, 0 }
0x1d85   :  { %v1889_v35 = vpop.permute.xlu2 %1888 }
0x1d86   :  { %v1891_v45 = vmul.f32 %v1889_v35, %v1883_v44 }
0x1d88   :  { %1893 = vrot.lane.b32.xlu0 %v1891_v45, %s2414_s18 }
0x1dfa   :  { %v1894_v10 = vpop.permute.xlu0 %1893 }
0x1dfb   :  { %v1896_v9 = vadd.f32 %v1894_v10, %v1886_v46 }
0x1dfd   :  { %2371 = vtanh.f32 %v1896_v9  ;;  %2010 = vst.msk [vmem:[#allocation3] sm:$0x1] %vm40_vm0, %v1896_v9  ;;  %v1998_v50 = vperm.slane %v1896_v9, 0 }
0x1e03   :  { %v2372_v36 = vpop.eup %2371 }
0x1e04   :  { %v1899_v14 = vperm.slane %v2372_v36, 0 }
0x1e06   :  { %1900 = vrot.lane.b32.xlu1 %v1899_v14, %s2415_s2 }
0x1e0e   :  { %367 = vrot.lane.b32.xlu1 %v366_v40, %s2413_s15 }
0x1e16   :  { %1067 = vrot.lane.b32.xlu1 %v1066_v47, %s2413_s15 }
0x1e1e   :  { %1766 = vrot.lane.b32.xlu1 %v1765_v15, %s2413_s15 }
0x1e26   :  { %604 = vrot.lane.b32.xlu1 %v2598_v25, %s2414_s18  ;;  %v1299_v25 = vperm.slane %v2699_v27, 0 }
0x1e2e   :  { %1303 = vrot.lane.b32.xlu1 %v2703_v31, %s2414_s18  ;;  %v1532_v31 = vperm.slane %v2731_v56, 0 }
0x1e78   :  { %v1901_v49 = vpop.permute.xlu1 %1900 }
0x1e79   :  { %v1903_v13 = vmul.f32 %v1901_v49, %v1883_v44 }
0x1e7b   :  { %2002 = vrot.lane.b32.xlu1 %v1903_v13, %s2414_s18  ;;  %1906 = vrot.lane.b32.xlu2 %v1903_v13, %s2416_s19  ;;  %v1904_v5 = vmul.f32 %v1903_v13, %v1903_v13 }
0x1e7d   :  { %1910 = vrot.lane.b32.xlu0 %v1904_v5, %s2417_s20 }
0x1e80   :  { %v368_v21 = vpop.permute.xlu1 %367 }
0x1e83   :  { %601 = vrot.lane.b32.xlu2 %v600_v53, %s2413_s15 }
0x1e85   :  { %834 = vrot.lane.b32.xlu0 %v833_v42, %s2413_s15 }
0x1e88   :  { %v1068_v38 = vpop.permute.xlu1 %1067 }
0x1e89   :  { %v1073_v28 = vsel %vm50_vm1, %v2684_v58, %v1068_v38 }
0x1e8b   :  { %1300 = vrot.lane.b32.xlu2 %v1299_v25, %s2413_s15 }
0x1e8d   :  { %1533 = vrot.lane.b32.xlu0 %v1532_v31, %s2413_s15 }
0x1e90   :  { %v2829_v27 = vpop.permute.xlu1 %1766 }
0x1e91   :  { %v1772_v14 = vsel %vm50_vm1, %v2780_v3, %v2829_v27 }
0x1e93   :  { %1999 = vrot.lane.b32.xlu2 %v1998_v50, %s2413_s15 }
0x1e95   :  { %370 = vrot.lane.b32.xlu0 %v2555_v11, %s2414_s18 }
0x1e98   :  { %v605_v54 = vpop.permute.xlu1 %604 }
0x1e9b   :  { %837 = vrot.lane.b32.xlu2 %v2632_v43, %s2414_s18 }
0x1e9d   :  { %1070 = vrot.lane.b32.xlu0 %v2668_v57, %s2414_s18 }
0x1ea3   :  { %1536 = vrot.lane.b32.xlu2 %v2735_v2, %s2414_s18  ;;  %v1304_v2 = vpop.permute.xlu1 %1303 }
0x1ea5   :  { %1769 = vrot.lane.b32.xlu0 %v2767_v48, %s2414_s18 }
0x1ed5   :  { %v1907_v56 = vpop.permute.xlu2 %1906 }
0x1edd   :  { %v602_v11 = vpop.permute.xlu2 %601 }
0x1ede   :  { %v607_v43 = vsel %vm50_vm1, %v2612_v19, %v602_v11 }
0x1edf   :  { %v608_v55 = vsel %vm112_vm9, %v607_v43, %v605_v54 }
0x1ee0   :  { %609 = vst.msk [vmem:[#allocation5 + $0x1] sm:$0x1] %vm375_vm2, %v608_v55 }
0x1ee5   :  { %v1301_v57 = vpop.permute.xlu2 %1300 }
0x1ee6   :  { %v1306_v48 = vsel %vm50_vm1, %v2716_v34, %v1301_v57 }
0x1ee7   :  { %v1307_v59 = vsel %vm112_vm9, %v1306_v48, %v1304_v2 }
0x1ee8   :  { %1308 = vst.msk [vmem:[#allocation5 + $0x4] sm:$0x1] %vm375_vm2, %v1307_v59 }
0x1eed   :  { %v2839_v60 = vpop.permute.xlu2 %1999 }
0x1eef   :  { %v1911_v1 = vpop.permute.xlu0 %1910 }
0x1ef0   :  { %v2842_v4 = vsel %vm50_vm1, %v1907_v56, %v1911_v1 }
0x1ef1   :  { %v2845_v19 = vand.u32 2147483647, %v2842_v4  ;;  %vm1970_vm14 = vcmp.lt.f32.partialorder %v2842_v4, 0.0 }
0x1ef3   :  { %v1916_v62 = vmax.f32 %v2845_v19, 1e-30  ;;  %vm1915_vm8 = vcmp.gt.f32.partialorder %v2845_v19, 1.0 }
0x1ef5   :  { %2373 = vrcp.f32 %v1916_v62  ;;  %v838_v8 = vpop.permute.xlu2 %837  ;;  %v1928_v22 = vand.u32 2147483648, %v1916_v62  ;;  %v1926_v26 = vand.u32 2147483647, %v1916_v62  ;;  %vm1922_vm4 = vweird.f32 %v1916_v62 }
0x1ef7   :  { %v835_v51 = vpop.permute.xlu0 %834  ;;  %vm1927_vm7 = vcmp.eq.f32.partialorder %v1926_v26, 8.507059e+37 }
0x1ef8   :  { %v840_v34 = vsel %vm50_vm1, %v2646_v39, %v835_v51  ;;  %v1929_v39 = vor.u32 1.1754944e-38, %v1928_v22 }
0x1ef9   :  { %v841_v16 = vsel %vm112_vm9, %v840_v34, %v838_v8 }
0x1efa   :  { %842 = vst.msk [vmem:[#allocation5 + $0x2] sm:$0x1] %vm375_vm2, %v841_v16  ;;  %v2003_v16 = vpop.permute.xlu1 %2002 }
0x1efb   :  { %v2374_v17 = vpop.eup %2373 }
0x1efc   :  { %v1918_v20 = vmul.f32 %v2374_v17, %v1916_v62  ;;  %vm1923_vm3 = vweird.f32 %v2374_v17 }
0x1efd   :  { %v1537_v29 = vpop.permute.xlu2 %1536  ;;  %vm1924_vm5 = vmor %vm1922_vm4, %vm1923_vm3 }
0x1efe   :  { %v1919_v6 = vsub.f32 1.0, %v1918_v20 }
0x1eff   :  { %v1534_v23 = vpop.permute.xlu0 %1533 }
0x1f00   :  { %v1920_v24 = vmul.f32 %v2374_v17, %v1919_v6  ;;  %v1539_v0 = vsel %vm50_vm1, %v2748_v12, %v1534_v23  ;;  %v373_v12 = vsel %vm50_vm1, %v2578_v63, %v368_v21 }
0x1f01   :  { %v1540_v30 = vsel %vm112_vm9, %v1539_v0, %v1537_v29 }
0x1f02   :  { %v1921_v52 = vadd.f32 %v2374_v17, %v1920_v24  ;;  %1541 = vst.msk [vmem:[#allocation5 + $0x5] sm:$0x1] %vm375_vm2, %v1540_v30 }
0x1f04   :  { %v1925_v32 = vsel %vm1924_vm5, %v2374_v17, %v1921_v52 }
0x1f05   :  { %v1930_v7 = vsel %vm1927_vm7, %v1929_v39, %v1925_v32 }
0x1f06   :  { %v1932_v61 = vsel %vm1915_vm8, %v1930_v7, %v2845_v19 }
0x1f07   :  { %v1935_v33 = vadd.f32 1.0, %v1932_v61  ;;  %v371_v18 = vpop.permute.xlu0 %370  ;;  %v2201_v47 = vadd.f32 -1.0, %v1932_v61  ;;  %vm1933_vm13 = vcmp.gt.f32.partialorder %v1932_v61, 0.41421357 }
0x1f08   :  { %v374_v37 = vsel %vm112_vm9, %v373_v12, %v371_v18 }
0x1f09   :  { %2375 = vrcp.f32 %v1935_v33  ;;  %376 = vst.msk [vmem:[#allocation5] sm:$0x1] %vm375_vm2, %v374_v37  ;;  %v1947_v10 = vand.u32 2147483648, %v1935_v33  ;;  %v1945_v9 = vand.u32 2147483647, %v1935_v33  ;;  %vm1941_vm6 = vweird.f32 %v1935_v33 }
0x1f0b   :  { %v1948_v40 = vor.u32 1.1754944e-38, %v1947_v10  ;;  %vm1946_vm11 = vcmp.eq.f32.partialorder %v1945_v9, 8.507059e+37 }
0x1f0f   :  { %v2376_v41 = vpop.eup %2375  ;;  %v1071_v35 = vpop.permute.xlu0 %1070 }
0x1f10   :  { %v1937_v44 = vmul.f32 %v2376_v41, %v1935_v33  ;;  %v1074_v45 = vsel %vm112_vm9, %v1073_v28, %v1071_v35  ;;  %vm1942_vm10 = vweird.f32 %v2376_v41 }
0x1f11   :  { %1075 = vst.msk [vmem:[#allocation5 + $0x3] sm:$0x1] %vm375_vm2, %v1074_v45  ;;  %vm1943_vm12 = vmor %vm1941_vm6, %vm1942_vm10 }
0x1f12   :  { %v1938_v46 = vsub.f32 1.0, %v1937_v44 }
0x1f14   :  { %v1939_v63 = vmul.f32 %v2376_v41, %v1938_v46 }
0x1f16   :  { %v1940_v36 = vadd.f32 %v2376_v41, %v1939_v63 }
0x1f17   :  { %v1770_v58 = vpop.permute.xlu0 %1769 }
0x1f18   :  { %v1944_v15 = vsel %vm1943_vm12, %v2376_v41, %v1940_v36  ;;  %v1773_v49 = vsel %vm112_vm9, %v1772_v14, %v1770_v58 }
0x1f19   :  { %v1949_v13 = vsel %vm1946_vm11, %v1948_v40, %v1944_v15  ;;  %1774 = vst.msk [vmem:[#allocation5 + $0x6] sm:$0x1] %vm375_vm2, %v1773_v49  ;;  %v2081_v49 = vld [vmem:[%s2919_s6] sm:$0xff]  ;;  %vm2114_vm11 = vcmask 1043456  }
0x1f1a   :  { %v1950_v5 = vmul.f32 %v2201_v47, %v1949_v13  ;;  %2100 = vmatpush.msra.mxu1 %v2081_v49 }
0x1f1c   :  { %v1951_v53 = vsel %vm1933_vm13, %v1950_v5, %v1932_v61 }
0x1f1d   :  { %v1952_v42 = vmul.f32 %v1951_v53, %v1951_v53 }
0x1f1f   :  { %v1953_v25 = vmul.f32 0.07692308, %v1952_v42 }
0x1f21   :  { %v1954_v31 = vsub.f32 0.09090909, %v1953_v25 }
0x1f23   :  { %v1955_v50 = vmul.f32 %v1954_v31, %v1952_v42 }
0x1f25   :  { %v1956_v3 = vsub.f32 0.11111111, %v1955_v50 }
0x1f27   :  { %v1957_v21 = vmul.f32 %v1956_v3, %v1952_v42 }
0x1f29   :  { %v1958_v38 = vsub.f32 0.14285715, %v1957_v21 }
0x1f2b   :  { %v1959_v27 = vmul.f32 %v1958_v38, %v1952_v42 }
0x1f2d   :  { %v1960_v56 = vsub.f32 0.2, %v1959_v27 }
0x1f2f   :  { %v1961_v54 = vmul.f32 %v1960_v56, %v1952_v42 }
0x1f31   :  { %v1962_v11 = vsub.f32 0.33333334, %v1961_v54 }
0x1f33   :  { %v1963_v43 = vmul.f32 %v1962_v11, %v1952_v42 }
0x1f35   :  { %v1964_v55 = vsub.f32 1.0, %v1963_v43 }
0x1f37   :  { %v1965_v57 = vmul.f32 %v1964_v55, %v1951_v53 }
0x1f39   :  { %v1966_v2 = vadd.f32 0.7853982, %v1965_v57 }
0x1f3b   :  { %v1967_v48 = vsel %vm1933_vm13, %v1966_v2, %v1965_v57  ;;  %v2106_v2 = vld [vmem:[%s2920_s7] sm:$0xf]  ;;  %vm2143_vm13 = vcmask 72704  }
0x1f3c   :  { %v1968_v59 = vsub.f32 1.5707964, %v1967_v48  ;;  %2205 = vmatpush.msk.msra.mxu2 %vm2114_vm11, %v2106_v2 }
0x1f3e   :  { %v1969_v1 = vsel %vm1915_vm8, %v1968_v59, %v1967_v48 }
0x1f3f   :  { %v1971_v62 = vsub.f32 0.0, %v1969_v1 }
0x1f41   :  { %v1972_v8 = vsel %vm1970_vm14, %v1971_v62, %v1969_v1  ;;  %v2214_v1 = vld [vmem:[#allocation6] ss:$0 sm:$0xff] }
0x1f42   :  { %2202 = vmatmul.msk.f32.vlgmr.msra.gmra.mxu0 %vm112_vm9, %v1972_v8 }
0x1fbf   :  { %v1993_v51 = vpop.f32.mrf.mxu0 }
0x1fc0   :  { %2377 = vtanh.f32 %v1993_v51 }
0x1fc6   :  { %v2378_v34 = vpop.eup %2377 }
0x1fc7   :  { %v2005_v17 = vsel %vm50_vm1, %v2378_v34, %v2839_v60  ;;  %2009 = vst.msk [vmem:[#allocation2] sm:$0x1] %vm40_vm0, %v2378_v34 }
0x1fc8   :  { %v2006_v20 = vsel %vm112_vm9, %v2005_v17, %v2003_v16 }
0x1fc9   :  { %2007 = vst.msk [vmem:[#allocation5 + $0x7] sm:$0x1] %vm375_vm2, %v2006_v20 }
0x1fd0   :  { %v2884_v19 = vld [vmem:[#allocation5] sm:$0xff] }
0x1fd1   :  { %2014 = vrot.lane.b32.xlu2 %v2884_v19, %s2417_s20  ;;  %v2012_v4 = vmul.f32 %v2884_v19, %v2884_v19 }
0x1fd3   :  { %2018 = vrot.lane.b32.xlu0 %v2012_v4, %s2414_s18 }
0x202b   :  { %v2015_v6 = vpop.permute.xlu2 %2014 }
0x2045   :  { %v2019_v22 = vpop.permute.xlu0 %2018 }
0x2046   :  { %v2892_v60 = vsel %vm50_vm1, %v2015_v6, %v2019_v22 }
0x2047   :  { %v2022_v23 = vand.u32 2147483647, %v2892_v60  ;;  %vm2078_vm12 = vcmp.lt.f32.partialorder %v2892_v60, 0.0 }
0x2049   :  { %v2024_v24 = vmax.f32 %v2022_v23, 1e-30  ;;  %vm2023_vm4 = vcmp.gt.f32.partialorder %v2022_v23, 1.0 }
0x204b   :  { %2379 = vrcp.f32 %v2024_v24  ;;  %v2036_v30 = vand.u32 2147483648, %v2024_v24  ;;  %v2034_v39 = vand.u32 2147483647, %v2024_v24  ;;  %vm2030_vm15 = vweird.f32 %v2024_v24 }
0x204d   :  { %v2037_v7 = vor.u32 1.1754944e-38, %v2036_v30  ;;  %vm2035_vm3 = vcmp.eq.f32.partialorder %v2034_v39, 8.507059e+37 }
0x2051   :  { %v2380_v26 = vpop.eup %2379 }
0x2052   :  { %v2026_v29 = vmul.f32 %v2380_v26, %v2024_v24  ;;  %vm2031_vm0 = vweird.f32 %v2380_v26 }
0x2053   :  { %vm2032_vm2 = vmor %vm2030_vm15, %vm2031_vm0 }
0x2054   :  { %v2027_v0 = vsub.f32 1.0, %v2026_v29 }
0x2056   :  { %v2028_v52 = vmul.f32 %v2380_v26, %v2027_v0 }
0x2058   :  { %v2029_v32 = vadd.f32 %v2380_v26, %v2028_v52 }
0x205a   :  { %v2033_v61 = vsel %vm2032_vm2, %v2380_v26, %v2029_v32 }
0x205b   :  { %v2038_v12 = vsel %vm2035_vm3, %v2037_v7, %v2033_v61 }
0x205c   :  { %v2040_v33 = vsel %vm2023_vm4, %v2038_v12, %v2022_v23 }
0x205d   :  { %v2043_v18 = vadd.f32 1.0, %v2040_v33  ;;  %v2203_v63 = vadd.f32 -1.0, %v2040_v33  ;;  %vm2041_vm6 = vcmp.gt.f32.partialorder %v2040_v33, 0.41421357 }
0x205f   :  { %2381 = vrcp.f32 %v2043_v18  ;;  %v2055_v35 = vand.u32 2147483648, %v2043_v18  ;;  %v2053_v45 = vand.u32 2147483647, %v2043_v18  ;;  %vm2049_vm7 = vweird.f32 %v2043_v18 }
0x2061   :  { %v2056_v10 = vor.u32 1.1754944e-38, %v2055_v35  ;;  %vm2054_vm10 = vcmp.eq.f32.partialorder %v2053_v45, 8.507059e+37 }
0x2065   :  { %v2382_v37 = vpop.eup %2381 }
0x2066   :  { %v2045_v41 = vmul.f32 %v2382_v37, %v2043_v18  ;;  %vm2050_vm5 = vweird.f32 %v2382_v37 }
0x2067   :  { %vm2051_vm8 = vmor %vm2049_vm7, %vm2050_vm5 }
0x2068   :  { %v2046_v28 = vsub.f32 1.0, %v2045_v41 }
0x206a   :  { %v2047_v44 = vmul.f32 %v2382_v37, %v2046_v28 }
0x206c   :  { %v2048_v46 = vadd.f32 %v2382_v37, %v2047_v44 }
0x206e   :  { %v2052_v9 = vsel %vm2051_vm8, %v2382_v37, %v2048_v46 }
0x206f   :  { %v2057_v36 = vsel %vm2054_vm10, %v2056_v10, %v2052_v9 }
0x2070   :  { %v2058_v14 = vmul.f32 %v2203_v63, %v2057_v36 }
0x2072   :  { %v2059_v40 = vsel %vm2041_vm6, %v2058_v14, %v2040_v33 }
0x2073   :  { %v2060_v58 = vmul.f32 %v2059_v40, %v2059_v40 }
0x2075   :  { %v2061_v47 = vmul.f32 0.07692308, %v2060_v58 }
0x2077   :  { %v2062_v15 = vsub.f32 0.09090909, %v2061_v47 }
0x2079   :  { %v2063_v13 = vmul.f32 %v2062_v15, %v2060_v58 }
0x207b   :  { %v2064_v5 = vsub.f32 0.11111111, %v2063_v13 }
0x207d   :  { %v2065_v53 = vmul.f32 %v2064_v5, %v2060_v58 }
0x207f   :  { %v2066_v42 = vsub.f32 0.14285715, %v2065_v53 }
0x2081   :  { %v2067_v25 = vmul.f32 %v2066_v42, %v2060_v58 }
0x2083   :  { %v2068_v31 = vsub.f32 0.2, %v2067_v25 }
0x2085   :  { %v2069_v50 = vmul.f32 %v2068_v31, %v2060_v58 }
0x2087   :  { %v2070_v3 = vsub.f32 0.33333334, %v2069_v50 }
0x2089   :  { %v2071_v21 = vmul.f32 %v2070_v3, %v2060_v58 }
0x208b   :  { %v2072_v38 = vsub.f32 1.0, %v2071_v21 }
0x208d   :  { %v2073_v27 = vmul.f32 %v2072_v38, %v2059_v40 }
0x208f   :  { %v2074_v56 = vadd.f32 0.7853982, %v2073_v27 }
0x2091   :  { %v2075_v54 = vsel %vm2041_vm6, %v2074_v56, %v2073_v27 }
0x2092   :  { %v2076_v11 = vsub.f32 1.5707964, %v2075_v54 }
0x2094   :  { %v2077_v43 = vsel %vm2023_vm4, %v2076_v11, %v2075_v54 }
0x2095   :  { %v2079_v55 = vsub.f32 0.0, %v2077_v43 }
0x2097   :  { %v2080_v57 = vsel %vm2078_vm12, %v2079_v55, %v2077_v43 }
0x2098   :  { %2204 = vmatmul.msk.f32.vlgmr.msra.gmra.mxu1 %vm112_vm9, %v2080_v57 }
0x2115   :  { %v2102_v48 = vpop.f32.mrf.mxu1 }
0x2116   :  { %2383 = vtanh.f32 %v2102_v48 }
0x211c   :  { %v2384_v59 = vpop.eup %2383 }
0x211d   :  { %2206 = vmatmul.msk.f32.vlgmr.msra.gmra.mxu2 %vm50_vm1, %v2384_v59 }
0x21a0   :  { %v2135_v62 = vpop.f32.mrf.mxu2 }
0x21a1   :  { %v2136_v8 = vadd.f32 %v2214_v1, %v2135_v62 }
0x21a3   :  { %2139 = vrot.lane.b32.xlu1 %v2136_v8, %s2418_s28 }
0x2215   :  { %v2140_v51 = vpop.permute.xlu1 %2139 }
0x2216   :  { %v2142_v34 = vsel %vm112_vm9, %v2884_v19, %v2140_v51 }
0x2217   :  { %2144 = vst.msk [vmem:[#allocation7] sm:$0xff] %vm2143_vm13, %v2142_v34 }
0x2218   :  { %2155 = dma.vmem_to_hbm [thread:$0]  %s2151_s30, 128, %s2153_s12, [#allocation8]  }
0x2219   :  { %2411 = dma.done.wait [#allocation8], 128  }
0x221a   :  { %2412 = vsyncadd [#allocation8], 4294967168 }
0x221b   :  { %2160 = vsyncpa [#allocation8], 1 }

</bundles_post_ra>
